<compile_context>
chip_gen: v7x
topology: tpu7x:2x2x1
jax: 0.10.0
libtpu: 0.0.40
codegen_flags: <defaults>
</compile_context>

<pallas_src>
import functools
import math
import numpy as np

import jax
import jax.numpy as jnp
from jax import lax
from jax.experimental import pallas as pl
from jax.experimental.pallas import tpu as pltpu


def _round_up(x, mult):
    return ((x + mult - 1) // mult) * mult


# =============================================================================
# Parameter construction (host-side glue; deterministic, in-script)
# =============================================================================
def monarch_linear_params(key, in_features, out_features, nblocks=4):
    """Block-diagonal factors + bias, shapes matching MonarchLinear.__init__."""
    in_blksz = int(math.ceil(in_features / nblocks))
    out_blksz = int(math.ceil(out_features / nblocks))
    in_ext = in_blksz * nblocks
    out_ext = out_blksz * nblocks
    assert in_ext == in_features, "chosen shapes need no input padding"
    if in_ext < out_ext:
        w1_shape = (nblocks, in_blksz, in_blksz)    # (k, q, p)
        w2_shape = (nblocks, out_blksz, in_blksz)   # (l, s, r)
    else:
        w1_shape = (nblocks, out_blksz, in_blksz)
        w2_shape = (nblocks, out_blksz, out_blksz)
    k1, k2, k3 = jax.random.split(key, 3)
    w1 = jax.random.normal(k1, w1_shape, jnp.float32) / math.sqrt(w1_shape[-1])
    w2 = jax.random.normal(k2, w2_shape, jnp.float32) / math.sqrt(w2_shape[-1])
    bias = jax.random.normal(k3, (out_features,), jnp.float32) * 0.02
    return w1, w2, bias


def monarch_dense_factors(w1, w2, out_features):
    """Fold block-diag factors + monarch permutations into two dense matrices so
    monarch(x) == (x @ A) @ B + bias  (exact: only adds multiplications by 0)."""
    w1 = np.asarray(w1, np.float64)
    w2 = np.asarray(w2, np.float64)
    k, q, p = w1.shape
    l, s, r = w2.shape
    n = k * p
    assert l * r == k * q
    W1d = np.zeros((k * q, n), np.float64)
    for ki in range(k):
        W1d[ki * q:(ki + 1) * q, ki * p:(ki + 1) * p] = w1[ki]
    W2d = np.zeros((l * s, l * r), np.float64)
    for li in range(l):
        W2d[li * s:(li + 1) * s, li * r:(li + 1) * r] = w2[li]
    # mid permutation: out1p[l_idx*r + r_idx] = out1[r_idx*l + l_idx]
    P_mid = np.zeros(l * r, np.int64)
    for r_idx in range(r):
        for l_idx in range(l):
            P_mid[l_idx * r + r_idx] = r_idx * l + l_idx
    M = W2d[:, np.argsort(P_mid)]                     # out2 = out1 @ M.T
    # output permutation: final[s_idx*l + l_idx] = out2[l_idx*s + s_idx]
    P_out = np.zeros(s * l, np.int64)
    for s_idx in range(s):
        for l_idx in range(l):
            P_out[s_idx * l + l_idx] = l_idx * s + s_idx
    M_final = M[P_out, :][:out_features, :]           # (out_features, k*q)
    A = W1d.T                                         # (n, k*q)
    B = M_final.T                                     # (k*q, out_features)
    return A, B


# =============================================================================
# Host-side numpy reference (module semantics, float64) — validation only
# =============================================================================
def monarch_ref_np(x, w1, w2, bias, out_features):
    w1 = np.asarray(w1, np.float64)
    w2 = np.asarray(w2, np.float64)
    k, q, p = w1.shape
    l, s, r = w2.shape
    bshape = x.shape[:-1]
    xb = x.reshape(-1, k, p)
    out1 = np.einsum('bkp,kqp->bkq', xb, w1)
    out1 = out1.reshape(-1, r, l).transpose(0, 2, 1)
    out2 = np.einsum('blr,lsr->bls', out1, w2)
    out2 = out2.transpose(0, 2, 1).reshape(-1, s * l)
    out2 = out2[:, :out_features] + np.asarray(bias, np.float64)
    return out2.reshape(*bshape, out_features)


def reference_forward_np(x, p):
    emb, m = p['emb'], p['m']
    x = np.asarray(x, np.float64)
    kqv = monarch_ref_np(x, p['kqv_w1'], p['kqv_w2'], p['kqv_b'], 3 * emb)
    k, q, v = kqv[..., :emb], kqv[..., emb:2 * emb], kqv[..., 2 * emb:]
    w = np.asarray(p['w'], np.float64)

    def prm_exp(t):
        xd = np.sum(t * t, axis=-1, keepdims=True) / 2.0
        wtx = np.einsum('bti,mi->btm', t, w)
        return np.exp(wtx - xd) / math.sqrt(m)

    kp, qp = prm_exp(k), prm_exp(q)
    D = np.einsum('bti,bi->bt', qp, kp.sum(axis=1))[..., None]
    kptv = np.einsum('bin,bim->bnm', v, kp)
    y = np.einsum('bti,bni->btn', qp, kptv) / (D + 1e-8)
    # proj_drop = 0.0 and drop_path = Identity -> no-ops in forward; norm1 unused.
    return monarch_ref_np(y, p['proj_w1'], p['proj_w2'], p['proj_b'], emb)


# =============================================================================
# Pallas kernel: fused kqv-Monarch -> Performer attention -> proj-Monarch.
# One batch-block (bblk * t_pad rows) per grid step; per-batch reductions are
# segmented inside the block.
# =============================================================================
def _monarch_performer_kernel(x_ref,        # (rows, dim)     input dtype (cast in-kernel)
                              a_kqv_ref,    # (dim, n1)       mxu dtype
                              b_kqv_ref,    # (n1, 3*emb_pad) mxu dtype  [Bk|Bq|Bv] segments
                              kqv_b_ref,    # (1, 3*emb_pad)  f32
                              w_kq_ref,     # (n1, 2*m_pad)   mxu dtype  [Bk@w^T | Bq@w^T]
                              w_kq_b_ref,   # (1, 2*m_pad)    f32 (-1e30 on pad lanes)
                              a_proj_ref,   # (emb_pad, n2)   mxu dtype
                              b_proj_ref,   # (n2, emb_pad)   mxu dtype
                              proj_b_ref,   # (1, emb_pad)    f32
                              o_ref,        # (rows, emb_pad)
                              *, t_pad, t_real, m, mxu_precision):
    f32 = jnp.float32
    mxu_dt = a_kqv_ref.dtype
    rows = x_ref.shape[0]
    bblk = rows // t_pad
    emb_pad = a_proj_ref.shape[0]
    m_pad = w_kq_ref.shape[1] // 2

    x = x_ref[...].astype(mxu_dt)          # cast in VMEM, not in a wrapper HBM pass

    # ---- MonarchLinear kqv (block-diag factors + permutations folded exactly) -----
    h = jnp.dot(x, a_kqv_ref[...], preferred_element_type=f32,
                precision=mxu_precision).astype(mxu_dt)
    # One fused second-stage matmul; k/q/v each occupy a 128-aligned lane segment.
    kqv = jnp.dot(h, b_kqv_ref[...], preferred_element_type=f32,
                  precision=mxu_precision) + kqv_b_ref[...]
    k = kqv[:, 0:emb_pad]
    q = kqv[:, emb_pad:2 * emb_pad]
    v = kqv[:, 2 * emb_pad:3 * emb_pad]

    # ---- Performer feature map.  w^T is folded through Bk/Bq host-side, so wtx_k /
    # wtx_q come straight out of h (no [k;q] concat copy).  Random-feature pad lanes
    # carry a -1e30 bias so exp() zeroes them without an iota/where mask.
    wtx = jnp.dot(h, w_kq_ref[...], preferred_element_type=f32,
                  precision=mxu_precision) + w_kq_b_ref[...]
    xd_k = 0.5 * jnp.sum(k * k, axis=-1, keepdims=True)
    xd_q = 0.5 * jnp.sum(q * q, axis=-1, keepdims=True)
    if t_real != t_pad:
        # zero-padded sequence rows: push exp() to 0 so they drop out of kp_sum / kptv
        seq_pos = lax.broadcasted_iota(jnp.int32, (rows, 1), 0) % t_pad
        xd_k = xd_k + jnp.where(seq_pos < t_real, 0.0, 1e30).astype(f32)
    inv_sqrt_m = 1.0 / math.sqrt(m)
    kp = jnp.exp(wtx[:, 0:m_pad] - xd_k) * inv_sqrt_m          # (rows, m_pad) f32
    qp = jnp.exp(wtx[:, m_pad:2 * m_pad] - xd_q) * inv_sqrt_m  # (rows, m_pad) f32

    def _normalize(yv, dv):
        den = dv + 1e-8
        r0 = pl.reciprocal(den, approx=True)          # EUP slot
        return yv * (r0 * (2.0 - den * r0))           # one Newton step -> f32-accurate

    # ---- Linear attention, segmented per batch element inside the row block -------
    if bblk == 1:
        # Plain 2D dots: best MXU pattern when the block is a single batch element.
        kp_sum = jnp.sum(kp, axis=0, keepdims=True)                      # (1, m_pad)
        d = jnp.sum(qp * kp_sum, axis=-1, keepdims=True)                 # (rows, 1)
        kptv = lax.dot_general(v.astype(mxu_dt), kp.astype(mxu_dt),
                               (((0,), (0,)), ((), ())),
                               preferred_element_type=f32,
                               precision=mxu_precision)                  # (emb_pad, m_pad)
        y = lax.dot_general(qp.astype(mxu_dt), kptv.astype(mxu_dt),
                            (((1,), (1,)), ((), ())),
                            preferred_element_type=f32,
                            precision=mxu_precision)                     # (rows, emb_pad)
        y = _normalize(y, d)
    else:
        # NOTE(v6e/v7x): these batched dot_generals run with per-batch M=K=t_pad; with
        # short sequences they under-fill the 256-tall MXU — fine at ViT T~196.
        kp_r = kp.reshape(bblk, t_pad, m_pad)
        qp_r = qp.reshape(bblk, t_pad, m_pad)
        v_r = v.reshape(bblk, t_pad, emb_pad)
        kp_sum = jnp.sum(kp_r, axis=1, keepdims=True)                    # (bblk,1,m_pad)
        d = jnp.sum(qp_r * kp_sum, axis=-1, keepdims=True)               # (bblk,T,1)
        kptv = lax.dot_general(v_r.astype(mxu_dt), kp_r.astype(mxu_dt),
                               (((1,), (1,)), ((0,), (0,))),
                               preferred_element_type=f32,
                               precision=mxu_precision)                  # (bblk,emb_pad,m_pad)
        y = lax.dot_general(qp_r.astype(mxu_dt), kptv.astype(mxu_dt),
                            (((2,), (2,)), ((0,), (0,))),
                            preferred_element_type=f32,
                            precision=mxu_precision)                     # (bblk,T,emb_pad)
        y = _normalize(y, d).reshape(rows, emb_pad)

    # ---- MonarchLinear proj (proj_drop=0.0 / drop_path=Identity -> no-ops) ---------
    h2 = jnp.dot(y.astype(mxu_dt), a_proj_ref[...], preferred_element_type=f32,
                 precision=mxu_precision).astype(mxu_dt)
    out = jnp.dot(h2, b_proj_ref[...], preferred_element_type=f32,
                  precision=mxu_precision) + proj_b_ref[...]
    o_ref[...] = out.astype(o_ref.dtype)                                 # lane-dense store


# =============================================================================
# Wrapper / parameter preparation
# =============================================================================
def prepare_params(kqv_w1, kqv_w2, kqv_b, proj_w1, proj_w2, proj_b, w, emb,
                   mxu_dtype=jnp.bfloat16, out_dtype=jnp.float32, mxu_precision=None):
    """Fold, fuse and lane-pad the Monarch / Performer weights for the kernel."""
    m = int(w.shape[0])
    emb_pad = _round_up(emb, 128)
    m_pad = _round_up(m, 128)

    a_kqv, b_kqv = monarch_dense_factors(kqv_w1, kqv_w2, 3 * emb)   # (dim,n1),(n1,3emb)
    a_proj, b_proj = monarch_dense_factors(proj_w1, proj_w2, emb)   # (emb,n2),(n2,emb)
    kqv_b_np = np.asarray(kqv_b, np.float64)
    proj_b_np = np.asarray(proj_b, np.float64)
    w_t = np.asarray(w, np.float64).T                               # (emb, m)
    n1 = b_kqv.shape[0]
    n2 = b_proj.shape[0]

    # Fused second stage: [Bk | Bq | Bv], each segment padded to a 128-lane boundary.
    b_fused = np.zeros((n1, 3 * emb_pad), np.float64)
    bias_fused = np.zeros((1, 3 * emb_pad), np.float64)
    for i in range(3):
        b_fused[:, i * emb_pad:i * emb_pad + emb] = b_kqv[:, i * emb:(i + 1) * emb]
        bias_fused[0, i * emb_pad:i * emb_pad + emb] = kqv_b_np[i * emb:(i + 1) * emb]

    # Performer projection folded through Bk / Bq; pad lanes get -1e30 (exp -> 0).
    w_kq = np.zeros((n1, 2 * m_pad), np.float64)
    w_kq_b = np.full((1, 2 * m_pad), -1e30, np.float64)
    for i in range(2):                                # 0 -> k, 1 -> q
        w_kq[:, i * m_pad:i * m_pad + m] = b_kqv[:, i * emb:(i + 1) * emb] @ w_t
        w_kq_b[0, i * m_pad:i * m_pad + m] = kqv_b_np[i * emb:(i + 1) * emb] @ w_t

    a_proj_pad = np.zeros((emb_pad, n2), np.float64); a_proj_pad[:emb, :] = a_proj
    b_proj_pad = np.zeros((n2, emb_pad), np.float64); b_proj_pad[:, :emb] = b_proj
    proj_b_pad = np.zeros((1, emb_pad), np.float64);  proj_b_pad[0, :emb] = proj_b_np

    def as_mxu(arr):
        return jnp.asarray(np.asarray(arr, np.float32)).astype(mxu_dtype)

    def as_f32(arr):
        return jnp.asarray(np.asarray(arr, np.float32))

    params = dict(
        a_kqv=as_mxu(a_kqv), b_kqv=as_mxu(b_fused), kqv_b=as_f32(bias_fused),
        w_kq=as_mxu(w_kq), w_kq_b=as_f32(w_kq_b),
        a_proj=as_mxu(a_proj_pad), b_proj=as_mxu(b_proj_pad), proj_b=as_f32(proj_b_pad),
    )
    meta = dict(emb=emb, emb_pad=emb_pad, m=m, m_pad=m_pad,
                mxu_dtype=mxu_dtype, out_dtype=out_dtype, mxu_precision=mxu_precision)
    return params, meta


def _tpu_generation_defaults():
    """Per-generation row-tile target and scoped-VMEM budget."""
    vmem_cap = 128 * 1024 * 1024
    try:
        cap = getattr(pltpu.get_tpu_info(), "vmem_capacity_bytes", None)
        if cap:
            vmem_cap = int(cap)
    except Exception:
        pass
    kind = ""
    try:
        kind = jax.devices()[0].device_kind.lower()
    except Exception:
        pass
    if vmem_cap <= 64 * 1024 * 1024 or "v5" in kind:
        # v7x: 64 MiB/TC -> smaller live set.  v5e: 128-tall MXU is full at 128-256 rows.
        target_rows = 256
    else:
        target_rows = 512
    vmem_limit = min(int(vmem_cap * 0.7), 100 * 1024 * 1024)
    return target_rows, vmem_limit


def _pick_batch_block(B, t_pad, target_rows):
    """Largest divisor of B whose row block fits target_rows while keeping >= 2 grid
    steps (DMA/compute overlap on all generations; both v7x TensorCores busy)."""
    min_steps = 2 if B >= 2 else 1
    best = 1
    for c in range(1, B + 1):
        if B % c or (B // c) < min_steps:
            continue
        if c * t_pad <= max(target_rows, t_pad):
            best = c
    return best


def monarch_attention_performer(x, params, meta, *, target_rows=None):
    B, T, dim = x.shape
    emb, emb_pad, m = meta['emb'], meta['emb_pad'], meta['m']
    out_dtype = meta['out_dtype']

    auto_rows, vmem_limit = _tpu_generation_defaults()
    if target_rows is None:
        target_rows = auto_rows

    # Sublane alignment: pad T so the (bblk*t_pad, .) row blocks satisfy the (8,128)
    # constraint and the per-batch reshapes inside the kernel stay free views.  The
    # padded rows are masked out of the Performer reductions inside the kernel.
    sub = 8 if x.dtype.itemsize >= 4 else 16
    t_pad = _round_up(T, sub)
    if t_pad != T:
        x = jnp.pad(x, ((0, 0), (0, t_pad - T), (0, 0)))

    bblk = _pick_batch_block(B, t_pad, target_rows)
    rows = bblk * t_pad
    grid = (B // bblk,)

    # No wrapper-side astype: the kernel casts after the DMA (saves an HBM round trip).
    x2d = x.reshape(B * t_pad, dim)

    weight_order = ('a_kqv', 'b_kqv', 'kqv_b', 'w_kq', 'w_kq_b',
                    'a_proj', 'b_proj', 'proj_b')
    weights = [params[nm] for nm in weight_order]

    kernel_fn = functools.partial(_monarch_performer_kernel,
                                  t_pad=t_pad, t_real=T, m=m,
                                  mxu_precision=meta['mxu_precision'])

    def make_specs(single_buffer_weights):
        # Weights/biases: whole array resident, constant block index across the grid.
        if single_buffer_weights:
            wspec = lambda a: pl.BlockSpec(a.shape, lambda g: (0, 0),
                                           pipeline_mode=pl.Buffered(1))
        else:
            wspec = lambda a: pl.BlockSpec(a.shape, lambda g: (0, 0))
        return ([pl.BlockSpec((rows, dim), lambda g: (g, 0))]
                + [wspec(a) for a in weights])

    out2d = None
    for single_buffer in (True, False):
        try:
            out2d = pl.pallas_call(
                kernel_fn,
                out_shape=jax.ShapeDtypeStruct((B * t_pad, emb_pad), out_dtype),
                grid=grid,
                in_specs=make_specs(single_buffer),
                out_specs=pl.BlockSpec((rows, emb_pad), lambda g: (g, 0)),
                compiler_params=pltpu.CompilerParams(
                    dimension_semantics=("parallel",),
                    vmem_limit_bytes=vmem_limit),
            )(x2d, *weights)
            break
        except Exception:
            # Fallback: pipeline_mode=pl.Buffered(1) unsupported on this build ->
            # default double-buffered (still resident) weights.  Genuine kernel errors
            # reproduce on the retry and are re-raised there.
            if not single_buffer:
                raise

    # Drop the zero seq/lane padding.
    # TODO(synk): fold this un-pad (and a bf16 output store) into the consumer instead
    # of a separate XLA slice pass when emb is not a multiple of 128.
    return out2d.reshape(B, t_pad, emb_pad)[:, :T, :emb]


# =============================================================================
if __name__ == "__main__":
    key = jax.random.PRNGKey(0)
    B, T, dim = 2, 8, 32
    num_heads = 1
    emb = dim * num_heads
    kernel_ratio = 0.5
    m = int(emb * kernel_ratio)
    nblocks = 4

    kx, kkqv, kproj, kw = jax.random.split(key, 4)
    x = jax.random.normal(kx, (B, T, dim), jnp.float32) * 0.5

    # MonarchLinear parameters (kqv: dim -> 3*emb, proj: emb -> emb)
    kqv_w1, kqv_w2, kqv_b = monarch_linear_params(kkqv, dim, 3 * emb, nblocks)
    proj_w1, proj_w2, proj_b = monarch_linear_params(kproj, emb, emb, nblocks)

    # Performer projection matrix w: orthogonal rows scaled by sqrt(m), frozen.
    g = np.asarray(jax.random.normal(kw, (emb, m), jnp.float32), np.float64)
    qmat, _ = np.linalg.qr(g)                       # (emb, m) orthonormal columns
    w = jnp.asarray(qmat.T * math.sqrt(m), jnp.float32)   # (m, emb)

    ref = reference_forward_np(np.asarray(x), dict(
        emb=emb, m=m, w=np.asarray(w),
        kqv_w1=np.asarray(kqv_w1), kqv_w2=np.asarray(kqv_w2), kqv_b=np.asarray(kqv_b),
        proj_w1=np.asarray(proj_w1), proj_w2=np.asarray(proj_w2),
        proj_b=np.asarray(proj_b)))

    # ---- f32 MXU operands + explicit HIGHEST precision: validation path ------------
    params32, meta32 = prepare_params(kqv_w1, kqv_w2, kqv_b,
                                      proj_w1, proj_w2, proj_b, w, emb,
                                      mxu_dtype=jnp.float32,
                                      out_dtype=jnp.float32,
                                      mxu_precision=lax.Precision.HIGHEST)
    out32 = jax.block_until_ready(monarch_attention_performer(x, params32, meta32))
    np.testing.assert_allclose(np.asarray(out32, np.float64), ref,
                               rtol=1e-3, atol=1e-3)

    # ---- bf16 MXU operands (f32 accumulation): production path on v5e/v6e/v7x ------
    params16, meta16 = prepare_params(kqv_w1, kqv_w2, kqv_b,
                                      proj_w1, proj_w2, proj_b, w, emb,
                                      mxu_dtype=jnp.bfloat16,
                                      out_dtype=jnp.float32)
    out16 = jax.block_until_ready(monarch_attention_performer(x, params16, meta16))
    np.testing.assert_allclose(np.asarray(out16, np.float64), ref,
                               rtol=3e-1, atol=3e-1)   # bf16 rounding through exp

    print("KERNEL_OK")
</pallas_src>

<mosaic_0001>
module attributes {stable_mosaic.version = 11 : i64} {
  func.func @_monarch_performer_kernel(%arg0: i32, %arg1: memref<8x32xf32, #tpu.memory_space<vmem>>, %arg2: memref<32x32xf32, #tpu.memory_space<vmem>>, %arg3: memref<32x384xf32, #tpu.memory_space<vmem>>, %arg4: memref<1x384xf32, #tpu.memory_space<vmem>>, %arg5: memref<32x256xf32, #tpu.memory_space<vmem>>, %arg6: memref<1x256xf32, #tpu.memory_space<vmem>>, %arg7: memref<128x32xf32, #tpu.memory_space<vmem>>, %arg8: memref<32x128xf32, #tpu.memory_space<vmem>>, %arg9: memref<1x128xf32, #tpu.memory_space<vmem>>, %arg10: memref<8x128xf32, #tpu.memory_space<vmem>>) attributes {dimension_semantics = [#tpu.dimension_semantics<parallel>], iteration_bounds = array<i64: 2>, scalar_prefetch = 0 : i64, scratch_operands = 0 : i64, tpu.core_type = #tpu.core_type<tc>, window_params = [{transform_indices = @transform_0, window_bounds = array<i64: 8, 32>}, {pipeline_mode = #tpu.pipeline_mode<synchronous>, transform_indices = @transform_1, window_bounds = array<i64: 32, 32>}, {pipeline_mode = #tpu.pipeline_mode<synchronous>, transform_indices = @transform_2, window_bounds = array<i64: 32, 384>}, {pipeline_mode = #tpu.pipeline_mode<synchronous>, transform_indices = @transform_3, window_bounds = array<i64: 1, 384>}, {pipeline_mode = #tpu.pipeline_mode<synchronous>, transform_indices = @transform_4, window_bounds = array<i64: 32, 256>}, {pipeline_mode = #tpu.pipeline_mode<synchronous>, transform_indices = @transform_5, window_bounds = array<i64: 1, 256>}, {pipeline_mode = #tpu.pipeline_mode<synchronous>, transform_indices = @transform_6, window_bounds = array<i64: 128, 32>}, {pipeline_mode = #tpu.pipeline_mode<synchronous>, transform_indices = @transform_7, window_bounds = array<i64: 32, 128>}, {pipeline_mode = #tpu.pipeline_mode<synchronous>, transform_indices = @transform_8, window_bounds = array<i64: 1, 128>}, {transform_indices = @transform_9, window_bounds = array<i64: 8, 128>}]} {
    %c0 = arith.constant 0 : index
    %c0_0 = arith.constant 0 : index
    %0 = vector.load %arg1[%c0, %c0_0] : memref<8x32xf32, #tpu.memory_space<vmem>>, vector<8x32xf32>
    %c0_1 = arith.constant 0 : index
    %c0_2 = arith.constant 0 : index
    %1 = vector.load %arg2[%c0_1, %c0_2] : memref<32x32xf32, #tpu.memory_space<vmem>>, vector<32x32xf32>
    %cst = arith.constant dense<0.000000e+00> : vector<8x32xf32>
    %2 = tpu.matmul %0, %1, %cst {dimension_numbers = #tpu.dot_dimension_numbers<[1], [0], [0], [1], [0, 0, 1, 1], [], []>, precision = #tpu.contract_precision<fp32>} : vector<8x32xf32>, vector<32x32xf32>, vector<8x32xf32> -> vector<8x32xf32>
    %c0_3 = arith.constant 0 : index
    %c0_4 = arith.constant 0 : index
    %3 = vector.load %arg3[%c0_3, %c0_4] : memref<32x384xf32, #tpu.memory_space<vmem>>, vector<32x384xf32>
    %cst_5 = arith.constant dense<0.000000e+00> : vector<8x384xf32>
    %4 = tpu.matmul %2, %3, %cst_5 {dimension_numbers = #tpu.dot_dimension_numbers<[1], [0], [0], [1], [0, 0, 1, 1], [], []>, precision = #tpu.contract_precision<fp32>} : vector<8x32xf32>, vector<32x384xf32>, vector<8x384xf32> -> vector<8x384xf32>
    %c0_6 = arith.constant 0 : index
    %c0_7 = arith.constant 0 : index
    %5 = vector.load %arg4[%c0_6, %c0_7] : memref<1x384xf32, #tpu.memory_space<vmem>>, vector<1x384xf32>
    %6 = vector.broadcast %5 : vector<1x384xf32> to vector<8x384xf32>
    %7 = arith.addf %4, %6 : vector<8x384xf32>
    %8 = vector.extract_strided_slice %7 {offsets = [0, 0], sizes = [8, 128], strides = [1, 1]} : vector<8x384xf32> to vector<8x128xf32>
    %9 = vector.extract_strided_slice %7 {offsets = [0, 128], sizes = [8, 128], strides = [1, 1]} : vector<8x384xf32> to vector<8x128xf32>
    %10 = vector.extract_strided_slice %7 {offsets = [0, 256], sizes = [8, 128], strides = [1, 1]} : vector<8x384xf32> to vector<8x128xf32>
    %c0_8 = arith.constant 0 : index
    %c0_9 = arith.constant 0 : index
    %11 = vector.load %arg5[%c0_8, %c0_9] : memref<32x256xf32, #tpu.memory_space<vmem>>, vector<32x256xf32>
    %cst_10 = arith.constant dense<0.000000e+00> : vector<8x256xf32>
    %12 = tpu.matmul %2, %11, %cst_10 {dimension_numbers = #tpu.dot_dimension_numbers<[1], [0], [0], [1], [0, 0, 1, 1], [], []>, precision = #tpu.contract_precision<fp32>} : vector<8x32xf32>, vector<32x256xf32>, vector<8x256xf32> -> vector<8x256xf32>
    %c0_11 = arith.constant 0 : index
    %c0_12 = arith.constant 0 : index
    %13 = vector.load %arg6[%c0_11, %c0_12] : memref<1x256xf32, #tpu.memory_space<vmem>>, vector<1x256xf32>
    %14 = vector.broadcast %13 : vector<1x256xf32> to vector<8x256xf32>
    %15 = arith.addf %12, %14 : vector<8x256xf32>
    %16 = arith.mulf %8, %8 : vector<8x128xf32>
    %cst_13 = arith.constant dense<0.000000e+00> : vector<8xf32>
    %17 = vector.multi_reduction <add>, %16, %cst_13 [1] : vector<8x128xf32> to vector<8xf32>
    %18 = vector.shape_cast %17 : vector<8xf32> to vector<8x1xf32>
    %cst_14 = arith.constant 5.000000e-01 : f32
    %19 = vector.broadcast %cst_14 : f32 to vector<8x1xf32>
    %20 = arith.mulf %19, %18 : vector<8x1xf32>
    %21 = arith.mulf %9, %9 : vector<8x128xf32>
    %cst_15 = arith.constant dense<0.000000e+00> : vector<8xf32>
    %22 = vector.multi_reduction <add>, %21, %cst_15 [1] : vector<8x128xf32> to vector<8xf32>
    %23 = vector.shape_cast %22 : vector<8xf32> to vector<8x1xf32>
    %cst_16 = arith.constant 5.000000e-01 : f32
    %24 = vector.broadcast %cst_16 : f32 to vector<8x1xf32>
    %25 = arith.mulf %24, %23 : vector<8x1xf32>
    %26 = vector.extract_strided_slice %15 {offsets = [0, 0], sizes = [8, 128], strides = [1, 1]} : vector<8x256xf32> to vector<8x128xf32>
    %27 = vector.broadcast %20 : vector<8x1xf32> to vector<8x128xf32>
    %28 = arith.subf %26, %27 : vector<8x128xf32>
    %29 = math.exp %28 : vector<8x128xf32>
    %cst_17 = arith.constant 2.500000e-01 : f32
    %30 = vector.broadcast %cst_17 : f32 to vector<8x128xf32>
    %31 = arith.mulf %29, %30 : vector<8x128xf32>
    %32 = vector.extract_strided_slice %15 {offsets = [0, 128], sizes = [8, 128], strides = [1, 1]} : vector<8x256xf32> to vector<8x128xf32>
    %33 = vector.broadcast %25 : vector<8x1xf32> to vector<8x128xf32>
    %34 = arith.subf %32, %33 : vector<8x128xf32>
    %35 = math.exp %34 : vector<8x128xf32>
    %cst_18 = arith.constant 2.500000e-01 : f32
    %36 = vector.broadcast %cst_18 : f32 to vector<8x128xf32>
    %37 = arith.mulf %35, %36 : vector<8x128xf32>
    %cst_19 = arith.constant dense<0.000000e+00> : vector<128xf32>
    %38 = vector.multi_reduction <add>, %31, %cst_19 [0] : vector<8x128xf32> to vector<128xf32>
    %39 = vector.shape_cast %38 : vector<128xf32> to vector<1x128xf32>
    %40 = vector.broadcast %39 : vector<1x128xf32> to vector<8x128xf32>
    %41 = arith.mulf %37, %40 : vector<8x128xf32>
    %cst_20 = arith.constant dense<0.000000e+00> : vector<8xf32>
    %42 = vector.multi_reduction <add>, %41, %cst_20 [1] : vector<8x128xf32> to vector<8xf32>
    %43 = vector.shape_cast %42 : vector<8xf32> to vector<8x1xf32>
    %cst_21 = arith.constant dense<0.000000e+00> : vector<128x128xf32>
    %44 = tpu.matmul %10, %31, %cst_21 {dimension_numbers = #tpu.dot_dimension_numbers<[0], [0], [1], [1], [0, 1, 1, 1], [], []>, precision = #tpu.contract_precision<fp32>} : vector<8x128xf32>, vector<8x128xf32>, vector<128x128xf32> -> vector<128x128xf32>
    %cst_22 = arith.constant dense<0.000000e+00> : vector<8x128xf32>
    %45 = tpu.matmul %37, %44, %cst_22 {dimension_numbers = #tpu.dot_dimension_numbers<[1], [1], [0], [0], [0, 0, 1, 0], [], []>, precision = #tpu.contract_precision<fp32>} : vector<8x128xf32>, vector<128x128xf32>, vector<8x128xf32> -> vector<8x128xf32>
    %cst_23 = arith.constant 9.99999993E-9 : f32
    %46 = vector.broadcast %cst_23 : f32 to vector<8x1xf32>
    %47 = arith.addf %43, %46 : vector<8x1xf32>
    %48 = tpu.reciprocal %47 {approx = true} : vector<8x1xf32> -> vector<8x1xf32>
    %49 = arith.mulf %47, %48 : vector<8x1xf32>
    %cst_24 = arith.constant 2.000000e+00 : f32
    %50 = vector.broadcast %cst_24 : f32 to vector<8x1xf32>
    %51 = arith.subf %50, %49 : vector<8x1xf32>
    %52 = arith.mulf %48, %51 : vector<8x1xf32>
    %53 = vector.broadcast %52 : vector<8x1xf32> to vector<8x128xf32>
    %54 = arith.mulf %45, %53 : vector<8x128xf32>
    %c0_25 = arith.constant 0 : index
    %c0_26 = arith.constant 0 : index
    %55 = vector.load %arg7[%c0_25, %c0_26] : memref<128x32xf32, #tpu.memory_space<vmem>>, vector<128x32xf32>
    %cst_27 = arith.constant dense<0.000000e+00> : vector<8x32xf32>
    %56 = tpu.matmul %54, %55, %cst_27 {dimension_numbers = #tpu.dot_dimension_numbers<[1], [0], [0], [1], [0, 0, 1, 1], [], []>, precision = #tpu.contract_precision<fp32>} : vector<8x128xf32>, vector<128x32xf32>, vector<8x32xf32> -> vector<8x32xf32>
    %c0_28 = arith.constant 0 : index
    %c0_29 = arith.constant 0 : index
    %57 = vector.load %arg8[%c0_28, %c0_29] : memref<32x128xf32, #tpu.memory_space<vmem>>, vector<32x128xf32>
    %cst_30 = arith.constant dense<0.000000e+00> : vector<8x128xf32>
    %58 = tpu.matmul %56, %57, %cst_30 {dimension_numbers = #tpu.dot_dimension_numbers<[1], [0], [0], [1], [0, 0, 1, 1], [], []>, precision = #tpu.contract_precision<fp32>} : vector<8x32xf32>, vector<32x128xf32>, vector<8x128xf32> -> vector<8x128xf32>
    %c0_31 = arith.constant 0 : index
    %c0_32 = arith.constant 0 : index
    %59 = vector.load %arg9[%c0_31, %c0_32] : memref<1x128xf32, #tpu.memory_space<vmem>>, vector<1x128xf32>
    %60 = vector.broadcast %59 : vector<1x128xf32> to vector<8x128xf32>
    %61 = arith.addf %58, %60 : vector<8x128xf32>
    %c0_33 = arith.constant 0 : index
    %c0_34 = arith.constant 0 : index
    %62 = vector.load %arg10[%c0_33, %c0_34] : memref<8x128xf32, #tpu.memory_space<vmem>>, vector<8x128xf32>
    tpu.vector_store %arg10[%c0_33, %c0_34], %61 {strides = array<i32>} : memref<8x128xf32, #tpu.memory_space<vmem>>, vector<8x128xf32>,
    return
  }
  func.func @transform_0(%arg0: i32) -> (i32, i32) {
    %c0_i32 = arith.constant 0 : i32
    %c0_i32_0 = arith.constant 0 : i32
    return %arg0, %c0_i32 : i32, i32
  }
  func.func @transform_1(%arg0: i32) -> (i32, i32) {
    %c0_i32 = arith.constant 0 : i32
    %c0_i32_0 = arith.constant 0 : i32
    %c0_i32_1 = arith.constant 0 : i32
    return %c0_i32, %c0_i32_0 : i32, i32
  }
  func.func @transform_2(%arg0: i32) -> (i32, i32) {
    %c0_i32 = arith.constant 0 : i32
    %c0_i32_0 = arith.constant 0 : i32
    %c0_i32_1 = arith.constant 0 : i32
    return %c0_i32, %c0_i32_0 : i32, i32
  }
  func.func @transform_3(%arg0: i32) -> (i32, i32) {
    %c0_i32 = arith.constant 0 : i32
    %c0_i32_0 = arith.constant 0 : i32
    %c0_i32_1 = arith.constant 0 : i32
    return %c0_i32, %c0_i32_0 : i32, i32
  }
  func.func @transform_4(%arg0: i32) -> (i32, i32) {
    %c0_i32 = arith.constant 0 : i32
    %c0_i32_0 = arith.constant 0 : i32
    %c0_i32_1 = arith.constant 0 : i32
    return %c0_i32, %c0_i32_0 : i32, i32
  }
  func.func @transform_5(%arg0: i32) -> (i32, i32) {
    %c0_i32 = arith.constant 0 : i32
    %c0_i32_0 = arith.constant 0 : i32
    %c0_i32_1 = arith.constant 0 : i32
    return %c0_i32, %c0_i32_0 : i32, i32
  }
  func.func @transform_6(%arg0: i32) -> (i32, i32) {
    %c0_i32 = arith.constant 0 : i32
    %c0_i32_0 = arith.constant 0 : i32
    %c0_i32_1 = arith.constant 0 : i32
    return %c0_i32, %c0_i32_0 : i32, i32
  }
  func.func @transform_7(%arg0: i32) -> (i32, i32) {
    %c0_i32 = arith.constant 0 : i32
    %c0_i32_0 = arith.constant 0 : i32
    %c0_i32_1 = arith.constant 0 : i32
    return %c0_i32, %c0_i32_0 : i32, i32
  }
  func.func @transform_8(%arg0: i32) -> (i32, i32) {
    %c0_i32 = arith.constant 0 : i32
    %c0_i32_0 = arith.constant 0 : i32
    %c0_i32_1 = arith.constant 0 : i32
    return %c0_i32, %c0_i32_0 : i32, i32
  }
  func.func @transform_9(%arg0: i32) -> (i32, i32) {
    %c0_i32 = arith.constant 0 : i32
    %c0_i32_0 = arith.constant 0 : i32
    return %arg0, %c0_i32 : i32, i32
  }
}

module attributes {stable_mosaic.version = 11 : i64} {
  func.func @_monarch_performer_kernel(%arg0: i32, %arg1: memref<8x32xf32, #tpu.memory_space<vmem>>, %arg2: memref<32x32xf32, #tpu.memory_space<vmem>>, %arg3: memref<32x384xf32, #tpu.memory_space<vmem>>, %arg4: memref<1x384xf32, #tpu.memory_space<vmem>>, %arg5: memref<32x256xf32, #tpu.memory_space<vmem>>, %arg6: memref<1x256xf32, #tpu.memory_space<vmem>>, %arg7: memref<128x32xf32, #tpu.memory_space<vmem>>, %arg8: memref<32x128xf32, #tpu.memory_space<vmem>>, %arg9: memref<1x128xf32, #tpu.memory_space<vmem>>, %arg10: memref<8x128xf32, #tpu.memory_space<vmem>>) attributes {dimension_semantics = [#tpu.dimension_semantics<parallel>], iteration_bounds = array<i64: 2>, scalar_prefetch = 0 : i64, scratch_operands = 0 : i64, tpu.core_type = #tpu.core_type<tc>, window_params = [{transform_indices = @transform_0, window_bounds = array<i64: 8, 32>}, {pipeline_mode = #tpu.pipeline_mode<synchronous>, transform_indices = @transform_1, window_bounds = array<i64: 32, 32>}, {pipeline_mode = #tpu.pipeline_mode<synchronous>, transform_indices = @transform_2, window_bounds = array<i64: 32, 384>}, {pipeline_mode = #tpu.pipeline_mode<synchronous>, transform_indices = @transform_3, window_bounds = array<i64: 1, 384>}, {pipeline_mode = #tpu.pipeline_mode<synchronous>, transform_indices = @transform_4, window_bounds = array<i64: 32, 256>}, {pipeline_mode = #tpu.pipeline_mode<synchronous>, transform_indices = @transform_5, window_bounds = array<i64: 1, 256>}, {pipeline_mode = #tpu.pipeline_mode<synchronous>, transform_indices = @transform_6, window_bounds = array<i64: 128, 32>}, {pipeline_mode = #tpu.pipeline_mode<synchronous>, transform_indices = @transform_7, window_bounds = array<i64: 32, 128>}, {pipeline_mode = #tpu.pipeline_mode<synchronous>, transform_indices = @transform_8, window_bounds = array<i64: 1, 128>}, {transform_indices = @transform_9, window_bounds = array<i64: 8, 128>}]} {
    %c0 = arith.constant 0 : index
    %c0_0 = arith.constant 0 : index
    %0 = vector.load %arg1[%c0, %c0_0] : memref<8x32xf32, #tpu.memory_space<vmem>>, vector<8x32xf32>
    %c0_1 = arith.constant 0 : index
    %c0_2 = arith.constant 0 : index
    %1 = vector.load %arg2[%c0_1, %c0_2] : memref<32x32xf32, #tpu.memory_space<vmem>>, vector<32x32xf32>
    %cst = arith.constant dense<0.000000e+00> : vector<8x32xf32>
    %2 = tpu.matmul %0, %1, %cst {dimension_numbers = #tpu.dot_dimension_numbers<[1], [0], [0], [1], [0, 0, 1, 1], [], []>, precision = #tpu.contract_precision<fp32>} : vector<8x32xf32>, vector<32x32xf32>, vector<8x32xf32> -> vector<8x32xf32>
    %c0_3 = arith.constant 0 : index
    %c0_4 = arith.constant 0 : index
    %3 = vector.load %arg3[%c0_3, %c0_4] : memref<32x384xf32, #tpu.memory_space<vmem>>, vector<32x384xf32>
    %cst_5 = arith.constant dense<0.000000e+00> : vector<8x384xf32>
    %4 = tpu.matmul %2, %3, %cst_5 {dimension_numbers = #tpu.dot_dimension_numbers<[1], [0], [0], [1], [0, 0, 1, 1], [], []>, precision = #tpu.contract_precision<fp32>} : vector<8x32xf32>, vector<32x384xf32>, vector<8x384xf32> -> vector<8x384xf32>
    %c0_6 = arith.constant 0 : index
    %c0_7 = arith.constant 0 : index
    %5 = vector.load %arg4[%c0_6, %c0_7] : memref<1x384xf32, #tpu.memory_space<vmem>>, vector<1x384xf32>
    %6 = vector.broadcast %5 : vector<1x384xf32> to vector<8x384xf32>
    %7 = arith.addf %4, %6 : vector<8x384xf32>
    %8 = vector.extract_strided_slice %7 {offsets = [0, 0], sizes = [8, 128], strides = [1, 1]} : vector<8x384xf32> to vector<8x128xf32>
    %9 = vector.extract_strided_slice %7 {offsets = [0, 128], sizes = [8, 128], strides = [1, 1]} : vector<8x384xf32> to vector<8x128xf32>
    %10 = vector.extract_strided_slice %7 {offsets = [0, 256], sizes = [8, 128], strides = [1, 1]} : vector<8x384xf32> to vector<8x128xf32>
    %c0_8 = arith.constant 0 : index
    %c0_9 = arith.constant 0 : index
    %11 = vector.load %arg5[%c0_8, %c0_9] : memref<32x256xf32, #tpu.memory_space<vmem>>, vector<32x256xf32>
    %cst_10 = arith.constant dense<0.000000e+00> : vector<8x256xf32>
    %12 = tpu.matmul %2, %11, %cst_10 {dimension_numbers = #tpu.dot_dimension_numbers<[1], [0], [0], [1], [0, 0, 1, 1], [], []>, precision = #tpu.contract_precision<fp32>} : vector<8x32xf32>, vector<32x256xf32>, vector<8x256xf32> -> vector<8x256xf32>
    %c0_11 = arith.constant 0 : index
    %c0_12 = arith.constant 0 : index
    %13 = vector.load %arg6[%c0_11, %c0_12] : memref<1x256xf32, #tpu.memory_space<vmem>>, vector<1x256xf32>
    %14 = vector.broadcast %13 : vector<1x256xf32> to vector<8x256xf32>
    %15 = arith.addf %12, %14 : vector<8x256xf32>
    %16 = arith.mulf %8, %8 : vector<8x128xf32>
    %cst_13 = arith.constant dense<0.000000e+00> : vector<8xf32>
    %17 = vector.multi_reduction <add>, %16, %cst_13 [1] : vector<8x128xf32> to vector<8xf32>
    %18 = vector.shape_cast %17 : vector<8xf32> to vector<8x1xf32>
    %cst_14 = arith.constant 5.000000e-01 : f32
    %19 = vector.broadcast %cst_14 : f32 to vector<8x1xf32>
    %20 = arith.mulf %19, %18 : vector<8x1xf32>
    %21 = arith.mulf %9, %9 : vector<8x128xf32>
    %cst_15 = arith.constant dense<0.000000e+00> : vector<8xf32>
    %22 = vector.multi_reduction <add>, %21, %cst_15 [1] : vector<8x128xf32> to vector<8xf32>
    %23 = vector.shape_cast %22 : vector<8xf32> to vector<8x1xf32>
    %cst_16 = arith.constant 5.000000e-01 : f32
    %24 = vector.broadcast %cst_16 : f32 to vector<8x1xf32>
    %25 = arith.mulf %24, %23 : vector<8x1xf32>
    %26 = vector.extract_strided_slice %15 {offsets = [0, 0], sizes = [8, 128], strides = [1, 1]} : vector<8x256xf32> to vector<8x128xf32>
    %27 = vector.broadcast %20 : vector<8x1xf32> to vector<8x128xf32>
    %28 = arith.subf %26, %27 : vector<8x128xf32>
    %29 = math.exp %28 : vector<8x128xf32>
    %cst_17 = arith.constant 2.500000e-01 : f32
    %30 = vector.broadcast %cst_17 : f32 to vector<8x128xf32>
    %31 = arith.mulf %29, %30 : vector<8x128xf32>
    %32 = vector.extract_strided_slice %15 {offsets = [0, 128], sizes = [8, 128], strides = [1, 1]} : vector<8x256xf32> to vector<8x128xf32>
    %33 = vector.broadcast %25 : vector<8x1xf32> to vector<8x128xf32>
    %34 = arith.subf %32, %33 : vector<8x128xf32>
    %35 = math.exp %34 : vector<8x128xf32>
    %cst_18 = arith.constant 2.500000e-01 : f32
    %36 = vector.broadcast %cst_18 : f32 to vector<8x128xf32>
    %37 = arith.mulf %35, %36 : vector<8x128xf32>
    %cst_19 = arith.constant dense<0.000000e+00> : vector<128xf32>
    %38 = vector.multi_reduction <add>, %31, %cst_19 [0] : vector<8x128xf32> to vector<128xf32>
    %39 = vector.shape_cast %38 : vector<128xf32> to vector<1x128xf32>
    %40 = vector.broadcast %39 : vector<1x128xf32> to vector<8x128xf32>
    %41 = arith.mulf %37, %40 : vector<8x128xf32>
    %cst_20 = arith.constant dense<0.000000e+00> : vector<8xf32>
    %42 = vector.multi_reduction <add>, %41, %cst_20 [1] : vector<8x128xf32> to vector<8xf32>
    %43 = vector.shape_cast %42 : vector<8xf32> to vector<8x1xf32>
    %cst_21 = arith.constant dense<0.000000e+00> : vector<128x128xf32>
    %44 = tpu.matmul %10, %31, %cst_21 {dimension_numbers = #tpu.dot_dimension_numbers<[0], [0], [1], [1], [0, 1, 1, 1], [], []>, precision = #tpu.contract_precision<fp32>} : vector<8x128xf32>, vector<8x128xf32>, vector<128x128xf32> -> vector<128x128xf32>
    %cst_22 = arith.constant dense<0.000000e+00> : vector<8x128xf32>
    %45 = tpu.matmul %37, %44, %cst_22 {dimension_numbers = #tpu.dot_dimension_numbers<[1], [1], [0], [0], [0, 0, 1, 0], [], []>, precision = #tpu.contract_precision<fp32>} : vector<8x128xf32>, vector<128x128xf32>, vector<8x128xf32> -> vector<8x128xf32>
    %cst_23 = arith.constant 9.99999993E-9 : f32
    %46 = vector.broadcast %cst_23 : f32 to vector<8x1xf32>
    %47 = arith.addf %43, %46 : vector<8x1xf32>
    %48 = tpu.reciprocal %47 {approx = true} : vector<8x1xf32> -> vector<8x1xf32>
    %49 = arith.mulf %47, %48 : vector<8x1xf32>
    %cst_24 = arith.constant 2.000000e+00 : f32
    %50 = vector.broadcast %cst_24 : f32 to vector<8x1xf32>
    %51 = arith.subf %50, %49 : vector<8x1xf32>
    %52 = arith.mulf %48, %51 : vector<8x1xf32>
    %53 = vector.broadcast %52 : vector<8x1xf32> to vector<8x128xf32>
    %54 = arith.mulf %45, %53 : vector<8x128xf32>
    %c0_25 = arith.constant 0 : index
    %c0_26 = arith.constant 0 : index
    %55 = vector.load %arg7[%c0_25, %c0_26] : memref<128x32xf32, #tpu.memory_space<vmem>>, vector<128x32xf32>
    %cst_27 = arith.constant dense<0.000000e+00> : vector<8x32xf32>
    %56 = tpu.matmul %54, %55, %cst_27 {dimension_numbers = #tpu.dot_dimension_numbers<[1], [0], [0], [1], [0, 0, 1, 1], [], []>, precision = #tpu.contract_precision<fp32>} : vector<8x128xf32>, vector<128x32xf32>, vector<8x32xf32> -> vector<8x32xf32>
    %c0_28 = arith.constant 0 : index
    %c0_29 = arith.constant 0 : index
    %57 = vector.load %arg8[%c0_28, %c0_29] : memref<32x128xf32, #tpu.memory_space<vmem>>, vector<32x128xf32>
    %cst_30 = arith.constant dense<0.000000e+00> : vector<8x128xf32>
    %58 = tpu.matmul %56, %57, %cst_30 {dimension_numbers = #tpu.dot_dimension_numbers<[1], [0], [0], [1], [0, 0, 1, 1], [], []>, precision = #tpu.contract_precision<fp32>} : vector<8x32xf32>, vector<32x128xf32>, vector<8x128xf32> -> vector<8x128xf32>
    %c0_31 = arith.constant 0 : index
    %c0_32 = arith.constant 0 : index
    %59 = vector.load %arg9[%c0_31, %c0_32] : memref<1x128xf32, #tpu.memory_space<vmem>>, vector<1x128xf32>
    %60 = vector.broadcast %59 : vector<1x128xf32> to vector<8x128xf32>
    %61 = arith.addf %58, %60 : vector<8x128xf32>
    %c0_33 = arith.constant 0 : index
    %c0_34 = arith.constant 0 : index
    %62 = vector.load %arg10[%c0_33, %c0_34] : memref<8x128xf32, #tpu.memory_space<vmem>>, vector<8x128xf32>
    tpu.vector_store %arg10[%c0_33, %c0_34], %61 {strides = array<i32>} : memref<8x128xf32, #tpu.memory_space<vmem>>, vector<8x128xf32>,
    return
  }
  func.func @transform_0(%arg0: i32) -> (i32, i32) {
    %c0_i32 = arith.constant 0 : i32
    %c0_i32_0 = arith.constant 0 : i32
    return %arg0, %c0_i32 : i32, i32
  }
  func.func @transform_1(%arg0: i32) -> (i32, i32) {
    %c0_i32 = arith.constant 0 : i32
    %c0_i32_0 = arith.constant 0 : i32
    %c0_i32_1 = arith.constant 0 : i32
    return %c0_i32, %c0_i32_0 : i32, i32
  }
  func.func @transform_2(%arg0: i32) -> (i32, i32) {
    %c0_i32 = arith.constant 0 : i32
    %c0_i32_0 = arith.constant 0 : i32
    %c0_i32_1 = arith.constant 0 : i32
    return %c0_i32, %c0_i32_0 : i32, i32
  }
  func.func @transform_3(%arg0: i32) -> (i32, i32) {
    %c0_i32 = arith.constant 0 : i32
    %c0_i32_0 = arith.constant 0 : i32
    %c0_i32_1 = arith.constant 0 : i32
    return %c0_i32, %c0_i32_0 : i32, i32
  }
  func.func @transform_4(%arg0: i32) -> (i32, i32) {
    %c0_i32 = arith.constant 0 : i32
    %c0_i32_0 = arith.constant 0 : i32
    %c0_i32_1 = arith.constant 0 : i32
    return %c0_i32, %c0_i32_0 : i32, i32
  }
  func.func @transform_5(%arg0: i32) -> (i32, i32) {
    %c0_i32 = arith.constant 0 : i32
    %c0_i32_0 = arith.constant 0 : i32
    %c0_i32_1 = arith.constant 0 : i32
    return %c0_i32, %c0_i32_0 : i32, i32
  }
  func.func @transform_6(%arg0: i32) -> (i32, i32) {
    %c0_i32 = arith.constant 0 : i32
    %c0_i32_0 = arith.constant 0 : i32
    %c0_i32_1 = arith.constant 0 : i32
    return %c0_i32, %c0_i32_0 : i32, i32
  }
  func.func @transform_7(%arg0: i32) -> (i32, i32) {
    %c0_i32 = arith.constant 0 : i32
    %c0_i32_0 = arith.constant 0 : i32
    %c0_i32_1 = arith.constant 0 : i32
    return %c0_i32, %c0_i32_0 : i32, i32
  }
  func.func @transform_8(%arg0: i32) -> (i32, i32) {
    %c0_i32 = arith.constant 0 : i32
    %c0_i32_0 = arith.constant 0 : i32
    %c0_i32_1 = arith.constant 0 : i32
    return %c0_i32, %c0_i32_0 : i32, i32
  }
  func.func @transform_9(%arg0: i32) -> (i32, i32) {
    %c0_i32 = arith.constant 0 : i32
    %c0_i32_0 = arith.constant 0 : i32
    return %arg0, %c0_i32 : i32, i32
  }
}

</mosaic_0001>

<bundles_post_ra>
// kernel: tpu_custom_call.1
= control target key start
LH: loop header
LB: loop body
LE: loop exit
PB: predicated region body
PF: predicated region fallthrough
CT: control target
= control target key end

     0   :  { %s9726_s0 = inlined_call_operand.hbm [shape: f32[16,32], index: 0, kind: input, shape index: {}]   ;;  %s9727_s1 = inlined_call_operand.hbm [shape: f32[32,32], index: 1, kind: input, shape index: {}]   ;;  %s9728_s2 = inlined_call_operand.hbm [shape: f32[32,384], index: 2, kind: input, shape index: {}]   ;;  %s9729_s3 = inlined_call_operand.hbm [shape: f32[1,384], index: 3, kind: input, shape index: {}]   ;;  %s9730_s4 = inlined_call_operand.hbm [shape: f32[32,256], index: 4, kind: input, shape index: {}]   ;;  %s9731_s5 = inlined_call_operand.hbm [shape: f32[1,256], index: 5, kind: input, shape index: {}]   ;;  %s9732_s6 = inlined_call_operand.hbm [shape: f32[128,32], index: 6, kind: input, shape index: {}]   ;;  %s9733_s7 = inlined_call_operand.hbm [shape: f32[32,128], index: 7, kind: input, shape index: {}]   ;;  %s9734_s8 = inlined_call_operand.hbm [shape: f32[1,128], index: 8, kind: input, shape index: {}]   ;;  %s9735_s9 = inlined_call_operand.hbm [shape: f32[16,128], index: 9, kind: output, shape index: {}]  }
   0x1   :  { %9751 = sst [smem:[#allocation24_spill]] %s9727_s1 }
   0x2   :  { %9752 = sst [smem:[#allocation25_spill]] %s9735_s9 }
   0x3   :  { %14 = vsyncpa [#allocation3], 0 }
   0x4   :  { %16 = vsyncpa [#allocation3 + $0x1], 0 }
   0x5   :  { %17 = vsyncpa [#allocation6], 0 }
   0x6   :  { %18 = vsyncpa [#allocation9], 0 }
   0x7   :  { %19 = vsyncpa [#allocation12], 0 }
   0x8   :  { %20 = vsyncpa [#allocation15], 0 }
   0x9   :  { %21 = vsyncpa [#allocation4], 0 }
   0xa   :  { %23 = vsyncpa [#allocation4 + $0x1], 0  ;;  %s8132_s30 = smov 0   ;;  %s8134_s10 = smov 0  }
   0xb   :  { %s8136_s11 = smov 0   ;;  %s8138_s12 = smov 0  }
   0xc LB: > { %s8063_s13 = smov [#allocation5]   ;;  %s8153_s15 = sadd.s32 4294967295, %s8061_s12   ;;  %s8061_s12 = sphi %s8138_s12, %s9791_s12   ;;  %s8057_s11 = sphi %s8136_s11, %s9790_s11   ;;  %s8053_s10 = sphi %s8134_s10, %s9789_s10   ;;  %s8049_s30 = sphi %s8132_s30, %s9788_s30  }
   0xd   : > { %s266_s14 = sshll.u32 %s8063_s13, 4  ;;  %p5737_p0 = scmp.ge.s32.totalorder %s8061_s12, 1  ;;  %s8158_s14 = int_to_ptr.vmem [resolvable:$true] %s266_s14 }
   0xe   : > { %p9739_p1 = scmp.eq.s32.totalorder %s8153_s15, 0  ;;  %p254_p2 = scmp.lt.s32.totalorder %s8061_s12, 3 }
   0xf   : > { %s8064_s17 = smov [#allocation8]   ;;  %s8065_s20 = smov [#allocation11]  }
  0x10   : > { %p8160_p3 = pnand %p5737_p0, %p254_p2  ;;  %s293_s18 = sshll.u32 %s8064_s17, 4  ;;  %s8173_s18 = int_to_ptr.vmem [resolvable:$true] %s293_s18 }
  0x11   : > { %s317_s21 = sshll.u32 %s8065_s20, 4  ;;  %s9755_s1 = sld [smem:[#allocation24_spill]]  ;;  %s8175_s21 = int_to_ptr.vmem [resolvable:$true] %s317_s21 }
  0x12   : > { %s9753_s16 = scalar_select %p8160_p3, 1, 0 }
  0x13   : > { %p7619_p5 = pneg %p8160_p3 }
  0x15   : > { %p8169_p6 = pnand %p7619_p5, %p9739_p1 }
  0x17   : > { %s7725_s24 = scalar_lea.hbm %s9755_s1, 512  ;;  %p8185_p8 = pneg %p8169_p6 }
  0x18   : > { %p7726_p7 = scmp.ne.s32.totalorder %s9755_s1, %s7725_s24  ;;  %p7732_p11 = scmp.lt.u32.totalorder %s7725_s24, %s9755_s1 }
  0x1a   : > { %p7728_p9 = pnand %p8185_p8, %p7726_p7 }
  0x1c   : > { %p7729_p10 = pneg %p7728_p9 }
  0x1e   : > { %p7734_p12 = pnand %p7732_p11, %p7729_p10 }
  0x20   : > { %7737 = shalt.err (!%p7734_p12)
}
  0x21   : > { %s7738_s13 = scalar_lea.vmem %s8158_s14, 512  ;;  %p7746_p5 = scmp.lt.s32.totalorder %s8158_s14, %s8158_s14 }
  0x22   : > { %p7739_p13 = scmp.ne.s32.totalorder %s8158_s14, %s7738_s13  ;;  %p7747_p4 = scmp.lt.s32.totalorder %s7738_s13, %s7738_s13 }
  0x24   : > { %p7741_p0 = pnand %p7739_p13, %p8185_p8  ;;  %p7748_p7 = por %p7747_p4, %p7746_p5 }
  0x26   : > { %p7742_p2 = pneg %p7741_p0 }
  0x28   : > { %p7749_p9 = pnand %p7748_p7, %p7742_p2 }
  0x2a   : > { %7752 = shalt.err (!%p7749_p9)
}
  0x2b   : > { %s9737_s17 = smov 128   ;;  %s9741_s20 = smov 8  }
  0x2c   : > { %7622 = dma.hbm_to_vmem [thread:$0]  (!%p8169_p6), %s9755_s1, 512, %s8158_s14, [#allocation6], %s9737_s17, %s9737_s17, %s9741_s20  }
  0x2d   : > { %s7753_s26 = scalar_lea.hbm %s9729_s3, 48 }
  0x2e   : > { %p7754_p4 = scmp.ne.s32.totalorder %s9729_s3, %s7753_s26  ;;  %p7760_p12 = scmp.lt.u32.totalorder %s7753_s26, %s9729_s3 }
  0x30   : > { %p7756_p10 = pnand %p7754_p4, %p8185_p8 }
  0x32   : > { %p7757_p11 = pneg %p7756_p10 }
  0x34   : > { %p7762_p13 = pnand %p7760_p12, %p7757_p11 }
  0x36   : > { %7765 = shalt.err (!%p7762_p13)
}
  0x37   : > { %s7766_s14 = scalar_lea.vmem %s8173_s18, 48  ;;  %s7773_s22 = scalar_lea.vmem %s8173_s18, 64 }
  0x38   : > { %p7767_p0 = scmp.ne.s32.totalorder %s8173_s18, %s7766_s14  ;;  %p7774_p7 = scmp.lt.s32.totalorder %s8173_s18, %s8173_s18 }
  0x39   : > { %p7775_p9 = scmp.lt.s32.totalorder %s7773_s22, %s7766_s14 }
  0x3a   : > { %p7769_p2 = pnand %p7767_p0, %p8185_p8 }
  0x3b   : > { %p7776_p4 = por %p7775_p9, %p7774_p7 }
  0x3c   : > { %p7770_p5 = pneg %p7769_p2 }
  0x3e   : > { %p7777_p10 = pnand %p7776_p4, %p7770_p5 }
  0x40   : > { %7780 = shalt.err (!%p7777_p10)
}
  0x41   : > { %7628 = dma.hbm_to_vmem [thread:$0]  (!%p8169_p6), %s9729_s3, 48, %s8173_s18, [#allocation9]  }
  0x42   : > { %s7781_s26 = scalar_lea.hbm %s9731_s5, 32 }
  0x43   : > { %p7782_p11 = scmp.ne.s32.totalorder %s9731_s5, %s7781_s26  ;;  %p7788_p0 = scmp.lt.u32.totalorder %s7781_s26, %s9731_s5 }
  0x45   : > { %p7784_p12 = pnand %p7782_p11, %p8185_p8 }
  0x47   : > { %p7785_p13 = pneg %p7784_p12 }
  0x49   : > { %p7790_p2 = pnand %p7788_p0, %p7785_p13 }
  0x4b   : > { %7793 = shalt.err (!%p7790_p2)
}
  0x4c   : > { %s7794_s18 = scalar_lea.vmem %s8175_s21, 32  ;;  %p7802_p4 = scmp.lt.s32.totalorder %s8175_s21, %s8175_s21 }
  0x4d   : > { %p7795_p5 = scmp.ne.s32.totalorder %s8175_s21, %s7794_s18  ;;  %p7803_p10 = scmp.lt.s32.totalorder %s7794_s18, %s7794_s18 }
  0x4f   : > { %p7797_p7 = pnand %p7795_p5, %p8185_p8  ;;  %p7804_p11 = por %p7803_p10, %p7802_p4 }
  0x51   : > { %p7798_p9 = pneg %p7797_p7 }
  0x53   : > { %p7805_p12 = pnand %p7804_p11, %p7798_p9 }
  0x55   : > { %7808 = shalt.err (!%p7805_p12)
}
  0x56   : > { %7634 = dma.hbm_to_vmem [thread:$0]  (!%p8169_p6), %s9731_s5, 32, %s8175_s21, [#allocation12]  }
  0x57   : > { %s8068_s23 = smov [#allocation14]   ;;  %s8069_s25 = smov [#allocation7]  }
  0x58   : > { %s340_s24 = sshll.u32 %s8068_s23, 4  ;;  %s279_s26 = sshll.u32 %s8069_s25, 4  ;;  %s341_s24 = int_to_ptr.vmem [resolvable:$true] %s340_s24  ;;  %s280_s26 = int_to_ptr.vmem [resolvable:$true] %s279_s26 }
  0x59   : > { %s7809_s13 = scalar_lea.hbm %s9733_s7, 512 }
  0x5a   : > { %p7810_p13 = scmp.ne.s32.totalorder %s9733_s7, %s7809_s13  ;;  %p7816_p5 = scmp.lt.u32.totalorder %s7809_s13, %s9733_s7 }
  0x5c   : > { %p7812_p0 = pnand %p7810_p13, %p8185_p8 }
  0x5e   : > { %p7813_p2 = pneg %p7812_p0 }
  0x60   : > { %p7818_p7 = pnand %p7816_p5, %p7813_p2 }
  0x62   : > { %7821 = shalt.err (!%p7818_p7)
}
  0x63   : > { %s7822_s21 = scalar_lea.vmem %s341_s24, 512  ;;  %p7830_p11 = scmp.lt.s32.totalorder %s341_s24, %s341_s24 }
  0x64   : > { %p7823_p9 = scmp.ne.s32.totalorder %s341_s24, %s7822_s21  ;;  %p7831_p12 = scmp.lt.s32.totalorder %s7822_s21, %s7822_s21 }
  0x66   : > { %p7825_p4 = pnand %p7823_p9, %p8185_p8  ;;  %p7832_p1 = por %p7831_p12, %p7830_p11 }
  0x68   : > { %p7826_p10 = pneg %p7825_p4 }
  0x6a   : > { %p7833_p3 = pnand %p7832_p1, %p7826_p10 }
  0x6c   : > { %7836 = shalt.err (!%p7833_p3)
}
  0x6d   : > { %s9757_s9 = smov 128   ;;  %s7837_s29 = scalar_lea.hbm %s9728_s2, 1536 }
  0x6e   : > { %7640 = dma.hbm_to_vmem [thread:$0]  (!%p8169_p6), %s9733_s7, 512, %s341_s24, [#allocation15], %s9757_s9, %s9757_s9, %s9741_s20  }
  0x6f   : > { %p7838_p1 = scmp.ne.s32.totalorder %s9728_s2, %s7837_s29  ;;  %p7844_p0 = scmp.lt.u32.totalorder %s7837_s29, %s9728_s2 }
  0x71   : > { %p7840_p3 = pnand %p7838_p1, %p8185_p8 }
  0x73   : > { %p7841_p13 = pneg %p7840_p3 }
  0x75   : > { %p7846_p2 = pnand %p7844_p0, %p7841_p13 }
  0x77   : > { %7849 = shalt.err (!%p7846_p2)
}
  0x78   : > { %s7850_s21 = scalar_lea.vmem %s280_s26, 1536  ;;  %p7858_p4 = scmp.lt.s32.totalorder %s280_s26, %s280_s26 }
  0x79   : > { %p7851_p5 = scmp.ne.s32.totalorder %s280_s26, %s7850_s21  ;;  %p7859_p10 = scmp.lt.s32.totalorder %s7850_s21, %s7850_s21 }
  0x7b   : > { %p7853_p7 = pnand %p7851_p5, %p8185_p8  ;;  %p7860_p11 = por %p7859_p10, %p7858_p4 }
  0x7d   : > { %p7854_p9 = pneg %p7853_p7 }
  0x7f   : > { %p7861_p12 = pnand %p7860_p11, %p7854_p9 }
  0x81   : > { %7864 = shalt.err (!%p7861_p12)
}
  0x82   : > { %s8070_s24 = smov 384   ;;  %s8071_s17 = smov 24  }
  0x83   : > { %7625 = dma.hbm_to_vmem [thread:$0]  (!%p8169_p6), %s9728_s2, 1536, %s280_s26, [#allocation6], %s8070_s24, %s8070_s24, %s8071_s17  }
  0x84   : > { %s8072_s28 = smov [#allocation10]   ;;  %s7865_s18 = scalar_lea.hbm %s9730_s4, 1024 }
  0x85   : > { %s303_s29 = sshll.u32 %s8072_s28, 4  ;;  %p7866_p1 = scmp.ne.s32.totalorder %s9730_s4, %s7865_s18  ;;  %s304_s29 = int_to_ptr.vmem [resolvable:$true] %s303_s29 }
  0x86   : > { %p7872_p0 = scmp.lt.u32.totalorder %s7865_s18, %s9730_s4 }
  0x87   : > { %p7868_p3 = pnand %p7866_p1, %p8185_p8 }
  0x89   : > { %p7869_p13 = pneg %p7868_p3 }
  0x8b   : > { %p7874_p2 = pnand %p7872_p0, %p7869_p13 }
  0x8d   : > { %7877 = shalt.err (!%p7874_p2)
}
  0x8e   : > { %s7878_s26 = scalar_lea.vmem %s304_s29, 1024  ;;  %p7886_p4 = scmp.lt.s32.totalorder %s304_s29, %s304_s29 }
  0x8f   : > { %p7879_p5 = scmp.ne.s32.totalorder %s304_s29, %s7878_s26  ;;  %p7887_p10 = scmp.lt.s32.totalorder %s7878_s26, %s7878_s26 }
  0x91   : > { %p7881_p7 = pnand %p7879_p5, %p8185_p8  ;;  %p7888_p11 = por %p7887_p10, %p7886_p4 }
  0x93   : > { %p7882_p9 = pneg %p7881_p7 }
  0x95   : > { %p7889_p12 = pnand %p7888_p11, %p7882_p9 }
  0x97   : > { %7892 = shalt.err (!%p7889_p12)
}
  0x98   : > { %s8073_s24 = smov 256   ;;  %s8074_s17 = smov 16  }
  0x99   : > { %7631 = dma.hbm_to_vmem [thread:$0]  (!%p8169_p6), %s9730_s4, 1024, %s304_s29, [#allocation9], %s8073_s24, %s8073_s24, %s8074_s17  }
  0x9a   : > { %s8075_s23 = smov [#allocation13]   ;;  %s8076_s28 = smov [#allocation16]  }
  0x9b   : > { %s327_s25 = sshll.u32 %s8075_s23, 4  ;;  %s354_s13 = sshll.u32 %s8076_s28, 4  ;;  %s328_s25 = int_to_ptr.vmem [resolvable:$true] %s327_s25  ;;  %s8313_s13 = int_to_ptr.vmem [resolvable:$true] %s354_s13 }
  0x9c   : > { %s7893_s22 = scalar_lea.hbm %s9732_s6, 2048 }
  0x9d   : > { %p7894_p1 = scmp.ne.s32.totalorder %s9732_s6, %s7893_s22  ;;  %p7900_p0 = scmp.lt.u32.totalorder %s7893_s22, %s9732_s6 }
  0x9f   : > { %p7896_p3 = pnand %p7894_p1, %p8185_p8 }
  0xa1   : > { %p7897_p13 = pneg %p7896_p3 }
  0xa3   : > { %p7902_p2 = pnand %p7900_p0, %p7897_p13 }
  0xa5   : > { %7905 = shalt.err (!%p7902_p2)
}
  0xa6   : > { %s7906_s24 = scalar_lea.vmem %s328_s25, 2048  ;;  %p7914_p4 = scmp.lt.s32.totalorder %s328_s25, %s328_s25 }
  0xa7   : > { %p7907_p5 = scmp.ne.s32.totalorder %s328_s25, %s7906_s24  ;;  %p7915_p10 = scmp.lt.s32.totalorder %s7906_s24, %s7906_s24 }
  0xa9   : > { %p7909_p7 = pnand %p7907_p5, %p8185_p8  ;;  %p7916_p11 = por %p7915_p10, %p7914_p4 }
  0xab   : > { %p7910_p9 = pneg %p7909_p7 }
  0xad   : > { %p7917_p12 = pnand %p7916_p11, %p7910_p9 }
  0xaf   : > { %7920 = shalt.err (!%p7917_p12)
}
  0xb0   : > { %s9758_s17 = smov 8   ;;  %s7921_s18 = scalar_lea.hbm %s9734_s8, 16 }
  0xb1   : > { %7637 = dma.hbm_to_vmem [thread:$0]  (!%p8169_p6), %s9732_s6, 2048, %s328_s25, [#allocation12], %s9757_s9, %s9757_s9, %s9758_s17  }
  0xb2   : > { %p7922_p1 = scmp.ne.s32.totalorder %s9734_s8, %s7921_s18  ;;  %p7928_p0 = scmp.lt.u32.totalorder %s7921_s18, %s9734_s8 }
  0xb4   : > { %p7924_p3 = pnand %p7922_p1, %p8185_p8 }
  0xb6   : > { %p7925_p13 = pneg %p7924_p3 }
  0xb8   : > { %p7930_p2 = pnand %p7928_p0, %p7925_p13 }
  0xba   : > { %7933 = shalt.err (!%p7930_p2)
}
  0xbb   : > { %s7934_s9 = scalar_lea.vmem %s8313_s13, 16  ;;  %s7941_s25 = scalar_lea.vmem %s8313_s13, 32 }
  0xbc   : > { %p7935_p5 = scmp.ne.s32.totalorder %s8313_s13, %s7934_s9  ;;  %p7942_p4 = scmp.lt.s32.totalorder %s8313_s13, %s8313_s13 }
  0xbd   : > { %p7943_p10 = scmp.lt.s32.totalorder %s7941_s25, %s7934_s9 }
  0xbe   : > { %p7937_p7 = pnand %p7935_p5, %p8185_p8 }
  0xbf   : > { %p7944_p11 = por %p7943_p10, %p7942_p4 }
  0xc0   : > { %p7938_p9 = pneg %p7937_p7 }
  0xc2   : > { %p7945_p12 = pnand %p7944_p11, %p7938_p9 }
  0xc4   : > { %7948 = shalt.err (!%p7945_p12)
}
  0xc5   : > { %7643 = dma.hbm_to_vmem [thread:$0]  (!%p8169_p6), %s9734_s8, 16, %s8313_s13, [#allocation15]  }
  0xc6   : > { %s5736_s19 = sadd.s32 4294967294, %s8061_s12   ;;  %s8362_s27 = sadd.s32 1, %s8061_s12  }
  0xc7   : > { %s33_s17 = ssub.s32 %s8061_s12, %s8362_s27  ;;  %s36_s20 = sadd.s32 1, %s8057_s11 }
  0xc8   : > { %p34_p8 = scmp.eq.s32.totalorder %s33_s17, 0  ;;  %p43_p1 = scmp.ne.s32.totalorder %s8057_s11, %s8053_s10 }
  0xc9   : > { %p44_p3 = scmp.eq.s32.totalorder %s8061_s12, 0  ;;  %p49_p13 = scmp.ne.s32.totalorder %s8053_s10, %s8049_s30 }
  0xca   : > { %s8373_s23 = scalar_select %p34_p8, %s8057_s11, %s36_s20  }
  0xcb   : > { %p8375_p0 = por %p44_p3, %p43_p1  ;;  %p9760_p2 = scmp.eq.s32.totalorder %s8153_s15, 0 }
  0xcc   : > { %p241_p5 = scmp.eq.s32.totalorder %s8153_s15, 1  ;;  %p247_p7 = scmp.eq.s32.totalorder %s5736_s19, 1 }
  0xcd   : > { %p8381_p6 = por %p9760_p2, %p49_p13  ;;  %p7660_p9 = scmp.lt.s32.totalorder %s8061_s12, 2 }
  0xce   : > { %s365_s14 = sand.u32 1, %s8057_s11   ;;  %p8388_p4 = por %p241_p5, %p43_p1 }
  0xcf   : > { %p8392_p10 = por %p247_p7, %p49_p13  ;;  %s5747_s21 = sshll.u32 %s365_s14, 3 }
  0xd0   : > { %s9762_s18 = scalar_select %p8388_p4, 1, 0 }
  0xd1   : > { %s9763_s22 = scalar_select %p8392_p10, 1, 0 }
  0xd2   : > { %s5748_s26 = sshll.u32 %s8061_s12, 7  ;;  %s369_s29 = scalar_lea.vmem [#allocation2], %s5747_s21 }
  0xd3   : > { %s8400_s25 = scalar_lea.hbm %s9726_s0, %s5748_s26  ;;  %s376_s24 = sshll.u32 %s369_s29, 4  ;;  %s8402_s24 = int_to_ptr.vmem [resolvable:$true] %s376_s24 }
  0xd4   : > { %p8406_p11 = pnand %p7660_p9, %p8375_p0  ;;  %s366_s17 = scalar_lea.sflag [#allocation3], %s365_s14 }
  0xd5   : > { %s7949_s20 = scalar_lea.hbm %s8400_s25, 128  ;;  %s7954_s1 = scalar_lea.hbm %s9726_s0, 256 }
  0xd6   : > { %p7950_p12 = scmp.ne.s32.totalorder %s8400_s25, %s7949_s20  ;;  %p7951_p8 = pneg %p8406_p11 }
  0xd7   : > { %p7955_p13 = scmp.lt.u32.totalorder %s8400_s25, %s9726_s0  ;;  %p7956_p0 = scmp.lt.u32.totalorder %s7954_s1, %s7949_s20 }
  0xd8   : > { %p7952_p1 = pnand %p7951_p8, %p7950_p12  ;;  %p7958_p5 = scmp.lt.u32.totalorder %s7949_s20, %s8400_s25 }
  0xd9   : > { %p7957_p2 = por %p7956_p0, %p7955_p13 }
  0xda   : > { %p7953_p3 = pneg %p7952_p1 }
  0xdb   : > { %p7959_p7 = por %p7958_p5, %p7957_p2 }
  0xdd   : > { %p7960_p9 = pnand %p7959_p7, %p7953_p3 }
  0xdf   : > { %7963 = shalt.err (!%p7960_p9)
}
  0xe0   : > { %s7964_s14 = scalar_lea.vmem %s8402_s24, 128  ;;  %s8077_s29 = smov [#allocation2]  }
  0xe1   : > { %p7965_p12 = scmp.ne.s32.totalorder %s8402_s24, %s7964_s14  ;;  %s7969_s21 = sshll.u32 %s8077_s29, 4  ;;  %s7970_s21 = int_to_ptr.vmem [resolvable:$false] %s7969_s21 }
  0xe2   : > { %s7971_s26 = scalar_lea.vmem %s7970_s21, 256  ;;  %p7972_p4 = scmp.lt.s32.totalorder %s8402_s24, %s7970_s21 }
  0xe3   : > { %p7967_p1 = pnand %p7965_p12, %p7951_p8  ;;  %p7973_p13 = scmp.lt.s32.totalorder %s7971_s26, %s7964_s14 }
  0xe5   : > { %p7968_p10 = pneg %p7967_p1  ;;  %p7974_p0 = por %p7973_p13, %p7972_p4 }
  0xe7   : > { %p7975_p2 = pnand %p7974_p0, %p7968_p10 }
  0xe9   : > { %7978 = shalt.err (!%p7975_p2)
}
  0xea   : > { %7647 = dma.hbm_to_vmem [thread:$0]  (!%p8406_p11), %s8400_s25, 128, %s8402_s24, %s366_s17  }
  0xeb   : > { %p9765_p3 = scmp.ne.s32.totalorder %s9753_s16, 0 }
  0xec   : > { %s8438_s20 = sand.u32 (!%p9765_p3), 1, %s8053_s10  }
  0xed   : > { %385 = sbr.rel (%p9765_p3) target bundleno = 2589 (0xa1d), region = 56  ;;  %s5750_s1 = sshll.u32 (!%p9765_p3), %s8438_s20, 3 }
  0xee   : > { %s388_s28 = scalar_lea.sflag (!%p9765_p3), [#allocation3], %s8438_s20  ;;  %s391_s9 = scalar_lea.vmem (!%p9765_p3), [#allocation2], %s5750_s1 }
  0xf4   : > { %8024 = dma.done.wait (%p8381_p6), %s388_s28, 128  }
  0xf5   : > { %8026 = vsyncadd (%p8381_p6), %s388_s28, 4294967168  ;;  %p9766_p4 = scmp.eq.s32.totalorder %s8153_s15, 0 }
  0xf7   : > { %8028 = dma.done.wait (%p9766_p4), [#allocation6], 2048   ;;  %p9767_p10 = pmov %p9766_p4 }
  0xf8   : > { %p9768_p11 = pmov %p9766_p4 }
  0xf9   : > { %8030 = vsyncadd (%p9767_p10), [#allocation6], 4294965248 }
  0xfa   : > { %8032 = dma.done.wait (%p9768_p11), [#allocation9], 1072   ;;  %p9769_p8 = pmov %p9766_p4 }
  0xfb   : > { %p9770_p5 = pmov %p9766_p4 }
  0xfc   : > { %8034 = vsyncadd (%p9769_p8), [#allocation9], 4294966224 }
  0xfd   : > { %8036 = dma.done.wait (%p9770_p5), [#allocation12], 2080   ;;  %p9771_p7 = pmov %p9766_p4 }
  0xfe   : > { %p9772_p6 = pmov %p9766_p4 }
  0xff   : > { %8038 = vsyncadd (%p9771_p7), [#allocation12], 4294965216 }
 0x100   : > { %8040 = dma.done.wait (%p9772_p6), [#allocation15], 528   ;;  %p9773_p9 = pmov %p9766_p4 }
 0x101   : > { %v8078_v0 = vmov 0.0|0.0   ;;  %vm8079_vm0 = vmmov 0   ;;  %v8080_v1 = vmov 0.0   ;;  %vm463_vm1 = vcmask 261120   ;;  %v459_v2 = vld [vmem:[#allocation5] sm:$0xff]  ;;  %v460_v3 = vld [vmem:[#allocation5 + $0x8] sm:$0xff] }
 0x102   : > { %8042 = vsyncadd (%p9773_p9), [#allocation15], 4294966768  ;;  %6935 = vmatprep.subr.bf16.mxu0 %v8078_v0  ;;  %6169 = vmatprep.mubr.msk.f32.mxu0 %vm8079_vm0, %v8080_v1  ;;  %v461_v4 = vld [vmem:[#allocation5 + $0x10] sm:$0xff]  ;;  %v468_v5 = vand.u32 4294901760, %v459_v2  ;;  %v471_v6 = vand.u32 4294901760, %v460_v3  ;;  %v462_v7 = vld [vmem:[#allocation5 + $0x18] sm:$0xff] }
 0x103   : > { %1172 = vmatprep.mubr.f32.mxu1 %v8080_v1  ;;  %v474_v8 = vand.u32 4294901760, %v461_v4  ;;  %v458_v9 = vld [vmem:[%s391_s9] sm:$0xff]  ;;  %v8468_v10 = vld [vmem:[#allocation7 + $0x8] sm:$0xff]  ;;  %v477_v11 = vand.u32 4294901760, %v462_v7  ;;  %v8471_v13 = vld [vmem:[#allocation7 + $0x20] sm:$0xff]  ;;  %vm2632_vm2 = vcmask 64512  }
 0x104   : > { %v465_v12 = vsel %vm463_vm1, %v458_v9, 0  ;;  %v984_v14 = vand.u32 4294901760, %v8468_v10  ;;  %v8474_v15 = vpack.c.bf16 %v471_v6, %v468_v5  ;;  %v8476_v16 = vsub.f32 %v459_v2, %v468_v5  ;;  %v8512_v32 = vld [vmem:[#allocation7] sm:$0xff]  ;;  %v8519_v36 = vld [vmem:[#allocation7 + $0x18] sm:$0xff]  ;;  %v8537_v46 = vld [vmem:[#allocation7 + $0x50] sm:$0xff]  ;;  %s5762_s16 = sshll.u32 %s8153_s15, 7 }
 0x105   : > { %v8478_v17 = vsub.f32 %v460_v3, %v471_v6  ;;  %v8480_v18 = vsub.f32 %v461_v4, %v474_v8  ;;  %v8482_v19 = vpack.c.bf16 %v477_v11, %v474_v8  ;;  %v8484_v20 = vsub.f32 %v462_v7, %v477_v11  ;;  %v8521_v37 = vld [vmem:[#allocation7 + $0x38] sm:$0xff]  ;;  %s457_s13 = scalar_lea.vmem [#allocation17], %s5750_s1  ;;  %s9784_s17 = sld [smem:[#allocation25_spill]] }
 0x106   : > { %v8486_v21 = vand.u32 4294901760, %v465_v12  ;;  %6937 = vmatpush3.bf16.msra.mxu0 %v8474_v15  ;;  %v549_v22 = vand.u32 4294901760, %v8476_v16  ;;  %v988_v25 = vand.u32 4294901760, %v8471_v13  ;;  %v8501_v28 = vsub.f32 %v8468_v10, %v984_v14  ;;  %s5590_s25 = sshll.u32 %s457_s13, 4  ;;  %s5577_s29 = scalar_lea.sflag [#allocation4], %s8438_s20  ;;  %s9684_s25 = int_to_ptr.vmem [resolvable:$true] %s5590_s25 }
 0x107   : > { %v556_v23 = vand.u32 4294901760, %v8478_v17  ;;  %v563_v24 = vand.u32 4294901760, %v8480_v18  ;;  %6938 = vmatprep.subr.bf16.mxu0 %v8078_v0  ;;  %v570_v27 = vand.u32 4294901760, %v8484_v20  ;;  %v986_v45 = vand.u32 4294901760, %v8512_v32  ;;  %s7979_s21 = scalar_lea.vmem %s9684_s25, 128  ;;  %p9785_p1 = scmp.ne.s32.totalorder %s9762_s18, 0 }
 0x108   : > { %v8495_v26 = vsub.f32 %v465_v12, %v8486_v21  ;;  %v550_v29 = vsub.f32 %v8476_v16, %v549_v22  ;;  %v1070_v35 = vand.u32 4294901760, %v8501_v28  ;;  %v8527_v41 = vsub.f32 %v8471_v13, %v988_v25  ;;  %p7980_p12 = scmp.ne.s32.totalorder %s9684_s25, %s7979_s21  ;;  %s8081_s15 = smov [#allocation17]  }
 0x109   : > { %v557_v30 = vsub.f32 %v8478_v17, %v556_v23  ;;  %v564_v31 = vsub.f32 %v8480_v18, %v563_v24  ;;  %v571_v34 = vsub.f32 %v8484_v20, %v570_v27  ;;  %v990_v49 = vand.u32 4294901760, %v8519_v36  ;;  %s7983_s26 = sshll.u32 %s8081_s15, 4  ;;  %s7984_s26 = int_to_ptr.vmem [resolvable:$false] %s7983_s26 }
 0x10a   : > { %v538_v33 = vand.u32 4294901760, %v8495_v26  ;;  %6940 = vmatpush3.bf16.msra.mxu0 %v8482_v19  ;;  %v551_v38 = vand.u32 4294901760, %v550_v29  ;;  %v1071_v44 = vsub.f32 %v8501_v28, %v1070_v35  ;;  %v1082_v48 = vand.u32 4294901760, %v8527_v41  ;;  %p7981_p13 = pnand %p7980_p12, %p9785_p1  ;;  %s7985_s1 = scalar_lea.vmem %s7984_s26, 256 }
 0x10b   : > { %v558_v39 = vand.u32 4294901760, %v557_v30  ;;  %v565_v40 = vand.u32 4294901760, %v564_v31  ;;  %6941 = vmatprep.subr.bf16.mxu0 %v8078_v0  ;;  %v572_v43 = vand.u32 4294901760, %v571_v34  ;;  %v992_v50 = vand.u32 4294901760, %v8521_v37  ;;  %s9682_s14 = scalar_lea.hbm %s9784_s17, %s5762_s16  ;;  %p7986_p2 = scmp.lt.s32.totalorder %s9684_s25, %s7984_s26 }
 0x10c   : > { %v539_v42 = vsub.f32 %v8495_v26, %v538_v33  ;;  %v1072_v52 = vand.u32 4294901760, %v1071_v44  ;;  %v8545_v53 = vsub.f32 %v8512_v32, %v986_v45  ;;  %v1083_v54 = vsub.f32 %v8527_v41, %v1082_v48  ;;  %v954_v32 = vld [vmem:[#allocation7 + $0x10] sm:$0xff]  ;;  %p7982_p0 = pneg %p7981_p13  ;;  %p7987_p3 = scmp.lt.s32.totalorder %s7985_s1, %s7979_s21 }
 0x10d   : > { %v6942_v47 = vpack.c.bf16 %v558_v39, %v551_v38  ;;  %v8553_v55 = vsub.f32 %v8519_v36, %v990_v49  ;;  %v996_v56 = vand.u32 4294901760, %v8537_v46  ;;  %v8559_v57 = vsub.f32 %v8521_v37, %v992_v50  ;;  %v957_v36 = vld [vmem:[#allocation7 + $0x28] sm:$0xff]  ;;  %v960_v37 = vld [vmem:[#allocation7 + $0x40] sm:$0xff] }
 0x10e   : > { %v540_v51 = vand.u32 4294901760, %v539_v42  ;;  %v6945_v58 = vpack.c.bf16 %v572_v43, %v565_v40  ;;  %v1076_v59 = vand.u32 4294901760, %v8545_v53  ;;  %v1084_v60 = vand.u32 4294901760, %v1083_v54  ;;  %p7988_p4 = por %p7987_p3, %p7986_p2 }
 0x10f   : > { %v1088_v61 = vand.u32 4294901760, %v8553_v55  ;;  %v1094_v62 = vand.u32 4294901760, %v8559_v57  ;;  %v8569_v63 = vsub.f32 %v8537_v46, %v996_v56  ;;  %v6948_v8 = vpack.c.bf16 %v8478_v17, %v8476_v16  ;;  %v958_v16 = vld [vmem:[#allocation7 + $0x30] sm:$0xff]  ;;  %v961_v17 = vld [vmem:[#allocation7 + $0x48] sm:$0xff] }
 0x110   : > { %6170 = vmatmul.mubr.f32.vlgmr.msra.gmra.mrb[0].mxu0 %v540_v51  ;;  %v1077_v2 = vsub.f32 %v8545_v53, %v1076_v59  ;;  %v6979_v3 = vpack.c.bf16 %v1084_v60, %v1072_v52  ;;  %v6951_v31 = vpack.c.bf16 %v8484_v20, %v8480_v18  ;;  %v6960_v38 = vpack.c.bf16 %v556_v23, %v549_v22  ;;  %p7989_p10 = pnand %p7988_p4, %p7982_p0 }
 0x111   : > { %6943 = vmatpush3.bf16.msra.mxu0 %v6942_v47  ;;  %6180 = vmatprep.mubr.msk.f32.mxu0 %vm8079_vm0, %v8080_v1  ;;  %v1089_v4 = vsub.f32 %v8553_v55, %v1088_v61  ;;  %v1095_v5 = vsub.f32 %v8559_v57, %v1094_v62  ;;  %v1106_v6 = vand.u32 4294901760, %v8569_v63  ;;  %v6963_v39 = vpack.c.bf16 %v570_v27, %v563_v24  ;;  %v963_v47 = vld [vmem:[#allocation7 + $0x58] sm:$0xff] }
 0x112   : > { %6944 = vmatprep.subr.bf16.mxu0 %v8078_v0  ;;  %v1078_v7 = vand.u32 4294901760, %v1077_v2  ;;  %6980 = vmatprep.subr.bf16.mxu1 %v6979_v3  ;;  %v994_v18 = vand.u32 4294901760, %v958_v16  ;;  %v998_v20 = vand.u32 4294901760, %v961_v17  ;;  %v8636_v43 = vpack.c.bf16 %v990_v49, %v986_v45 }
 0x113   : > { %v1090_v9 = vand.u32 4294901760, %v1089_v4  ;;  %v1096_v11 = vand.u32 4294901760, %v1095_v5  ;;  %v1107_v12 = vsub.f32 %v8569_v63, %v1106_v6  ;;  %v8644_v10 = vpack.c.bf16 %v996_v56, %v992_v50 }
 0x114   : > { %v1099_v22 = vsub.f32 %v958_v16, %v994_v18  ;;  %v1111_v23 = vsub.f32 %v961_v17, %v998_v20  ;;  %v8646_v13 = vpack.c.bf16 %v998_v20, %v994_v18  ;;  %v1528_v44 = vand.u32 4294901760, %v954_v32 }
 0x115   : > { %6946 = vmatpush3.bf16.msra.mxu0 %v6945_v58  ;;  %v6981_v29 = vpack.c.bf16 %v1090_v9, %v1078_v7  ;;  %v1108_v30 = vand.u32 4294901760, %v1107_v12  ;;  %v1531_v45 = vand.u32 4294901760, %v957_v36  ;;  %v6989_v49 = vpack.c.bf16 %v8553_v55, %v8545_v53  ;;  %v2019_v53 = vld [vmem:[#allocation10 + $0x38] sm:$0xff] }
 0x116   : > { %6947 = vmatprep.subr.bf16.mxu0 %v8078_v0  ;;  %v1100_v24 = vand.u32 4294901760, %v1099_v22  ;;  %v8655_v50 = vsub.f32 %v954_v32, %v1528_v44  ;;  %v1534_v56 = vand.u32 4294901760, %v960_v37  ;;  %v1537_v58 = vand.u32 4294901760, %v963_v47 }
 0x117   : > { %v6983_v34 = vpack.c.bf16 %v1108_v30, %v1096_v11  ;;  %6982 = vmatpush1.bf16.msra.mxu1 %v6981_v29  ;;  %v8658_v54 = vsub.f32 %v957_v36, %v1531_v45  ;;  %v6991_v2 = vpack.c.bf16 %v8569_v63, %v8559_v57  ;;  %v8680_v12 = vpack.c.bf16 %v1531_v45, %v1528_v44 }
 0x118   : > { %6181 = vmatmul.mubr.f32.vlgmr.msra.gmra.mrb[0].mxu0 %v8486_v21  ;;  %v8669_v4 = vsub.f32 %v960_v37, %v1534_v56  ;;  %v8671_v5 = vsub.f32 %v963_v47, %v1537_v58  ;;  %v1609_v7 = vand.u32 4294901760, %v8655_v50 }
 0x119   : > { %6949 = vmatpush3.bf16.msra.mxu0 %v6948_v8  ;;  %6191 = vmatprep.mubr.msk.f32.mxu0 %vm8079_vm0, %v8080_v1  ;;  %v1616_v8 = vand.u32 4294901760, %v8658_v54  ;;  %v7032_v32 = vpack.c.bf16 %v8658_v54, %v8655_v50 }
 0x11a   : > { %6950 = vmatprep.subr.bf16.mxu0 %v8078_v0  ;;  %6984 = vmatprep.subr.bf16.mxu1 %v6983_v34  ;;  %v1610_v29 = vsub.f32 %v8655_v50, %v1609_v7  ;;  %v1630_v34 = vand.u32 4294901760, %v8671_v5 }
 0x11b   : > { %v1617_v30 = vsub.f32 %v8658_v54, %v1616_v8 }
 0x11c   : > { %v1611_v16 = vand.u32 4294901760, %v1610_v29  ;;  %v1631_v20 = vsub.f32 %v8671_v5, %v1630_v34 }
 0x11d   : > { %6952 = vmatpush3.bf16.msra.mxu0 %v6951_v31  ;;  %v1623_v31 = vand.u32 4294901760, %v8669_v4  ;;  %v1618_v17 = vand.u32 4294901760, %v1617_v30 }
 0x11e   : > { %6953 = vmatprep.subr.bf16.mxu0 %v8078_v0 }
 0x11f   : > { %v1624_v18 = vsub.f32 %v8669_v4, %v1623_v31  ;;  %v7047_v50 = vpack.c.bf16 %v1630_v34, %v1623_v31 }
 0x120   : > { %6192 = vmatmul.mubr.f32.vlgmr.msra.gmra.mrb[0].mxu0 %v8495_v26  ;;  %v1112_v26 = vand.u32 4294901760, %v1111_v23 }
 0x121   : > { %6955 = vmatpush3.bf16.msra.mxu0 %v8474_v15  ;;  %6202 = vmatprep.mubr.msk.f32.mxu0 %vm8079_vm0, %v8080_v1 }
 0x122   : > { %6956 = vmatprep.subr.bf16.mxu0 %v8078_v0  ;;  %v1113_v27 = vsub.f32 %v1111_v23, %v1112_v26 }
 0x124   : > { %v1114_v40 = vand.u32 4294901760, %v1113_v27 }
 0x125   : > { %6958 = vmatpush3.bf16.msra.mxu0 %v8482_v19 }
 0x126   : > { %6959 = vmatprep.subr.bf16.mxu0 %v8078_v0 }
 0x128   : > { %6203 = vmatmul.mubr.f32.vlgmr.msra.gmra.mrb[0].mxu0 %v538_v33 }
 0x129   : > { %6961 = vmatpush3.bf16.msra.mxu0 %v6960_v38  ;;  %6213 = vmatprep.mubr.msk.f32.mxu0 %vm8079_vm0, %v8080_v1 }
 0x12a   : > { %6962 = vmatprep.subr.bf16.mxu0 %v8078_v0 }
 0x12d   : > { %6964 = vmatpush3.bf16.msra.mxu0 %v6963_v39  ;;  %v8695_v39 = vpack.c.bf16 %v1537_v58, %v1534_v56 }
 0x12e   : > { %6965 = vmatprep.subr.bf16.mxu0 %v8078_v0 }
 0x130   : > { %6214 = vmatmul.mubr.f32.vlgmr.msra.gmra.mrb[0].mxu0 %v8486_v21 }
 0x131   : > { %6967 = vmatpush3.bf16.msra.mxu0 %v8474_v15  ;;  %6224 = vmatprep.mubr.msk.f32.mxu0 %vm8079_vm0, %v8080_v1  ;;  %v1101_v15 = vsub.f32 %v1099_v22, %v1100_v24 }
 0x132   : > { %6968 = vmatprep.subr.bf16.mxu0 %v8078_v0 }
 0x133   : > { %v1102_v33 = vand.u32 4294901760, %v1101_v15  ;;  %v1625_v15 = vand.u32 4294901760, %v1624_v18 }
 0x135   : > { %6970 = vmatpush3.bf16.msra.mxu0 %v8482_v19  ;;  %v6985_v42 = vpack.c.bf16 %v1114_v40, %v1102_v33  ;;  %v8628_v19 = vpack.c.bf16 %v988_v25, %v984_v14  ;;  %v6993_v14 = vpack.c.bf16 %v1111_v23, %v1099_v22  ;;  %v8651_v25 = vpack.c.bf16 %v1112_v26, %v1100_v24  ;;  %v2013_v23 = vld [vmem:[#allocation10 + $0x8] sm:$0xff]  ;;  %v2015_v24 = vld [vmem:[#allocation10 + $0x18] sm:$0xff]  ;;  %v2012_v33 = vld [vmem:[#allocation10] sm:$0xff] }
 0x136   : > { %v7003_v22 = vpack.c.bf16 %v1082_v48, %v1070_v35  ;;  %v7005_v26 = vpack.c.bf16 %v1088_v61, %v1076_v59  ;;  %v7007_v35 = vpack.c.bf16 %v1106_v6, %v1094_v62  ;;  %v2032_v48 = vand.u32 4294901760, %v2013_v23  ;;  %v2014_v40 = vld [vmem:[#allocation10 + $0x10] sm:$0xff] }
 0x137   : > { %6986 = vmatpush1.bf16.msra.mxu1 %v6985_v42  ;;  %6972 = vmatprep.subr.bf16.mxu0 %v8628_v19  ;;  %v2036_v27 = vand.u32 4294901760, %v2015_v24  ;;  %v2017_v42 = vld [vmem:[#allocation10 + $0x28] sm:$0xff]  ;;  %v2034_v59 = vand.u32 4294901760, %v2012_v33  ;;  %v2038_v61 = vand.u32 4294901760, %v2014_v40  ;;  %v2044_v6 = vand.u32 4294901760, %v2019_v53 }
 0x138   : > { %6225 = vmatmul.mubr.f32.vlgmr.msra.gmra.mrb[0].mxu0 %v8486_v21  ;;  %v6987_v21 = vpack.c.bf16 %v8527_v41, %v8501_v28  ;;  %v7026_v28 = vpack.c.bf16 %v1618_v17, %v1611_v16  ;;  %v1632_v41 = vand.u32 4294901760, %v1631_v20  ;;  %v8728_v57 = vsub.f32 %v2013_v23, %v2032_v48 }
 0x139   : > { %1056 = vmatprep.mubr.f32.mxu0 %v8080_v1  ;;  %6974 = vmatpush1.bf16.msra.mxu0 %v8636_v43  ;;  %v8730_v62 = vsub.f32 %v2015_v24, %v2036_v27  ;;  %v2040_v63 = vand.u32 4294901760, %v2017_v42  ;;  %v8738_v36 = vsub.f32 %v2012_v33, %v2034_v59  ;;  %v8740_v44 = vsub.f32 %v2014_v40, %v2038_v61 }
 0x13a   : > { %6988 = vmatprep.subr.bf16.mxu1 %v6987_v21  ;;  %6976 = vmatprep.subr.bf16.mxu0 %v8644_v10  ;;  %v7029_v55 = vpack.c.bf16 %v1632_v41, %v1625_v15  ;;  %v2016_v21 = vld [vmem:[#allocation10 + $0x20] sm:$0xff] }
 0x13b   : > { %v2042_v45 = vand.u32 4294901760, %v2016_v21  ;;  %v8744_v47 = vsub.f32 %v2017_v42, %v2040_v63  ;;  %v2124_v58 = vand.u32 4294901760, %v8738_v36  ;;  %v8778_v16 = vpack.c.bf16 %v2044_v6, %v2040_v63  ;;  %v964_v63 = vld [vmem:[#allocation8] sm:$0x7] }
 0x13c   : > { %v7044_v42 = vpack.c.bf16 %v1616_v8, %v1609_v7  ;;  %v7071_v7 = vpack.c.bf16 %v8730_v62, %v8728_v57 }
 0x13d   : > { %6978 = vmatpush1.bf16.msra.mxu0 %v8646_v13  ;;  %v2142_v29 = vand.u32 4294901760, %v8744_v47  ;;  %v2125_v17 = vsub.f32 %v8738_v36, %v2124_v58 }
 0x13e   : > { %7019 = vmatprep.subr.bf16.mxu0 %v8078_v0 }
 0x13f   : > { %v2126_v15 = vand.u32 4294901760, %v2125_v17 }
 0x20b   : > { %v948_v46 = vpop.f32.mrb[0].mxu0 }
 0x20c   : > { %v982_v51 = vsel %vm463_vm1, %v948_v46, 0  ;;  %v6226_v52 = vpop.f32.mrb[1].mxu0  ;;  %v8746_v46 = vsub.f32 %v2019_v53, %v2044_v6 }
 0x20d   : > { %v8660_v60 = vand.u32 4294901760, %v982_v51  ;;  %v8754_v52 = vpack.c.bf16 %v2036_v27, %v2032_v48 }
 0x20e   : > { %v2154_v30 = vand.u32 4294901760, %v8746_v46 }
 0x20f   : > { %v8665_v3 = vsub.f32 %v982_v51, %v8660_v60  ;;  %1174 = vmatmul.mubr.f32.vlgmr.msra.gmra.mrb[0].mxu1 %v8660_v60  ;;  %v2130_v51 = vand.u32 4294901760, %v8730_v62 }
 0x210   : > { %6990 = vmatpush1.bf16.msra.mxu1 %v6989_v49  ;;  %1260 = vmatprep.mubr.f32.mxu1 %v8080_v1  ;;  %v2118_v49 = vand.u32 4294901760, %v8728_v57 }
 0x211   : > { %v8676_v9 = vand.u32 4294901760, %v8665_v3  ;;  %6992 = vmatprep.subr.bf16.mxu1 %v6991_v2  ;;  %v2136_v2 = vand.u32 4294901760, %v8740_v44 }
 0x213   : > { %v1060_v11 = vsub.f32 %v8665_v3, %v8676_v9  ;;  %v2137_v18 = vsub.f32 %v8740_v44, %v2136_v2  ;;  %v7089_v31 = vpack.c.bf16 %v2136_v2, %v2124_v58  ;;  %v2020_v2 = vld [vmem:[#allocation11] sm:$0x3] }
 0x214   : > { %6994 = vmatpush1.bf16.msra.mxu1 %v6993_v14  ;;  %v2018_v14 = vld [vmem:[#allocation10 + $0x30] sm:$0xff] }
 0x215   : > { %6996 = vmatprep.subr.bf16.mxu1 %v8628_v19  ;;  %v8691_v38 = vand.u32 4294901760, %v1060_v11  ;;  %v2046_v37 = vand.u32 4294901760, %v2018_v14  ;;  %v2119_v11 = vsub.f32 %v8728_v57, %v2118_v49  ;;  %v2138_v41 = vand.u32 4294901760, %v2137_v18 }
 0x217   : > { %1062 = vmatmul.mubr.f32.vlgmr.msra.gmra.mrb[2].mxu0 %v8691_v38  ;;  %1263 = vmatmul.mubr.f32.vlgmr.msra.gmra.mrb[0].mxu1 %v8665_v3  ;;  %v8759_v56 = vsub.f32 %v2018_v14, %v2046_v37  ;;  %v2120_v23 = vand.u32 4294901760, %v2119_v11  ;;  %v7065_v53 = vpack.c.bf16 %v2138_v41, %v2126_v15 }
 0x218   : > { %6998 = vmatpush1.bf16.msra.mxu1 %v8636_v43  ;;  %7021 = vmatpush3.bf16.msra.mxu0 %v8680_v12 }
 0x219   : > { %7000 = vmatprep.subr.bf16.mxu1 %v8644_v10  ;;  %7022 = vmatprep.subr.bf16.mxu0 %v8078_v0 }
 0x21a   : > { %6235 = vmatprep.mubr.msk.f32.mxu0 %vm8079_vm0, %v8080_v1  ;;  %1341 = vmatprep.mubr.f32.mxu1 %v8080_v1 }
 0x21c   : > { %7002 = vmatpush1.bf16.msra.mxu1 %v8646_v13  ;;  %7024 = vmatpush3.bf16.msra.mxu0 %v8695_v39 }
 0x21d   : > { %7004 = vmatprep.subr.bf16.mxu1 %v7003_v22  ;;  %7025 = vmatprep.subr.bf16.mxu0 %v8078_v0  ;;  %v2160_v22 = vand.u32 4294901760, %v8759_v56 }
 0x21f   : > { %6236 = vmatmul.mubr.f32.vlgmr.msra.gmra.mrb[4].mxu0 %v8691_v38  ;;  %1345 = vmatmul.mubr.f32.vlgmr.msra.gmra.mrb[0].mxu1 %v8676_v9  ;;  %v2161_v48 = vsub.f32 %v8759_v56, %v2160_v22 }
 0x220   : > { %7006 = vmatpush1.bf16.msra.mxu1 %v7005_v26  ;;  %7027 = vmatpush3.bf16.msra.mxu0 %v7026_v28  ;;  %v2155_v26 = vsub.f32 %v8746_v46, %v2154_v30  ;;  %v8799_v28 = vpack.c.bf16 %v2046_v37, %v2042_v45 }
 0x221   : > { %7008 = vmatprep.subr.bf16.mxu1 %v7007_v35  ;;  %7028 = vmatprep.subr.bf16.mxu0 %v8078_v0 }
 0x222   : > { %6246 = vmatprep.mubr.msk.f32.mxu0 %vm8079_vm0, %v8080_v1  ;;  %1439 = vmatprep.mubr.f32.mxu1 %v8080_v1  ;;  %v2156_v40 = vand.u32 4294901760, %v2155_v26 }
 0x224   : > { %7010 = vmatpush1.bf16.msra.mxu1 %v8651_v25  ;;  %7030 = vmatpush3.bf16.msra.mxu0 %v7029_v55  ;;  %v7035_v25 = vpack.c.bf16 %v8671_v5, %v8669_v4  ;;  %v7073_v4 = vpack.c.bf16 %v8740_v44, %v8738_v36  ;;  %v7075_v5 = vpack.c.bf16 %v8746_v46, %v8744_v47 }
 0x225   : > { %7012 = vmatprep.subr.bf16.mxu1 %v8628_v19  ;;  %7031 = vmatprep.subr.bf16.mxu0 %v8078_v0  ;;  %v8757_v19 = vsub.f32 %v2016_v21, %v2042_v45 }
 0x227   : > { %6247 = vmatmul.mubr.f32.vlgmr.msra.gmra.mrb[4].mxu0 %v8660_v60  ;;  %1441 = vmatmul.mubr.f32.vlgmr.msra.gmra.mrb[0].mxu1 %v8660_v60  ;;  %v2148_v20 = vand.u32 4294901760, %v8757_v19  ;;  %v7077_v8 = vpack.c.bf16 %v8759_v56, %v8757_v19 }
 0x228   : > { %7014 = vmatpush1.bf16.msra.mxu1 %v8636_v43  ;;  %7033 = vmatpush3.bf16.msra.mxu0 %v7032_v32  ;;  %v2131_v43 = vsub.f32 %v8730_v62, %v2130_v51 }
 0x229   : > { %7016 = vmatprep.subr.bf16.mxu1 %v8644_v10  ;;  %7034 = vmatprep.subr.bf16.mxu0 %v8078_v0  ;;  %v8776_v10 = vpack.c.bf16 %v2038_v61, %v2034_v59  ;;  %v2149_v35 = vsub.f32 %v8757_v19, %v2148_v20  ;;  %v2162_v59 = vand.u32 4294901760, %v2161_v48  ;;  %v7093_v34 = vpack.c.bf16 %v2160_v22, %v2148_v20 }
 0x22a   : > { %6257 = vmatprep.mubr.msk.f32.mxu0 %vm8079_vm0, %v8080_v1  ;;  %1519 = vmatprep.mubr.f32.mxu1 %v8080_v1  ;;  %v2132_v24 = vand.u32 4294901760, %v2131_v43 }
 0x22b   : > { %v2150_v55 = vand.u32 4294901760, %v2149_v35 }
 0x22c   : > { %7018 = vmatpush1.bf16.msra.mxu1 %v8646_v13  ;;  %7036 = vmatpush3.bf16.msra.mxu0 %v7035_v25  ;;  %v2143_v13 = vsub.f32 %v8744_v47, %v2142_v29  ;;  %v7063_v27 = vpack.c.bf16 %v2132_v24, %v2120_v23 }
 0x22d   : > { %7037 = vmatprep.subr.bf16.mxu0 %v8078_v0  ;;  %7056 = vmatprep.subr.bf16.mxu1 %v8754_v52  ;;  %v7069_v54 = vpack.c.bf16 %v2162_v59, %v2150_v55 }
 0x22e   : > { %v2144_v33 = vand.u32 4294901760, %v2143_v13 }
 0x22f   : > { %6258 = vmatmul.mubr.f32.vlgmr.msra.gmra.mrb[4].mxu0 %v8665_v3  ;;  %1521 = vmatmul.mubr.f32.vlgmr.msra.gmra.mrb[0].mxu1 %v8660_v60 }
 0x230   : > { %7039 = vmatpush3.bf16.msra.mxu0 %v8680_v12  ;;  %7058 = vmatpush1.bf16.msra.mxu1 %v8776_v10  ;;  %v7067_v61 = vpack.c.bf16 %v2156_v40, %v2144_v33 }
 0x231   : > { %7040 = vmatprep.subr.bf16.mxu0 %v8078_v0  ;;  %7060 = vmatprep.subr.bf16.mxu1 %v8778_v16 }
 0x232   : > { %6268 = vmatprep.mubr.msk.f32.mxu0 %vm8079_vm0, %v8080_v1  ;;  %2104 = vmatprep.mubr.f32.mxu1 %v8080_v1 }
 0x234   : > { %7042 = vmatpush3.bf16.msra.mxu0 %v8695_v39  ;;  %7062 = vmatpush1.bf16.msra.mxu1 %v8799_v28 }
 0x235   : > { %7043 = vmatprep.subr.bf16.mxu0 %v8078_v0  ;;  %7064 = vmatprep.subr.bf16.mxu1 %v7063_v27 }
 0x237   : > { %6269 = vmatmul.mubr.f32.vlgmr.msra.gmra.mrb[4].mxu0 %v8676_v9  ;;  %2110 = vmatmul.mubr.f32.vlgmr.msra.gmra.mrb[2].mxu1 %v8691_v38 }
 0x238   : > { %7045 = vmatpush3.bf16.msra.mxu0 %v7044_v42  ;;  %7066 = vmatpush1.bf16.msra.mxu1 %v7065_v53 }
 0x239   : > { %7046 = vmatprep.subr.bf16.mxu0 %v8078_v0  ;;  %7068 = vmatprep.subr.bf16.mxu1 %v7067_v61 }
 0x23a   : > { %6279 = vmatprep.mubr.msk.f32.mxu0 %vm8079_vm0, %v8080_v1  ;;  %2220 = vmatprep.mubr.f32.mxu1 %v8080_v1 }
 0x23c   : > { %7048 = vmatpush3.bf16.msra.mxu0 %v7047_v50  ;;  %7070 = vmatpush1.bf16.msra.mxu1 %v7069_v54 }
 0x23d   : > { %7049 = vmatprep.subr.bf16.mxu0 %v8078_v0  ;;  %7072 = vmatprep.subr.bf16.mxu1 %v7071_v7 }
 0x23f   : > { %6280 = vmatmul.mubr.f32.vlgmr.msra.gmra.mrb[4].mxu0 %v8660_v60  ;;  %2222 = vmatmul.mubr.f32.vlgmr.msra.gmra.mrb[2].mxu1 %v8660_v60 }
 0x240   : > { %7051 = vmatpush3.bf16.msra.mxu0 %v8680_v12  ;;  %7074 = vmatpush1.bf16.msra.mxu1 %v7073_v4  ;;  %v7087_v12 = vpack.c.bf16 %v2130_v51, %v2118_v49 }
 0x241   : > { %7052 = vmatprep.subr.bf16.mxu0 %v8078_v0  ;;  %7076 = vmatprep.subr.bf16.mxu1 %v7075_v5 }
 0x242   : > { %6290 = vmatprep.mubr.msk.f32.mxu0 %vm8079_vm0, %v8080_v1  ;;  %2308 = vmatprep.mubr.f32.mxu1 %v8080_v1 }
 0x244   : > { %7054 = vmatpush3.bf16.msra.mxu0 %v8695_v39  ;;  %7078 = vmatpush1.bf16.msra.mxu1 %v7077_v8  ;;  %v966_v39 = vlaneseq }
 0x245   : > { %7080 = vmatprep.subr.bf16.mxu1 %v8754_v52 }
 0x246   : > { %v967_v57 = vshrl.u32 %v966_v39, 7 }
 0x247   : > { %6291 = vmatmul.mubr.f32.vlgmr.msra.gmra.mrb[4].mxu0 %v8660_v60  ;;  %2311 = vmatmul.mubr.f32.vlgmr.msra.gmra.mrb[2].mxu1 %v8665_v3  ;;  %v7091_v3 = vpack.c.bf16 %v2154_v30, %v2142_v29 }
 0x248   : > { %7082 = vmatpush1.bf16.msra.mxu1 %v8776_v10  ;;  %2389 = vmatprep.mubr.f32.mxu1 %v8080_v1  ;;  %v968_v62 = vsub.s32 0, %v967_v57  ;;  %v972_v6 = vsub.s32 1, %v967_v57  ;;  %v976_v25 = vsub.s32 2, %v967_v57 }
 0x249   : > { %7084 = vmatprep.subr.bf16.mxu1 %v8778_v16 }
 0x24a   : > { %v969_v21 = vrot.slane %v964_v63, %v968_v62  ;;  %v973_v14 = vrot.slane %v964_v63, %v972_v6  ;;  %v2025_v11 = vrot.slane %v2020_v2, %v968_v62 }
 0x24c   : > { %7086 = vmatpush1.bf16.msra.mxu1 %v8799_v28 }
 0x24d   : > { %7088 = vmatprep.subr.bf16.mxu1 %v7087_v12 }
 0x24f   : > { %2393 = vmatmul.mubr.f32.vlgmr.msra.gmra.mrb[2].mxu1 %v8676_v9 }
 0x250   : > { %7090 = vmatpush1.bf16.msra.mxu1 %v7089_v31  ;;  %2487 = vmatprep.mubr.f32.mxu1 %v8080_v1 }
 0x251   : > { %7092 = vmatprep.subr.bf16.mxu1 %v7091_v3 }
 0x254   : > { %7094 = vmatpush1.bf16.msra.mxu1 %v7093_v34 }
 0x255   : > { %7096 = vmatprep.subr.bf16.mxu1 %v8754_v52  ;;  %v977_v52 = vrot.slane %v964_v63, %v976_v25 }
 0x257   : > { %2489 = vmatmul.mubr.f32.vlgmr.msra.gmra.mrb[2].mxu1 %v8660_v60 }
 0x258   : > { %7098 = vmatpush1.bf16.msra.mxu1 %v8776_v10  ;;  %2567 = vmatprep.mubr.f32.mxu1 %v8080_v1 }
 0x259   : > { %7100 = vmatprep.subr.bf16.mxu1 %v8778_v16  ;;  %v2029_v16 = vrot.slane %v2020_v2, %v972_v6 }
 0x25c   : > { %7102 = vmatpush1.bf16.msra.mxu1 %v8799_v28 }
 0x25f   : > { %2569 = vmatmul.mubr.f32.vlgmr.msra.gmra.mrb[2].mxu1 %v8660_v60 }
 0x2ea   : > { %v1063_v9 = vpop.f32.mrb[2].mxu0 }
 0x2eb   : > { %v1065_v38 = vpop.f32.mrb[3].mxu0  ;;  %v1064_v32 = vadd.f32 %v1063_v9, %v969_v21 }
 0x2ec   : > { %v1066_v36 = vadd.f32 %v1065_v38, %v973_v14 }
 0x302   : > { %v1522_v44 = vpop.f32.mrb[0].mxu1 }
 0x303   : > { %v1524_v45 = vpop.f32.mrb[1].mxu1  ;;  %v7428_v37 = vadd.f32 %v1522_v44, %v1064_v32 }
 0x304   : > { %v7430_v47 = vadd.f32 %v1524_v45, %v1066_v36 }
 0x305   : > { %v2575_v46 = vmul.f32 %v7428_v37, %v7428_v37 }
 0x306   : > { %v2579_v49 = vmul.f32 %v7430_v47, %v7430_v47 }
 0x307   : > { %2576 = vadd.xlane.f32.xlu0 %v2575_v46 }
 0x308   : > { %2580 = vadd.xlane.f32.xlu1 %v2579_v49 }
 0x31a   : > { %v2008_v60 = vpop.f32.mrb[4].mxu0 }
 0x31b   : > { %v6292_v51 = vpop.f32.mrb[5].mxu0  ;;  %v7431_v19 = vadd.f32 %v2008_v60, %v977_v52 }
 0x332   : > { %v2570_v56 = vpop.f32.mrb[2].mxu1 }
 0x333   : > { %v2572_v58 = vpop.f32.mrb[3].mxu1  ;;  %v7432_v29 = vadd.f32 %v2570_v56, %v2025_v11 }
 0x334   : > { %2600 = vxpose.xlu0.b32.start.end [1/1] (short) %v7431_v19, 128  ;;  %v7433_v22 = vadd.f32 %v2572_v58, %v2029_v16 }
 0x394   : > { %v2577_v43 = vpop.xlane.xlu0 %2576 }
 0x395   : > { %v2578_v30 = vmul.f32 0.5, %v2577_v43  ;;  %v2581_v10 = vpop.xlane.xlu1 %2580 }
 0x396   : > { %v2582_v20 = vmul.f32 0.5, %v2581_v10 }
 0x397   : > { %v2583_v17 = vsub.f32 %v7432_v29, %v2578_v30 }
 0x398   : > { %v2587_v23 = vsub.f32 %v7433_v22, %v2582_v20 }
 0x399   : > { %v2584_v18 = vmul.f32 1.442695, %v2583_v17 }
 0x39a   : > { %v2588_v24 = vmul.f32 1.442695, %v2587_v23 }
 0x39b   : > { %7719 = vpow2.f32 %v2584_v18 }
 0x39c   : > { %7721 = vpow2.f32 %v2588_v24 }
 0x3a5   : > { %v7720_v13 = vpop.eup %7719 }
 0x3a6   : > { %v2586_v26 = vmul.f32 0.25, %v7720_v13  ;;  %v7722_v42 = vpop.eup %7721 }
 0x3a7   : > { %v8889_v59 = vmul.f32 0.25, %v7722_v42 }
 0x3a8   : > { %v8880_v28 = vand.u32 4294901760, %v2586_v26  ;;  %v2591_v15 = vrot.slane %v2586_v26, 4 }
 0x3aa   : > { %6293 = vmatprep.subr.mxu1 %v8880_v28  ;;  %v2909_v41 = vsub.f32 %v2586_v26, %v8880_v28  ;;  %v2592_v35 = vadd.f32 %v2591_v15, %v2586_v26 }
 0x3ab   : > { %6294 = vmatpush3.msra.mxu1 %v8880_v28 }
 0x3ac   : > { %v8885_v48 = vand.u32 4294901760, %v2909_v41  ;;  %v2593_v27 = vrot.slane %v2592_v35, 2  ;;  %7103 = vmatprep.subr.bf16.mxu1 %v8078_v0 }
 0x3ae   : > { %v2911_v33 = vsub.f32 %v2909_v41, %v8885_v48  ;;  %v2594_v40 = vadd.f32 %v2593_v27, %v2592_v35 }
 0x3b0   : > { %v2912_v53 = vand.u32 4294901760, %v2911_v33  ;;  %v2595_v55 = vrot.slane %v2594_v40, 1 }
 0x3b2   : > { %6319 = vmatprep.subr.mxu0 %v2912_v53  ;;  %v2596_v61 = vadd.f32 %v2595_v55, %v2594_v40 }
 0x3b3   : > { %6320 = vmatpush3.msra.mxu0 %v2912_v53 }
 0x3b4   : > { %6345 = vmatprep.subr.mxu0 %v2909_v41  ;;  %v2616_v50 = vpop.trf.xlu0  ;;  %v2597_v54 = vmul.f32 %v2596_v61, %v8889_v59 }
 0x3b5   : > { %v2634_v7 = vsel %vm2632_vm2, %v2616_v50, 0 }
 0x3b6   : > { %v8893_v4 = vand.u32 4294901760, %v2634_v7  ;;  %2598 = vadd.xlane.f32.xlu1 %v2597_v54 }
 0x3b8   : > { %v8896_v5 = vsub.f32 %v2634_v7, %v8893_v4  ;;  %v2617_v8 = vpop.trf.xlu0  ;;  %6321 = vmatprep.mubr.f32.mxu0 %v8893_v4 }
 0x3b9   : > { %v2637_v12 = vsel %vm2632_vm2, %v2617_v8, 0 }
 0x3ba   : > { %v2749_v31 = vand.u32 4294901760, %v8896_v5  ;;  %v8901_v3 = vand.u32 4294901760, %v2637_v12 }
 0x3bc   : > { %v8904_v34 = vsub.f32 %v2637_v12, %v8901_v3  ;;  %6322 = vmatmul.mubr.f32.vlgmr.msra.gmra.mrb[6].mxu0 %v8901_v3  ;;  %v2618_v9 = vpop.trf.xlu0  ;;  %v2750_v38 = vsub.f32 %v8896_v5, %v2749_v31 }
 0x3bd   : > { %6346 = vmatpush3.msra.mxu0 %v2909_v41  ;;  %v2640_v39 = vsel %vm2632_vm2, %v2618_v9, 0 }
 0x3be   : > { %v2759_v57 = vand.u32 4294901760, %v8904_v34  ;;  %v8912_v62 = vand.u32 4294901760, %v2640_v39  ;;  %6371 = vmatprep.subr.mxu0 %v8880_v28  ;;  %v2751_v63 = vand.u32 4294901760, %v2750_v38 }
 0x3c0   : > { %v2760_v6 = vsub.f32 %v8904_v34, %v2759_v57  ;;  %v8919_v21 = vsub.f32 %v2640_v39, %v8912_v62  ;;  %6295 = vmatprep.mubr.f32.mxu1 %v2751_v63  ;;  %v2619_v14 = vpop.trf.xlu0  ;;  %6324 = vmatprep.mubr.f32.mxu0 %v8912_v62 }
 0x3c1   : > { %v2643_v32 = vsel %vm2632_vm2, %v2619_v14, 0 }
 0x3c2   : > { %v2761_v36 = vand.u32 4294901760, %v2760_v6  ;;  %v2769_v44 = vand.u32 4294901760, %v8919_v21  ;;  %v8924_v45 = vand.u32 4294901760, %v2643_v32 }
 0x3c4   : > { %v8927_v37 = vsub.f32 %v2643_v32, %v8924_v45  ;;  %6296 = vmatmul.mubr.f32.vlgmr.msra.gmra.mrb[4].mxu1 %v2761_v36  ;;  %v2620_v47 = vpop.trf.xlu0  ;;  %6325 = vmatmul.mubr.f32.gmra.mrb[8].mxu0 %v8924_v45  ;;  %v2770_v46 = vsub.f32 %v8919_v21, %v2769_v44 }
 0x3c5   : > { %v2646_v49 = vsel %vm2632_vm2, %v2620_v47, 0 }
 0x3c6   : > { %v2779_v60 = vand.u32 4294901760, %v8927_v37  ;;  %v8935_v51 = vand.u32 4294901760, %v2646_v49  ;;  %v2771_v25 = vand.u32 4294901760, %v2770_v46 }
 0x3c8   : > { %v8938_v52 = vsub.f32 %v2646_v49, %v8935_v51  ;;  %6298 = vmatprep.mubr.f32.mxu1 %v2771_v25  ;;  %v2621_v19 = vpop.trf.xlu0  ;;  %6327 = vmatprep.mubr.f32.mxu0 %v8935_v51  ;;  %v2780_v56 = vsub.f32 %v8927_v37, %v2779_v60 }
 0x3c9   : > { %v2649_v58 = vsel %vm2632_vm2, %v2621_v19, 0 }
 0x3ca   : > { %v2789_v2 = vand.u32 4294901760, %v8938_v52  ;;  %v8946_v11 = vand.u32 4294901760, %v2649_v58  ;;  %v2781_v43 = vand.u32 4294901760, %v2780_v56 }
 0x3cc   : > { %v8949_v29 = vsub.f32 %v2649_v58, %v8946_v11  ;;  %6299 = vmatmul.mubr.f32.gmra.mrb[6].mxu1 %v2781_v43  ;;  %v2622_v30 = vpop.trf.xlu0  ;;  %6328 = vmatmul.mubr.f32.gmra.mrb[10].mxu0 %v8946_v11  ;;  %v2790_v10 = vsub.f32 %v8938_v52, %v2789_v2 }
 0x3cd   : > { %v2652_v16 = vsel %vm2632_vm2, %v2622_v30, 0 }
 0x3ce   : > { %v2799_v17 = vand.u32 4294901760, %v8949_v29  ;;  %v8957_v18 = vand.u32 4294901760, %v2652_v16  ;;  %v2791_v20 = vand.u32 4294901760, %v2790_v10 }
 0x3d0   : > { %v8960_v22 = vsub.f32 %v2652_v16, %v8957_v18  ;;  %6301 = vmatprep.mubr.f32.mxu1 %v2791_v20  ;;  %v2623_v23 = vpop.trf.xlu0  ;;  %6330 = vmatprep.mubr.f32.mxu0 %v8957_v18  ;;  %v2800_v24 = vsub.f32 %v8949_v29, %v2799_v17 }
 0x3d1   : > { %v2655_v13 = vsel %vm2632_vm2, %v2623_v23, 0 }
 0x3d2   : > { %v2809_v26 = vand.u32 4294901760, %v8960_v22  ;;  %v8968_v15 = vand.u32 4294901760, %v2655_v13  ;;  %v2801_v41 = vand.u32 4294901760, %v2800_v24 }
 0x3d4   : > { %v8971_v35 = vsub.f32 %v2655_v13, %v8968_v15  ;;  %6302 = vmatmul.mubr.f32.gmra.mrb[8].mxu1 %v2801_v41  ;;  %v2624_v27 = vpop.trf.xlu0  ;;  %6331 = vmatmul.mubr.f32.gmra.mrb[12].mxu0 %v8968_v15  ;;  %v2810_v33 = vsub.f32 %v8960_v22, %v2809_v26 }
 0x3d5   : > { %v2658_v40 = vsel %vm2632_vm2, %v2624_v27, 0 }
 0x3d6   : > { %v2819_v42 = vand.u32 4294901760, %v8971_v35  ;;  %v8979_v53 = vand.u32 4294901760, %v2658_v40  ;;  %v2811_v55 = vand.u32 4294901760, %v2810_v33 }
 0x3d8   : > { %v8982_v61 = vsub.f32 %v2658_v40, %v8979_v53  ;;  %6304 = vmatprep.mubr.f32.mxu1 %v2811_v55  ;;  %v2625_v50 = vpop.trf.xlu0  ;;  %6333 = vmatprep.mubr.f32.mxu0 %v8979_v53  ;;  %v2820_v54 = vsub.f32 %v8971_v35, %v2819_v42 }
 0x3d9   : > { %v2661_v7 = vsel %vm2632_vm2, %v2625_v50, 0 }
 0x3da   : > { %v2829_v8 = vand.u32 4294901760, %v8982_v61  ;;  %v8990_v12 = vand.u32 4294901760, %v2661_v7  ;;  %v2821_v9 = vand.u32 4294901760, %v2820_v54 }
 0x3dc   : > { %v8993_v38 = vsub.f32 %v2661_v7, %v8990_v12  ;;  %6305 = vmatmul.mubr.f32.gmra.mrb[10].mxu1 %v2821_v9  ;;  %v2626_v39 = vpop.trf.xlu0  ;;  %6334 = vmatmul.mubr.f32.gmra.mrb[14].mxu0 %v8990_v12  ;;  %v2830_v63 = vsub.f32 %v8982_v61, %v2829_v8 }
 0x3dd   : > { %v2664_v6 = vsel %vm2632_vm2, %v2626_v39, 0 }
 0x3de   : > { %v2839_v14 = vand.u32 4294901760, %v8993_v38  ;;  %v9001_v32 = vand.u32 4294901760, %v2664_v6  ;;  %v2831_v36 = vand.u32 4294901760, %v2830_v63 }
 0x3e0   : > { %v9004_v47 = vsub.f32 %v2664_v6, %v9001_v32  ;;  %6307 = vmatprep.mubr.f32.mxu1 %v2831_v36  ;;  %v2627_v46 = vpop.trf.xlu0  ;;  %6336 = vmatprep.mubr.f32.mxu0 %v9001_v32  ;;  %v2840_v49 = vsub.f32 %v8993_v38, %v2839_v14 }
 0x3e1   : > { %v2667_v25 = vsel %vm2632_vm2, %v2627_v46, 0 }
 0x3e2   : > { %v2849_v19 = vand.u32 4294901760, %v9004_v47  ;;  %v9012_v56 = vand.u32 4294901760, %v2667_v25  ;;  %v2841_v58 = vand.u32 4294901760, %v2840_v49 }
 0x3e4   : > { %v9015_v43 = vsub.f32 %v2667_v25, %v9012_v56  ;;  %6308 = vmatmul.mubr.f32.gmra.mrb[12].mxu1 %v2841_v58  ;;  %v2628_v30 = vpop.trf.xlu0  ;;  %6337 = vmatmul.mubr.f32.gmra.mrb[16].mxu0 %v9012_v56  ;;  %v2850_v10 = vsub.f32 %v9004_v47, %v2849_v19 }
 0x3e5   : > { %v2670_v16 = vsel %vm2632_vm2, %v2628_v30, 0 }
 0x3e6   : > { %v2859_v20 = vand.u32 4294901760, %v9015_v43  ;;  %v9023_v23 = vand.u32 4294901760, %v2670_v16  ;;  %v2851_v24 = vand.u32 4294901760, %v2850_v10 }
 0x3e8   : > { %v9026_v13 = vsub.f32 %v2670_v16, %v9023_v23  ;;  %6310 = vmatprep.mubr.f32.mxu1 %v2851_v24  ;;  %v2629_v41 = vpop.trf.xlu0  ;;  %6339 = vmatprep.mubr.f32.mxu0 %v9023_v23  ;;  %v2860_v27 = vsub.f32 %v9015_v43, %v2859_v20 }
 0x3e9   : > { %v2673_v33 = vsel %vm2632_vm2, %v2629_v41, 0 }
 0x3ea   : > { %v2869_v40 = vand.u32 4294901760, %v9026_v13  ;;  %v9034_v55 = vand.u32 4294901760, %v2673_v33  ;;  %v2861_v50 = vand.u32 4294901760, %v2860_v27 }
 0x3ec   : > { %v2878_v54 = vsub.f32 %v2673_v33, %v9034_v55  ;;  %6311 = vmatmul.mubr.f32.gmra.mrb[14].mxu1 %v2861_v50  ;;  %v2630_v7 = vpop.trf.xlu0  ;;  %6340 = vmatmul.mubr.f32.gmra.mrb[18].mxu0 %v9034_v55  ;;  %v2870_v9 = vsub.f32 %v9026_v13, %v2869_v40 }
 0x3ed   : > { %v2676_v39 = vsel %vm2632_vm2, %v2630_v7, 0 }
 0x3ee   : > { %v2879_v63 = vand.u32 4294901760, %v2878_v54  ;;  %v9042_v6 = vand.u32 4294901760, %v2676_v39  ;;  %v2871_v36 = vand.u32 4294901760, %v2870_v9 }
 0x3f0   : > { %v2888_v46 = vsub.f32 %v2676_v39, %v9042_v6  ;;  %6313 = vmatprep.mubr.f32.mxu1 %v2871_v36  ;;  %v2631_v49 = vpop.trf.xlu0  ;;  %6342 = vmatprep.mubr.f32.mxu0 %v9042_v6  ;;  %v2880_v25 = vsub.f32 %v2878_v54, %v2879_v63 }
 0x3f1   : > { %v2679_v58 = vsel %vm2632_vm2, %v2631_v49, 0 }
 0x3f2   : > { %v2889_v30 = vand.u32 4294901760, %v2888_v46  ;;  %v9047_v10 = vand.u32 4294901760, %v2679_v58  ;;  %v2881_v16 = vand.u32 4294901760, %v2880_v25 }
 0x3f4   : > { %v2898_v24 = vsub.f32 %v2679_v58, %v9047_v10  ;;  %6314 = vmatmul.mubr.f32.gmra.mrb[16].mxu1 %v2881_v16  ;;  %6343 = vmatmul.mubr.f32.gmra.mrb[20].mxu0 %v9047_v10  ;;  %v2890_v41 = vsub.f32 %v2888_v46, %v2889_v30 }
 0x3f5   : > { %6347 = vmatprep.mubr.f32.mxu0 %v8896_v5 }
 0x3f6   : > { %v2899_v27 = vand.u32 4294901760, %v2898_v24  ;;  %v2891_v33 = vand.u32 4294901760, %v2890_v41 }
 0x3f8   : > { %6316 = vmatprep.mubr.f32.mxu1 %v2891_v33  ;;  %6348 = vmatmul.mubr.f32.vlgmr.msra.gmra.mrb[6].mxu0 %v8904_v34  ;;  %v2900_v50 = vsub.f32 %v2898_v24, %v2899_v27 }
 0x3f9   : > { %6372 = vmatpush3.msra.mxu0 %v8880_v28  ;;  %6350 = vmatprep.mubr.f32.mxu0 %v8919_v21 }
 0x3fa   : > { %6397 = vmatprep.subr.mxu0 %v8885_v48  ;;  %v2901_v7 = vand.u32 4294901760, %v2900_v50 }
 0x3fc   : > { %6317 = vmatmul.mubr.f32.gmra.mrb[18].mxu1 %v2901_v7  ;;  %6351 = vmatmul.mubr.f32.gmra.mrb[8].mxu0 %v8927_v37 }
 0x3fd   : > { %6353 = vmatprep.mubr.f32.mxu0 %v8938_v52  ;;  %6481 = vmatprep.mubr.msk.f32.mxu1 %vm8079_vm0, %v8080_v1 }
 0x400   : > { %6354 = vmatmul.mubr.f32.gmra.mrb[10].mxu0 %v8949_v29 }
 0x401   : > { %6356 = vmatprep.mubr.f32.mxu0 %v8960_v22 }
 0x404   : > { %6357 = vmatmul.mubr.f32.gmra.mrb[12].mxu0 %v8971_v35 }
 0x405   : > { %6359 = vmatprep.mubr.f32.mxu0 %v8982_v61 }
 0x408   : > { %6360 = vmatmul.mubr.f32.gmra.mrb[14].mxu0 %v8993_v38 }
 0x409   : > { %6362 = vmatprep.mubr.f32.mxu0 %v9004_v47 }
 0x40c   : > { %6363 = vmatmul.mubr.f32.gmra.mrb[16].mxu0 %v9015_v43 }
 0x40d   : > { %6365 = vmatprep.mubr.f32.mxu0 %v9026_v13 }
 0x410   : > { %6366 = vmatmul.mubr.f32.gmra.mrb[18].mxu0 %v2878_v54 }
 0x411   : > { %6368 = vmatprep.mubr.f32.mxu0 %v2888_v46 }
 0x414   : > { %6369 = vmatmul.mubr.f32.gmra.mrb[20].mxu0 %v2898_v24 }
 0x415   : > { %6373 = vmatprep.mubr.f32.mxu0 %v2749_v31 }
 0x418   : > { %6374 = vmatmul.mubr.f32.vlgmr.msra.gmra.mrb[6].mxu0 %v2759_v57 }
 0x419   : > { %6398 = vmatpush3.msra.mxu0 %v8885_v48  ;;  %6376 = vmatprep.mubr.f32.mxu0 %v2769_v44 }
 0x41a   : > { %6423 = vmatprep.subr.mxu0 %v8880_v28 }
 0x41c   : > { %6377 = vmatmul.mubr.f32.gmra.mrb[8].mxu0 %v2779_v60 }
 0x41d   : > { %6379 = vmatprep.mubr.f32.mxu0 %v2789_v2 }
 0x420   : > { %6380 = vmatmul.mubr.f32.gmra.mrb[10].mxu0 %v2799_v17 }
 0x421   : > { %6382 = vmatprep.mubr.f32.mxu0 %v2809_v26 }
 0x424   : > { %6383 = vmatmul.mubr.f32.gmra.mrb[12].mxu0 %v2819_v42 }
 0x425   : > { %6385 = vmatprep.mubr.f32.mxu0 %v2829_v8 }
 0x428   : > { %6386 = vmatmul.mubr.f32.gmra.mrb[14].mxu0 %v2839_v14 }
 0x429   : > { %6388 = vmatprep.mubr.f32.mxu0 %v2849_v19 }
 0x42c   : > { %6389 = vmatmul.mubr.f32.gmra.mrb[16].mxu0 %v2859_v20 }
 0x42d   : > { %6391 = vmatprep.mubr.f32.mxu0 %v2869_v40 }
 0x430   : > { %6392 = vmatmul.mubr.f32.gmra.mrb[18].mxu0 %v2879_v63 }
 0x431   : > { %6394 = vmatprep.mubr.f32.mxu0 %v2889_v30 }
 0x434   : > { %6395 = vmatmul.mubr.f32.gmra.mrb[20].mxu0 %v2899_v27 }
 0x435   : > { %6399 = vmatprep.mubr.f32.mxu0 %v8893_v4 }
 0x438   : > { %6400 = vmatmul.mubr.f32.vlgmr.msra.gmra.mrb[6].mxu0 %v8901_v3 }
 0x439   : > { %6424 = vmatpush3.msra.mxu0 %v8880_v28  ;;  %6402 = vmatprep.mubr.f32.mxu0 %v8912_v62 }
 0x43a   : > { %7247 = vmatprep.subr.bf16.mxu0 %v8078_v0 }
 0x43c   : > { %6403 = vmatmul.mubr.f32.gmra.mrb[8].mxu0 %v8924_v45 }
 0x43d   : > { %6405 = vmatprep.mubr.f32.mxu0 %v8935_v51 }
 0x440   : > { %6406 = vmatmul.mubr.f32.gmra.mrb[10].mxu0 %v8946_v11 }
 0x441   : > { %6408 = vmatprep.mubr.f32.mxu0 %v8957_v18 }
 0x444   : > { %6409 = vmatmul.mubr.f32.gmra.mrb[12].mxu0 %v8968_v15 }
 0x445   : > { %6411 = vmatprep.mubr.f32.mxu0 %v8979_v53 }
 0x448   : > { %6412 = vmatmul.mubr.f32.gmra.mrb[14].mxu0 %v8990_v12 }
 0x449   : > { %6414 = vmatprep.mubr.f32.mxu0 %v9001_v32 }
 0x44c   : > { %6415 = vmatmul.mubr.f32.gmra.mrb[16].mxu0 %v9012_v56 }
 0x44d   : > { %6417 = vmatprep.mubr.f32.mxu0 %v9023_v23 }
 0x450   : > { %6418 = vmatmul.mubr.f32.gmra.mrb[18].mxu0 %v9034_v55 }
 0x451   : > { %6420 = vmatprep.mubr.f32.mxu0 %v9042_v6 }
 0x454   : > { %6421 = vmatmul.mubr.f32.gmra.mrb[20].mxu0 %v9047_v10 }
 0x455   : > { %6425 = vmatprep.mubr.f32.mxu0 %v8893_v4 }
 0x458   : > { %6426 = vmatmul.mubr.f32.vlgmr.msra.gmra.mrb[6].mxu0 %v8901_v3 }
 0x459   : > { %6428 = vmatprep.mubr.f32.mxu0 %v8912_v62 }
 0x45c   : > { %6429 = vmatmul.mubr.f32.gmra.mrb[8].mxu0 %v8924_v45 }
 0x45d   : > { %6431 = vmatprep.mubr.f32.mxu0 %v8935_v51 }
 0x460   : > { %6432 = vmatmul.mubr.f32.gmra.mrb[10].mxu0 %v8946_v11 }
 0x461   : > { %6434 = vmatprep.mubr.f32.mxu0 %v8957_v18 }
 0x464   : > { %6435 = vmatmul.mubr.f32.gmra.mrb[12].mxu0 %v8968_v15 }
 0x465   : > { %6437 = vmatprep.mubr.f32.mxu0 %v8979_v53 }
 0x468   : > { %6438 = vmatmul.mubr.f32.gmra.mrb[14].mxu0 %v8990_v12 }
 0x469   : > { %6440 = vmatprep.mubr.f32.mxu0 %v9001_v32 }
 0x46c   : > { %6441 = vmatmul.mubr.f32.gmra.mrb[16].mxu0 %v9012_v56 }
 0x46d   : > { %6443 = vmatprep.mubr.f32.mxu0 %v9023_v23 }
 0x470   : > { %6444 = vmatmul.mubr.f32.gmra.mrb[18].mxu0 %v9034_v55 }
 0x471   : > { %6446 = vmatprep.mubr.f32.mxu0 %v9042_v6 }
 0x474   : > { %6447 = vmatmul.mubr.f32.gmra.mrb[20].mxu0 %v9047_v10 }
 0x475   : > { %6691 = vmatprep.mubr.msk.f32.mxu0 %vm8079_vm0, %v8080_v1 }
 0x497   : > { %v6297_v28 = vpop.f32.mrb[4].mxu1 }
 0x498   : > { %v2753_v48 = vpop.f32.mrb[5].mxu1 }
 0x49f   : > { %v6300_v4 = vpop.f32.mrb[6].mxu1 }
 0x4a0   : > { %v2773_v5 = vpop.f32.mrb[7].mxu1 }
 0x4a7   : > { %v6303_v31 = vpop.f32.mrb[8].mxu1 }
 0x4a8   : > { %v2793_v3 = vpop.f32.mrb[9].mxu1 }
 0x4af   : > { %v6306_v34 = vpop.f32.mrb[10].mxu1 }
 0x4b0   : > { %v2813_v57 = vpop.f32.mrb[11].mxu1 }
 0x4b7   : > { %v9132_v62 = vpop.f32.mrb[12].mxu1 }
 0x4b8   : > { %v9134_v21 = vpop.f32.mrb[13].mxu1 }
 0x4bf   : > { %v9136_v44 = vpop.f32.mrb[14].mxu1 }
 0x4c0   : > { %v9138_v45 = vpop.f32.mrb[15].mxu1 }
 0x4c7   : > { %v9140_v37 = vpop.f32.mrb[16].mxu1 }
 0x4c8   : > { %v9142_v60 = vpop.f32.mrb[17].mxu1 }
 0x4cf   : > { %v9144_v51 = vpop.f32.mrb[18].mxu1 }
 0x4d0   : > { %v9146_v52 = vpop.f32.mrb[19].mxu1 }
 0x52b   : > { %v6427_v2 = vpop.f32.mrb[6].mxu0 }
 0x52c   : > { %v7434_v11 = vadd.f32 %v6427_v2, %v6297_v28  ;;  %v3678_v29 = vpop.f32.mrb[7].mxu0 }
 0x52d   : > { %v7435_v17 = vadd.f32 %v3678_v29, %v2753_v48 }
 0x52e   : > { %v3776_v18 = vand.u32 4294901760, %v7434_v11 }
 0x52f   : > { %v3773_v22 = vand.u32 4294901760, %v7435_v17  ;;  %v6430_v26 = vpop.f32.mrb[8].mxu0 }
 0x530   : > { %v9148_v15 = vsub.f32 %v7434_v11, %v3776_v18  ;;  %v7436_v35 = vadd.f32 %v6430_v26, %v6300_v4  ;;  %v3690_v42 = vpop.f32.mrb[9].mxu0 }
 0x531   : > { %v9150_v53 = vpack.c.bf16 %v3776_v18, %v3773_v22  ;;  %v9152_v61 = vsub.f32 %v7435_v17, %v3773_v22  ;;  %v7437_v8 = vadd.f32 %v3690_v42, %v2773_v5 }
 0x532   : > { %v3873_v12 = vand.u32 4294901760, %v9148_v15  ;;  %v3782_v38 = vand.u32 4294901760, %v7436_v35 }
 0x533   : > { %v3866_v14 = vand.u32 4294901760, %v9152_v61  ;;  %v7152_v32 = vpack.c.bf16 %v9148_v15, %v9152_v61  ;;  %v3779_v47 = vand.u32 4294901760, %v7437_v8  ;;  %v6433_v19 = vpop.f32.mrb[10].mxu0  ;;  %7105 = vmatpush3.bf16.xpose.msra.mxu1 %v9150_v53 }
 0x534   : > { %v3874_v56 = vsub.f32 %v9148_v15, %v3873_v12  ;;  %v9160_v43 = vsub.f32 %v7436_v35, %v3782_v38  ;;  %v7438_v20 = vadd.f32 %v6433_v19, %v6303_v31  ;;  %v3702_v23 = vpop.f32.mrb[11].mxu0  ;;  %7106 = vmatprep.subr.bf16.mxu1 %v8078_v0 }
 0x535   : > { %v3867_v13 = vsub.f32 %v9152_v61, %v3866_v14  ;;  %v9164_v40 = vpack.c.bf16 %v3782_v38, %v3779_v47  ;;  %v9166_v55 = vsub.f32 %v7437_v8, %v3779_v47  ;;  %v7439_v54 = vadd.f32 %v3702_v23, %v2793_v3  ;;  %v4419_v61 = vld [vmem:[#allocation13] sm:$0xff] }
 0x536   : > { %v3875_v9 = vand.u32 4294901760, %v3874_v56  ;;  %v3887_v39 = vand.u32 4294901760, %v9160_v43  ;;  %v3788_v63 = vand.u32 4294901760, %v7438_v20  ;;  %v9169_v6 = vpack.c.bf16 %v3873_v12, %v3866_v14 }
 0x537   : > { %v3868_v36 = vand.u32 4294901760, %v3867_v13  ;;  %v3880_v46 = vand.u32 4294901760, %v9166_v55  ;;  %v7155_v49 = vpack.c.bf16 %v9160_v43, %v9166_v55  ;;  %v3785_v25 = vand.u32 4294901760, %v7439_v54  ;;  %v6436_v58 = vpop.f32.mrb[12].mxu0 }
 0x538   : > { %v3888_v30 = vsub.f32 %v9160_v43, %v3887_v39  ;;  %v9175_v10 = vsub.f32 %v7438_v20, %v3788_v63  ;;  %v7440_v16 = vadd.f32 %v6436_v58, %v6306_v34  ;;  %v3714_v24 = vpop.f32.mrb[13].mxu0  ;;  %v4421_v43 = vld [vmem:[#allocation13 + $0x10] sm:$0xff] }
 0x539   : > { %v3881_v41 = vsub.f32 %v9166_v55, %v3880_v46  ;;  %v9178_v27 = vpack.c.bf16 %v3788_v63, %v3785_v25  ;;  %v9180_v33 = vsub.f32 %v7439_v54, %v3785_v25  ;;  %v7441_v50 = vadd.f32 %v3714_v24, %v2813_v57 }
 0x53a   : > { %v3889_v7 = vand.u32 4294901760, %v3888_v30  ;;  %v3901_v28 = vand.u32 4294901760, %v9175_v10  ;;  %v3794_v48 = vand.u32 4294901760, %v7440_v16  ;;  %v9183_v4 = vpack.c.bf16 %v3875_v9, %v3868_v36 }
 0x53b   : > { %v3882_v5 = vand.u32 4294901760, %v3881_v41  ;;  %v3894_v31 = vand.u32 4294901760, %v9180_v33  ;;  %v7158_v3 = vpack.c.bf16 %v9175_v10, %v9180_v33  ;;  %v3791_v34 = vand.u32 4294901760, %v7441_v50  ;;  %v6439_v2 = vpop.f32.mrb[14].mxu0  ;;  %7108 = vmatpush3.bf16.xpose.msra.mxu1 %v9164_v40 }
 0x53c   : > { %v3902_v11 = vsub.f32 %v9175_v10, %v3901_v28  ;;  %v9190_v29 = vsub.f32 %v7440_v16, %v3794_v48  ;;  %v7442_v57 = vadd.f32 %v6439_v2, %v9132_v62  ;;  %v3726_v17 = vpop.f32.mrb[15].mxu0  ;;  %7109 = vmatprep.subr.bf16.mxu1 %v8078_v0  ;;  %v9194_v18 = vpack.c.bf16 %v3887_v39, %v3880_v46  ;;  %v4422_v10 = vld [vmem:[#allocation13 + $0x18] sm:$0xff] }
 0x53d   : > { %v3895_v22 = vsub.f32 %v9180_v33, %v3894_v31  ;;  %v9197_v26 = vpack.c.bf16 %v3794_v48, %v3791_v34  ;;  %v9199_v35 = vsub.f32 %v7441_v50, %v3791_v34  ;;  %v7443_v42 = vadd.f32 %v3726_v17, %v9134_v21 }
 0x53e   : > { %v3903_v8 = vand.u32 4294901760, %v3902_v11  ;;  %v3915_v12 = vand.u32 4294901760, %v9190_v29  ;;  %v3800_v38 = vand.u32 4294901760, %v7442_v57  ;;  %v9203_v14 = vpack.c.bf16 %v3889_v7, %v3882_v5 }
 0x53f   : > { %v3896_v62 = vand.u32 4294901760, %v3895_v22  ;;  %v3908_v47 = vand.u32 4294901760, %v9199_v35  ;;  %v7161_v19 = vpack.c.bf16 %v9190_v29, %v9199_v35  ;;  %v3797_v56 = vand.u32 4294901760, %v7443_v42  ;;  %v6442_v20 = vpop.f32.mrb[16].mxu0 }
 0x540   : > { %v3916_v23 = vsub.f32 %v9190_v29, %v3915_v12  ;;  %v9209_v13 = vsub.f32 %v7442_v57, %v3800_v38  ;;  %v7444_v21 = vadd.f32 %v6442_v20, %v9136_v44  ;;  %v3738_v54 = vpop.f32.mrb[17].mxu0  ;;  %v9212_v9 = vpack.c.bf16 %v3901_v28, %v3894_v31 }
 0x541   : > { %v3909_v39 = vsub.f32 %v9199_v35, %v3908_v47  ;;  %v9215_v63 = vpack.c.bf16 %v3800_v38, %v3797_v56  ;;  %v9217_v36 = vsub.f32 %v7443_v42, %v3797_v56  ;;  %v7445_v46 = vadd.f32 %v3738_v54, %v9138_v45 }
 0x542   : > { %v3917_v25 = vand.u32 4294901760, %v3916_v23  ;;  %v3929_v58 = vand.u32 4294901760, %v9209_v13  ;;  %v3806_v30 = vand.u32 4294901760, %v7444_v21  ;;  %v9221_v16 = vpack.c.bf16 %v3903_v8, %v3896_v62 }
 0x543   : > { %v3910_v24 = vand.u32 4294901760, %v3909_v39  ;;  %v3922_v44 = vand.u32 4294901760, %v9217_v36  ;;  %v7164_v41 = vpack.c.bf16 %v9209_v13, %v9217_v36  ;;  %v3803_v50 = vand.u32 4294901760, %v7445_v46  ;;  %v6445_v7 = vpop.f32.mrb[18].mxu0  ;;  %7111 = vmatpush3.bf16.xpose.msra.mxu1 %v9178_v27 }
 0x544   : > { %v3930_v28 = vsub.f32 %v9209_v13, %v3929_v58  ;;  %v9228_v48 = vsub.f32 %v7444_v21, %v3806_v30  ;;  %v7446_v45 = vadd.f32 %v6445_v7, %v9140_v37  ;;  %v3750_v5 = vpop.f32.mrb[19].mxu0  ;;  %7112 = vmatprep.subr.bf16.mxu1 %v8078_v0  ;;  %v9232_v31 = vpack.c.bf16 %v3915_v12, %v3908_v47  ;;  %v4426_v13 = vld [vmem:[#allocation13 + $0x38] sm:$0xff] }
 0x545   : > { %v3923_v34 = vsub.f32 %v9217_v36, %v3922_v44  ;;  %v9235_v2 = vpack.c.bf16 %v3806_v30, %v3803_v50  ;;  %v9237_v11 = vsub.f32 %v7445_v46, %v3803_v50  ;;  %v7447_v57 = vadd.f32 %v3750_v5, %v9142_v60  ;;  %v4427_v36 = vld [vmem:[#allocation13 + $0x40] sm:$0xff] }
 0x546   : > { %v3931_v17 = vand.u32 4294901760, %v3930_v28  ;;  %v3943_v22 = vand.u32 4294901760, %v9228_v48  ;;  %v3812_v42 = vand.u32 4294901760, %v7446_v45  ;;  %v9241_v8 = vpack.c.bf16 %v3917_v25, %v3910_v24 }
 0x547   : > { %v3924_v37 = vand.u32 4294901760, %v3923_v34  ;;  %v3936_v38 = vand.u32 4294901760, %v9237_v11  ;;  %v3809_v62 = vand.u32 4294901760, %v7447_v57  ;;  %v6448_v47 = vpop.f32.mrb[20].mxu0  ;;  %v9250_v21 = vpack.c.bf16 %v3929_v58, %v3922_v44 }
 0x548   : > { %v3944_v56 = vsub.f32 %v9228_v48, %v3943_v22  ;;  %v9247_v20 = vsub.f32 %v7446_v45, %v3812_v42  ;;  %v7448_v60 = vadd.f32 %v6448_v47, %v9144_v51  ;;  %v3762_v23 = vpop.f32.mrb[21].mxu0  ;;  %v4436_v55 = vand.u32 4294901760, %v4419_v61 }
 0x549   : > { %v3937_v54 = vsub.f32 %v9237_v11, %v3936_v38  ;;  %v9253_v39 = vpack.c.bf16 %v3812_v42, %v3809_v62  ;;  %v9255_v46 = vsub.f32 %v7447_v57, %v3809_v62  ;;  %v7449_v25 = vadd.f32 %v3762_v23, %v9146_v52 }
 0x54a   : > { %v3945_v30 = vand.u32 4294901760, %v3944_v56  ;;  %v3957_v24 = vand.u32 4294901760, %v9247_v20  ;;  %v3818_v50 = vand.u32 4294901760, %v7448_v60  ;;  %v7140_v7 = vpack.c.bf16 %v3931_v17, %v3924_v37 }
 0x54b   : > { %v3938_v28 = vand.u32 4294901760, %v3937_v54  ;;  %v3950_v45 = vand.u32 4294901760, %v9255_v46  ;;  %v3815_v58 = vand.u32 4294901760, %v7449_v25  ;;  %7114 = vmatpush3.bf16.xpose.msra.mxu1 %v9197_v26  ;;  %v9267_v52 = vpack.c.bf16 %v3943_v22, %v3936_v38 }
 0x54c   : > { %v3958_v44 = vsub.f32 %v9247_v20, %v3957_v24  ;;  %v9264_v5 = vsub.f32 %v7448_v60, %v3818_v50  ;;  %7115 = vmatprep.subr.bf16.mxu1 %v8078_v0  ;;  %v9775_v15 = vpack.c.bf16 %v9247_v20, %v9255_v46  ;;  %v4442_v33 = vand.u32 4294901760, %v4421_v43 }
 0x54d   : > { %v3951_v34 = vsub.f32 %v9255_v46, %v3950_v45  ;;  %v9270_v57 = vpack.c.bf16 %v3818_v50, %v3815_v58  ;;  %v3963_v17 = vsub.f32 %v7449_v25, %v3815_v58  ;;  %v7143_v42 = vpack.c.bf16 %v3945_v30, %v3938_v28 }
 0x54e   : > { %v3959_v37 = vand.u32 4294901760, %v3958_v44  ;;  %v3971_v62 = vand.u32 4294901760, %v9264_v5  ;;  %v9273_v47 = vpack.c.bf16 %v3957_v24, %v3950_v45  ;;  %v9284_v30 = vand.u32 4294901760, %v8889_v59 }
 0x54f   : > { %v3952_v56 = vand.u32 4294901760, %v3951_v34  ;;  %v3964_v23 = vand.u32 4294901760, %v3963_v17  ;;  %v7173_v60 = vpack.c.bf16 %v9264_v5, %v3963_v17  ;;  %v4445_v29 = vand.u32 4294901760, %v4422_v10 }
 0x550   : > { %v3972_v54 = vsub.f32 %v9264_v5, %v3971_v62  ;;  %v3854_v24 = vsub.f32 %v8889_v59, %v9284_v30  ;;  %v9774_v59 = vpack.c.bf16 %v9228_v48, %v9237_v11  ;;  %v9366_v48 = vsub.f32 %v4421_v43, %v4442_v33  ;;  %v4428_v11 = vld [vmem:[#allocation13 + $0x48] sm:$0xff] }
 0x551   : > { %v3965_v51 = vsub.f32 %v3963_v17, %v3964_v23  ;;  %v7146_v22 = vpack.c.bf16 %v3959_v37, %v3952_v56  ;;  %v9277_v38 = vpack.c.bf16 %v3971_v62, %v3964_v23  ;;  %v9370_v20 = vsub.f32 %v4422_v10, %v4445_v29 }
 0x552   : > { %v3973_v12 = vand.u32 4294901760, %v3972_v54  ;;  %v3855_v28 = vand.u32 4294901760, %v3854_v24  ;;  %v4457_v58 = vand.u32 4294901760, %v4426_v13  ;;  %v4460_v44 = vand.u32 4294901760, %v4427_v36 }
 0x553   : > { %v3966_v50 = vand.u32 4294901760, %v3965_v51  ;;  %7117 = vmatpush3.bf16.xpose.msra.mxu1 %v9215_v63  ;;  %v4463_v5 = vand.u32 4294901760, %v4428_v11 }
 0x554   : > { %7118 = vmatprep.subr.bf16.mxu1 %v8078_v0  ;;  %v3856_v45 = vsub.f32 %v3854_v24, %v3855_v28  ;;  %v9380_v17 = vsub.f32 %v4426_v13, %v4457_v58 }
 0x555   : > { %v7149_v25 = vpack.c.bf16 %v3973_v12, %v3966_v50  ;;  %v9384_v37 = vsub.f32 %v4428_v11, %v4463_v5  ;;  %v9398_v23 = vpack.c.bf16 %v4463_v5, %v4460_v44 }
 0x556   : > { %v3857_v12 = vand.u32 4294901760, %v3856_v45  ;;  %v4578_v11 = vand.u32 4294901760, %v9380_v17 }
 0x55b   : > { %7120 = vmatpush3.bf16.xpose.msra.mxu1 %v9235_v2 }
 0x55c   : > { %7121 = vmatprep.subr.bf16.mxu1 %v8078_v0 }
 0x563   : > { %7123 = vmatpush3.bf16.xpose.msra.mxu1 %v9253_v39 }
 0x564   : > { %7124 = vmatprep.subr.bf16.mxu1 %v8078_v0 }
 0x56b   : > { %7126 = vmatpush3.bf16.xpose.msra.mxu1 %v9270_v57 }
 0x56c   : > { %7127 = vmatprep.subr.bf16.mxu1 %v8078_v0 }
 0x572   : > { %6482 = vmatmul.mubr.f32.vlgmr.msra.gmra.mrb[20].mxu1 %v3857_v12 }
 0x573   : > { %7129 = vmatpush3.bf16.xpose.msra.mxu1 %v9183_v4  ;;  %6516 = vmatprep.mubr.msk.f32.mxu1 %vm8079_vm0, %v8080_v1  ;;  %v4423_v4 = vld [vmem:[#allocation13 + $0x20] sm:$0xff] }
 0x574   : > { %7130 = vmatprep.subr.bf16.mxu1 %v8078_v0  ;;  %v4448_v35 = vand.u32 4294901760, %v4423_v4 }
 0x576   : > { %v9372_v46 = vsub.f32 %v4423_v4, %v4448_v35 }
 0x578   : > { %v4557_v10 = vand.u32 4294901760, %v9372_v46 }
 0x57b   : > { %7132 = vmatpush3.bf16.xpose.msra.mxu1 %v9203_v14 }
 0x57c   : > { %7133 = vmatprep.subr.bf16.mxu1 %v8078_v0 }
 0x583   : > { %7135 = vmatpush3.bf16.xpose.msra.mxu1 %v9221_v16 }
 0x584   : > { %7136 = vmatprep.subr.bf16.mxu1 %v8078_v0 }
 0x58b   : > { %7138 = vmatpush3.bf16.xpose.msra.mxu1 %v9241_v8  ;;  %v9368_v8 = vpack.c.bf16 %v4445_v29, %v4442_v33  ;;  %v4558_v29 = vsub.f32 %v9372_v46, %v4557_v10 }
 0x58c   : > { %7139 = vmatprep.subr.bf16.mxu1 %v8078_v0 }
 0x593   : > { %7141 = vmatpush3.bf16.xpose.msra.mxu1 %v7140_v7 }
 0x594   : > { %7142 = vmatprep.subr.bf16.mxu1 %v8078_v0 }
 0x59b   : > { %7144 = vmatpush3.bf16.xpose.msra.mxu1 %v7143_v42  ;;  %v9382_v42 = vsub.f32 %v4427_v36, %v4460_v44  ;;  %v4579_v44 = vsub.f32 %v9380_v17, %v4578_v11 }
 0x59c   : > { %7145 = vmatprep.subr.bf16.mxu1 %v8078_v0 }
 0x5a3   : > { %7147 = vmatpush3.bf16.xpose.msra.mxu1 %v7146_v22 }
 0x5a4   : > { %7148 = vmatprep.subr.bf16.mxu1 %v8078_v0 }
 0x5ab   : > { %7150 = vmatpush3.bf16.xpose.msra.mxu1 %v7149_v25 }
 0x5ac   : > { %7151 = vmatprep.subr.bf16.mxu1 %v8078_v0 }
 0x5b2   : > { %6517 = vmatmul.mubr.f32.vlgmr.msra.gmra.mrb[20].mxu1 %v9284_v30 }
 0x5b3   : > { %7153 = vmatpush3.bf16.xpose.msra.mxu1 %v7152_v32  ;;  %6551 = vmatprep.mubr.msk.f32.mxu1 %vm8079_vm0, %v8080_v1  ;;  %v4420_v32 = vld [vmem:[#allocation13 + $0x8] sm:$0xff] }
 0x5b4   : > { %7154 = vmatprep.subr.bf16.mxu1 %v8078_v0 }
 0x5bb   : > { %7156 = vmatpush3.bf16.xpose.msra.mxu1 %v7155_v49  ;;  %v4439_v49 = vand.u32 4294901760, %v4420_v32 }
 0x5bc   : > { %7157 = vmatprep.subr.bf16.mxu1 %v8078_v0 }
 0x5bd   : > { %v9360_v16 = vpack.c.bf16 %v4439_v49, %v4436_v55 }
 0x5bf   : > { %7249 = vmatpush3.bf16.msra.mxu0 %v9360_v16 }
 0x5c0   : > { %7250 = vmatprep.subr.bf16.mxu0 %v8078_v0 }
 0x5c3   : > { %7159 = vmatpush3.bf16.xpose.msra.mxu1 %v7158_v3  ;;  %v4424_v3 = vld [vmem:[#allocation13 + $0x28] sm:$0xff]  ;;  %7252 = vmatpush3.bf16.msra.mxu0 %v9368_v8 }
 0x5c4   : > { %7160 = vmatprep.subr.bf16.mxu1 %v8078_v0  ;;  %v4451_v14 = vand.u32 4294901760, %v4424_v3  ;;  %7253 = vmatprep.subr.bf16.mxu0 %v8078_v0 }
 0x5c6   : > { %v9375_v7 = vsub.f32 %v4424_v3, %v4451_v14  ;;  %v9388_v62 = vpack.c.bf16 %v4451_v14, %v4448_v35 }
 0x5c8   : > { %7255 = vmatpush3.bf16.msra.mxu0 %v9388_v62  ;;  %v4564_v33 = vand.u32 4294901760, %v9375_v7 }
 0x5c9   : > { %7256 = vmatprep.subr.bf16.mxu0 %v8078_v0 }
 0x5ca   : > { %v4565_v35 = vsub.f32 %v9375_v7, %v4564_v33 }
 0x5cb   : > { %7162 = vmatpush3.bf16.xpose.msra.mxu1 %v7161_v19  ;;  %v4425_v19 = vld [vmem:[#allocation13 + $0x30] sm:$0xff] }
 0x5cc   : > { %7163 = vmatprep.subr.bf16.mxu1 %v8078_v0  ;;  %v4454_v51 = vand.u32 4294901760, %v4425_v19  ;;  %v4566_v13 = vand.u32 4294901760, %v4565_v35 }
 0x5ce   : > { %v9378_v34 = vsub.f32 %v4425_v19, %v4454_v51  ;;  %v9393_v56 = vpack.c.bf16 %v4457_v58, %v4454_v51  ;;  %v4559_v19 = vand.u32 4294901760, %v4558_v29 }
 0x5d0   : > { %7258 = vmatpush3.bf16.msra.mxu0 %v9393_v56  ;;  %v4571_v36 = vand.u32 4294901760, %v9378_v34  ;;  %v7278_v51 = vpack.c.bf16 %v4566_v13, %v4559_v19 }
 0x5d1   : > { %7259 = vmatprep.subr.bf16.mxu0 %v8078_v0 }
 0x5d2   : > { %v4572_v58 = vsub.f32 %v9378_v34, %v4571_v36 }
 0x5d3   : > { %7165 = vmatpush3.bf16.xpose.msra.mxu1 %v7164_v41  ;;  %v9364_v41 = vsub.f32 %v4420_v32, %v4439_v49  ;;  %v4550_v32 = vand.u32 4294901760, %v9370_v20 }
 0x5d4   : > { %7166 = vmatprep.subr.bf16.mxu1 %v8078_v0  ;;  %7261 = vmatpush3.bf16.msra.mxu0 %v9398_v23  ;;  %v4573_v5 = vand.u32 4294901760, %v4572_v58 }
 0x5d5   : > { %7262 = vmatprep.subr.bf16.mxu0 %v8078_v0  ;;  %v4536_v54 = vand.u32 4294901760, %v9364_v41  ;;  %v4551_v49 = vsub.f32 %v9370_v20, %v4550_v32 }
 0x5d7   : > { %v4537_v50 = vsub.f32 %v9364_v41, %v4536_v54  ;;  %v4552_v3 = vand.u32 4294901760, %v4551_v49 }
 0x5db   : > { %7168 = vmatpush3.bf16.xpose.msra.mxu1 %v9774_v59 }
 0x5dc   : > { %7169 = vmatprep.subr.bf16.mxu1 %v8078_v0 }
 0x5e3   : > { %7171 = vmatpush3.bf16.xpose.msra.mxu1 %v9775_v15  ;;  %v4538_v15 = vand.u32 4294901760, %v4537_v50 }
 0x5e4   : > { %7172 = vmatprep.subr.bf16.mxu1 %v8078_v0 }
 0x5eb   : > { %7174 = vmatpush3.bf16.xpose.msra.mxu1 %v7173_v60 }
 0x5ec   : > { %7175 = vmatprep.subr.bf16.mxu1 %v8078_v0 }
 0x5f2   : > { %6552 = vmatmul.mubr.f32.vlgmr.msra.gmra.mrb[20].mxu1 %v3854_v24 }
 0x5f3   : > { %7177 = vmatpush3.bf16.xpose.msra.mxu1 %v9150_v53  ;;  %6586 = vmatprep.mubr.msk.f32.mxu1 %vm8079_vm0, %v8080_v1 }
 0x5f4   : > { %7178 = vmatprep.subr.bf16.mxu1 %v8078_v0 }
 0x5fb   : > { %7180 = vmatpush3.bf16.xpose.msra.mxu1 %v9164_v40 }
 0x5fc   : > { %7181 = vmatprep.subr.bf16.mxu1 %v8078_v0 }
 0x603   : > { %7183 = vmatpush3.bf16.xpose.msra.mxu1 %v9178_v27 }
 0x604   : > { %7184 = vmatprep.subr.bf16.mxu1 %v8078_v0 }
 0x60b   : > { %7186 = vmatpush3.bf16.xpose.msra.mxu1 %v9197_v26 }
 0x60c   : > { %7187 = vmatprep.subr.bf16.mxu1 %v8078_v0 }
 0x613   : > { %7189 = vmatpush3.bf16.xpose.msra.mxu1 %v9215_v63 }
 0x614   : > { %7190 = vmatprep.subr.bf16.mxu1 %v8078_v0 }
 0x61b   : > { %7192 = vmatpush3.bf16.xpose.msra.mxu1 %v9235_v2 }
 0x61c   : > { %7193 = vmatprep.subr.bf16.mxu1 %v8078_v0 }
 0x623   : > { %7195 = vmatpush3.bf16.xpose.msra.mxu1 %v9253_v39 }
 0x624   : > { %7196 = vmatprep.subr.bf16.mxu1 %v8078_v0 }
 0x62b   : > { %7198 = vmatpush3.bf16.xpose.msra.mxu1 %v9270_v57 }
 0x62c   : > { %7199 = vmatprep.subr.bf16.mxu1 %v8078_v0 }
 0x632   : > { %6587 = vmatmul.mubr.f32.vlgmr.msra.gmra.mrb[20].mxu1 %v3855_v28 }
 0x633   : > { %7201 = vmatpush3.bf16.xpose.msra.mxu1 %v9169_v6  ;;  %6621 = vmatprep.mubr.msk.f32.mxu1 %vm8079_vm0, %v8080_v1  ;;  %v9362_v6 = vsub.f32 %v4419_v61, %v4436_v55  ;;  %v4543_v61 = vand.u32 4294901760, %v9366_v48 }
 0x634   : > { %7202 = vmatprep.subr.bf16.mxu1 %v8078_v0 }
 0x635   : > { %v4529_v60 = vand.u32 4294901760, %v9362_v6  ;;  %v4544_v55 = vsub.f32 %v9366_v48, %v4543_v61 }
 0x637   : > { %v4545_v4 = vand.u32 4294901760, %v4544_v55 }
 0x639   : > { %v9483_v14 = vpack.c.bf16 %v4552_v3, %v4545_v4 }
 0x63b   : > { %7204 = vmatpush3.bf16.xpose.msra.mxu1 %v9194_v18 }
 0x63c   : > { %7205 = vmatprep.subr.bf16.mxu1 %v8078_v0 }
 0x643   : > { %7207 = vmatpush3.bf16.xpose.msra.mxu1 %v9212_v9  ;;  %v4431_v9 = vld [vmem:[#allocation13 + $0x60] sm:$0xff] }
 0x644   : > { %7208 = vmatprep.subr.bf16.mxu1 %v8078_v0 }
 0x64b   : > { %7210 = vmatpush3.bf16.xpose.msra.mxu1 %v9232_v31  ;;  %v4472_v31 = vand.u32 4294901760, %v4431_v9 }
 0x64c   : > { %7211 = vmatprep.subr.bf16.mxu1 %v8078_v0 }
 0x64d   : > { %v9455_v24 = vsub.f32 %v4431_v9, %v4472_v31 }
 0x653   : > { %7213 = vmatpush3.bf16.xpose.msra.mxu1 %v9250_v21 }
 0x654   : > { %7214 = vmatprep.subr.bf16.mxu1 %v8078_v0 }
 0x65b   : > { %7216 = vmatpush3.bf16.xpose.msra.mxu1 %v9267_v52  ;;  %v4434_v52 = vld [vmem:[#allocation13 + $0x78] sm:$0xff] }
 0x65c   : > { %7217 = vmatprep.subr.bf16.mxu1 %v8078_v0 }
 0x663   : > { %7219 = vmatpush3.bf16.xpose.msra.mxu1 %v9273_v47  ;;  %v4481_v47 = vand.u32 4294901760, %v4434_v52 }
 0x664   : > { %7220 = vmatprep.subr.bf16.mxu1 %v8078_v0 }
 0x665   : > { %v9462_v12 = vsub.f32 %v4434_v52, %v4481_v47 }
 0x667   : > { %v9743_v13 = vand.u32 4294901760, %v9462_v12 }
 0x66b   : > { %7222 = vmatpush3.bf16.xpose.msra.mxu1 %v9277_v38  ;;  %v4530_v38 = vsub.f32 %v9362_v6, %v4529_v60 }
 0x66c   : > { %7223 = vmatprep.subr.bf16.mxu1 %v8078_v0 }
 0x66d   : > { %v4531_v59 = vand.u32 4294901760, %v4530_v38 }
 0x66f   : > { %v9467_v43 = vpack.c.bf16 %v4538_v15, %v4531_v59  ;;  %v9746_v15 = vand.u32 4294901760, %v9455_v24 }
 0x671   : > { %v4614_v4 = vsub.f32 %v9455_v24, %v9746_v15 }
 0x672   : > { %6622 = vmatmul.mubr.f32.vlgmr.msra.gmra.mrb[20].mxu1 %v9284_v30 }
 0x673   : > { %7225 = vmatpush3.bf16.xpose.msra.mxu1 %v9150_v53  ;;  %6656 = vmatprep.mubr.msk.f32.mxu1 %vm8079_vm0, %v8080_v1  ;;  %v4429_v53 = vld [vmem:[#allocation13 + $0x50] sm:$0xff]  ;;  %v4615_v29 = vand.u32 4294901760, %v4614_v4 }
 0x674   : > { %7226 = vmatprep.subr.bf16.mxu1 %v8078_v0 }
 0x67b   : > { %7228 = vmatpush3.bf16.xpose.msra.mxu1 %v9164_v40  ;;  %v4430_v40 = vld [vmem:[#allocation13 + $0x58] sm:$0xff] }
 0x67c   : > { %7229 = vmatprep.subr.bf16.mxu1 %v8078_v0  ;;  %v4469_v18 = vand.u32 4294901760, %v4430_v40 }
 0x683   : > { %7231 = vmatpush3.bf16.xpose.msra.mxu1 %v9178_v27  ;;  %v4466_v27 = vand.u32 4294901760, %v4429_v53 }
 0x684   : > { %7232 = vmatprep.subr.bf16.mxu1 %v8078_v0 }
 0x685   : > { %v9451_v25 = vsub.f32 %v4429_v53, %v4466_v27  ;;  %v4580_v53 = vand.u32 4294901760, %v4579_v44 }
 0x68b   : > { %7234 = vmatpush3.bf16.xpose.msra.mxu1 %v9197_v26  ;;  %v9433_v26 = vpack.c.bf16 %v4469_v18, %v4466_v27  ;;  %v9749_v27 = vand.u32 4294901760, %v9384_v37 }
 0x68c   : > { %7235 = vmatprep.subr.bf16.mxu1 %v8078_v0 }
 0x68d   : > { %7264 = vmatpush3.bf16.msra.mxu0 %v9433_v26 }
 0x68e   : > { %7265 = vmatprep.subr.bf16.mxu0 %v8078_v0 }
 0x693   : > { %7237 = vmatpush3.bf16.xpose.msra.mxu1 %v9215_v63  ;;  %v4432_v63 = vld [vmem:[#allocation13 + $0x68] sm:$0xff] }
 0x694   : > { %7238 = vmatprep.subr.bf16.mxu1 %v8078_v0 }
 0x69b   : > { %7240 = vmatpush3.bf16.xpose.msra.mxu1 %v9235_v2  ;;  %v4475_v2 = vand.u32 4294901760, %v4432_v63 }
 0x69c   : > { %7241 = vmatprep.subr.bf16.mxu1 %v8078_v0 }
 0x69d   : > { %v9437_v21 = vpack.c.bf16 %v4475_v2, %v4472_v31  ;;  %v9457_v28 = vsub.f32 %v4432_v63, %v4475_v2  ;;  %v4593_v63 = vsub.f32 %v9384_v37, %v9749_v27 }
 0x69f   : > { %7267 = vmatpush3.bf16.msra.mxu0 %v9437_v21  ;;  %v4594_v2 = vand.u32 4294901760, %v4593_v63  ;;  %v9745_v55 = vand.u32 4294901760, %v9457_v28  ;;  %v7314_v4 = vpack.c.bf16 %v9457_v28, %v9455_v24 }
 0x6a0   : > { %7268 = vmatprep.subr.bf16.mxu0 %v8078_v0 }
 0x6a1   : > { %v4621_v3 = vsub.f32 %v9457_v28, %v9745_v55 }
 0x6a3   : > { %7243 = vmatpush3.bf16.xpose.msra.mxu1 %v9253_v39  ;;  %v4433_v39 = vld [vmem:[#allocation13 + $0x70] sm:$0xff]  ;;  %v4622_v35 = vand.u32 4294901760, %v4621_v3 }
 0x6a4   : > { %7244 = vmatprep.subr.bf16.mxu1 %v8078_v0 }
 0x6a5   : > { %v7290_v58 = vpack.c.bf16 %v4622_v35, %v4615_v29  ;;  %v2599_v29 = vpop.xlane.xlu1 %2598 }
 0x6a6   : > { %v4413_v35 = vadd.f32 1e-08, %v2599_v29  ;;  %v5760_v29 = vld [vmem:[#allocation16] ss:$0 sm:$0xff] }
 0x6a8   : > { %7723 = vrcp.f32 %v4413_v35 }
 0x6ab   : > { %7246 = vmatpush3.bf16.xpose.msra.mxu1 %v9270_v57  ;;  %v4478_v57 = vand.u32 4294901760, %v4433_v39 }
 0x6ad   : > { %v9443_v22 = vpack.c.bf16 %v4481_v47, %v4478_v57  ;;  %v9460_v45 = vsub.f32 %v4433_v39, %v4478_v57  ;;  %v9748_v39 = vand.u32 4294901760, %v9451_v25 }
 0x6af   : > { %7270 = vmatpush3.bf16.msra.mxu0 %v9443_v22  ;;  %v4600_v47 = vsub.f32 %v9451_v25, %v9748_v39  ;;  %v9744_v19 = vand.u32 4294901760, %v9460_v45  ;;  %v7317_v3 = vpack.c.bf16 %v9462_v12, %v9460_v45 }
 0x6b0   : > { %7271 = vmatprep.subr.bf16.mxu0 %v8078_v0 }
 0x6b1   : > { %v4601_v50 = vand.u32 4294901760, %v4600_v47  ;;  %v4628_v44 = vsub.f32 %v9460_v45, %v9744_v19  ;;  %v7302_v47 = vpack.c.bf16 %v9375_v7, %v9372_v46  ;;  %v9778_v46 = vand.u32 4294901760, %v9451_v25 }
 0x6b2   : > { %6657 = vmatmul.mubr.f32.vlgmr.msra.gmra.mrb[20].mxu1 %v9284_v30  ;;  %v9453_v30 = vsub.f32 %v4430_v40, %v4469_v18  ;;  %v9750_v40 = vand.u32 4294901760, %v9382_v42  ;;  %v7281_v18 = vpack.c.bf16 %v4580_v53, %v4573_v5  ;;  %v4635_v5 = vsub.f32 %v9462_v12, %v9743_v13 }
 0x6b3   : > { %v4629_v53 = vand.u32 4294901760, %v4628_v44  ;;  %v7724_v44 = vpop.eup %7723 }
 0x6b4   : > { %v4586_v9 = vsub.f32 %v9382_v42, %v9750_v40  ;;  %v9747_v52 = vand.u32 4294901760, %v9453_v30  ;;  %v9779_v7 = vand.u32 4294901760, %v9453_v30 }
 0x6b6   : > { %v4587_v31 = vand.u32 4294901760, %v4586_v9  ;;  %v4607_v38 = vsub.f32 %v9453_v30, %v9747_v52  ;;  %v4636_v9 = vand.u32 4294901760, %v4635_v5  ;;  %v4415_v5 = vmul.f32 %v7724_v44, %v4413_v35 }
 0x6b8   : > { %v7284_v57 = vpack.c.bf16 %v4594_v2, %v4587_v31  ;;  %v4608_v59 = vand.u32 4294901760, %v4607_v38  ;;  %v7293_v63 = vpack.c.bf16 %v4636_v9, %v4629_v53  ;;  %v7296_v31 = vpack.c.bf16 %v9364_v41, %v9362_v6 }
 0x6b9   : > { %v7299_v2 = vpack.c.bf16 %v9370_v20, %v9366_v48  ;;  %v7305_v38 = vpack.c.bf16 %v9380_v17, %v9378_v34  ;;  %v4416_v53 = vsub.f32 2.0, %v4415_v5  ;;  %v7350_v6 = vpack.c.bf16 %v4564_v33, %v4557_v10 }
 0x6ba   : > { %v7287_v49 = vpack.c.bf16 %v4608_v59, %v4601_v50  ;;  %v7308_v50 = vpack.c.bf16 %v9384_v37, %v9382_v42  ;;  %v7311_v59 = vpack.c.bf16 %v9453_v30, %v9451_v25  ;;  %v7353_v41 = vpack.c.bf16 %v4578_v11, %v4571_v36  ;;  %v5079_v30 = vld [vmem:[#allocation14 + $0x18] sm:$0xff] }
 0x6bb   : > { %v4417_v9 = vmul.f32 %v7724_v44, %v4416_v53  ;;  %v9776_v48 = vand.u32 4294901760, %v9382_v42  ;;  %v9777_v20 = vand.u32 4294901760, %v9384_v37  ;;  %v9780_v34 = vand.u32 4294901760, %v9455_v24 }
 0x6bc   : > { %v9781_v17 = vand.u32 4294901760, %v9457_v28  ;;  %v9782_v42 = vand.u32 4294901760, %v9460_v45  ;;  %v9783_v37 = vand.u32 4294901760, %v9462_v12  ;;  %v5100_v24 = vand.u32 4294901760, %v5079_v30 }
 0x6be   : > { %v5192_v33 = vsub.f32 %v5079_v30, %v5100_v24 }
 0x785   : > { %v4409_v13 = vpop.f32.mrb[20].mxu1 }
 0x786   : > { %v4418_v19 = vmul.f32 %v4417_v9, %v4409_v13  ;;  %v6658_v55 = vpop.f32.mrb[21].mxu1 }
 0x788   : > { %v9541_v15 = vand.u32 4294901760, %v4418_v19 }
 0x78a   : > { %v4517_v52 = vsub.f32 %v4418_v19, %v9541_v15 }
 0x78c   : > { %v4518_v39 = vand.u32 4294901760, %v4517_v52 }
 0x78e   : > { %v4519_v27 = vsub.f32 %v4517_v52, %v4518_v39 }
 0x790   : > { %v4520_v40 = vand.u32 4294901760, %v4519_v27  ;;  %v5193_v27 = vand.u32 4294901760, %v5192_v33 }
 0x792   : > { %6692 = vmatmul.mubr.f32.vlgmr.msra.gmra.mrb[22].mxu0 %v4520_v40 }
 0x793   : > { %7273 = vmatpush3.bf16.msra.mxu0 %v9467_v43  ;;  %6726 = vmatprep.mubr.msk.f32.mxu0 %vm8079_vm0, %v8080_v1  ;;  %v7344_v43 = vpack.c.bf16 %v4536_v54, %v4529_v60  ;;  %v7356_v60 = vpack.c.bf16 %v9777_v20, %v9776_v48  ;;  %v7359_v54 = vpack.c.bf16 %v9779_v7, %v9778_v46 }
 0x794   : > { %7274 = vmatprep.subr.bf16.mxu0 %v8078_v0 }
 0x797   : > { %7276 = vmatpush3.bf16.msra.mxu0 %v9483_v14  ;;  %v7347_v14 = vpack.c.bf16 %v4550_v32, %v4543_v61  ;;  %v7362_v61 = vpack.c.bf16 %v9781_v17, %v9780_v34  ;;  %v7365_v32 = vpack.c.bf16 %v9783_v37, %v9782_v42 }
 0x798   : > { %7277 = vmatprep.subr.bf16.mxu0 %v8078_v0 }
 0x79b   : > { %7279 = vmatpush3.bf16.msra.mxu0 %v7278_v51 }
 0x79c   : > { %7280 = vmatprep.subr.bf16.mxu0 %v8078_v0 }
 0x79f   : > { %7282 = vmatpush3.bf16.msra.mxu0 %v7281_v18 }
 0x7a0   : > { %7283 = vmatprep.subr.bf16.mxu0 %v8078_v0 }
 0x7a3   : > { %7285 = vmatpush3.bf16.msra.mxu0 %v7284_v57 }
 0x7a4   : > { %7286 = vmatprep.subr.bf16.mxu0 %v8078_v0 }
 0x7a7   : > { %7288 = vmatpush3.bf16.msra.mxu0 %v7287_v49 }
 0x7a8   : > { %7289 = vmatprep.subr.bf16.mxu0 %v8078_v0 }
 0x7ab   : > { %7291 = vmatpush3.bf16.msra.mxu0 %v7290_v58 }
 0x7ac   : > { %7292 = vmatprep.subr.bf16.mxu0 %v8078_v0 }
 0x7af   : > { %7294 = vmatpush3.bf16.msra.mxu0 %v7293_v63 }
 0x7b0   : > { %7295 = vmatprep.subr.bf16.mxu0 %v8078_v0 }
 0x7b2   : > { %6727 = vmatmul.mubr.f32.vlgmr.msra.gmra.mrb[22].mxu0 %v9541_v15 }
 0x7b3   : > { %7297 = vmatpush3.bf16.msra.mxu0 %v7296_v31  ;;  %6761 = vmatprep.mubr.msk.f32.mxu0 %vm8079_vm0, %v8080_v1 }
 0x7b4   : > { %7298 = vmatprep.subr.bf16.mxu0 %v8078_v0 }
 0x7b7   : > { %7300 = vmatpush3.bf16.msra.mxu0 %v7299_v2 }
 0x7b8   : > { %7301 = vmatprep.subr.bf16.mxu0 %v8078_v0 }
 0x7bb   : > { %7303 = vmatpush3.bf16.msra.mxu0 %v7302_v47 }
 0x7bc   : > { %7304 = vmatprep.subr.bf16.mxu0 %v8078_v0 }
 0x7bf   : > { %7306 = vmatpush3.bf16.msra.mxu0 %v7305_v38 }
 0x7c0   : > { %7307 = vmatprep.subr.bf16.mxu0 %v8078_v0 }
 0x7c3   : > { %7309 = vmatpush3.bf16.msra.mxu0 %v7308_v50 }
 0x7c4   : > { %7310 = vmatprep.subr.bf16.mxu0 %v8078_v0 }
 0x7c7   : > { %7312 = vmatpush3.bf16.msra.mxu0 %v7311_v59 }
 0x7c8   : > { %7313 = vmatprep.subr.bf16.mxu0 %v8078_v0 }
 0x7cb   : > { %7315 = vmatpush3.bf16.msra.mxu0 %v7314_v4 }
 0x7cc   : > { %7316 = vmatprep.subr.bf16.mxu0 %v8078_v0 }
 0x7cf   : > { %7318 = vmatpush3.bf16.msra.mxu0 %v7317_v3 }
 0x7d0   : > { %7319 = vmatprep.subr.bf16.mxu0 %v8078_v0 }
 0x7d2   : > { %6762 = vmatmul.mubr.f32.vlgmr.msra.gmra.mrb[22].mxu0 %v4517_v52  ;;  %v5194_v52 = vsub.f32 %v5192_v33, %v5193_v27 }
 0x7d3   : > { %7321 = vmatpush3.bf16.msra.mxu0 %v9360_v16  ;;  %6796 = vmatprep.mubr.msk.f32.mxu0 %vm8079_vm0, %v8080_v1 }
 0x7d4   : > { %7322 = vmatprep.subr.bf16.mxu0 %v8078_v0  ;;  %v5195_v55 = vand.u32 4294901760, %v5194_v52 }
 0x7d7   : > { %7324 = vmatpush3.bf16.msra.mxu0 %v9368_v8 }
 0x7d8   : > { %7325 = vmatprep.subr.bf16.mxu0 %v8078_v0 }
 0x7db   : > { %7327 = vmatpush3.bf16.msra.mxu0 %v9388_v62 }
 0x7dc   : > { %7328 = vmatprep.subr.bf16.mxu0 %v8078_v0 }
 0x7df   : > { %7330 = vmatpush3.bf16.msra.mxu0 %v9393_v56 }
 0x7e0   : > { %7331 = vmatprep.subr.bf16.mxu0 %v8078_v0 }
 0x7e3   : > { %7333 = vmatpush3.bf16.msra.mxu0 %v9398_v23 }
 0x7e4   : > { %7334 = vmatprep.subr.bf16.mxu0 %v8078_v0 }
 0x7e7   : > { %7336 = vmatpush3.bf16.msra.mxu0 %v9433_v26 }
 0x7e8   : > { %7337 = vmatprep.subr.bf16.mxu0 %v8078_v0 }
 0x7eb   : > { %7339 = vmatpush3.bf16.msra.mxu0 %v9437_v21 }
 0x7ec   : > { %7340 = vmatprep.subr.bf16.mxu0 %v8078_v0 }
 0x7ef   : > { %7342 = vmatpush3.bf16.msra.mxu0 %v9443_v22 }
 0x7f0   : > { %7343 = vmatprep.subr.bf16.mxu0 %v8078_v0 }
 0x7f2   : > { %6797 = vmatmul.mubr.f32.vlgmr.msra.gmra.mrb[22].mxu0 %v4518_v39 }
 0x7f3   : > { %7345 = vmatpush3.bf16.msra.mxu0 %v7344_v43  ;;  %6831 = vmatprep.mubr.msk.f32.mxu0 %vm8079_vm0, %v8080_v1 }
 0x7f4   : > { %7346 = vmatprep.subr.bf16.mxu0 %v8078_v0 }
 0x7f7   : > { %7348 = vmatpush3.bf16.msra.mxu0 %v7347_v14 }
 0x7f8   : > { %7349 = vmatprep.subr.bf16.mxu0 %v8078_v0 }
 0x7fb   : > { %7351 = vmatpush3.bf16.msra.mxu0 %v7350_v6 }
 0x7fc   : > { %7352 = vmatprep.subr.bf16.mxu0 %v8078_v0 }
 0x7ff   : > { %7354 = vmatpush3.bf16.msra.mxu0 %v7353_v41 }
 0x800   : > { %7355 = vmatprep.subr.bf16.mxu0 %v8078_v0 }
 0x803   : > { %7357 = vmatpush3.bf16.msra.mxu0 %v7356_v60 }
 0x804   : > { %7358 = vmatprep.subr.bf16.mxu0 %v8078_v0 }
 0x807   : > { %7360 = vmatpush3.bf16.msra.mxu0 %v7359_v54 }
 0x808   : > { %7361 = vmatprep.subr.bf16.mxu0 %v8078_v0 }
 0x80b   : > { %7363 = vmatpush3.bf16.msra.mxu0 %v7362_v61 }
 0x80c   : > { %7364 = vmatprep.subr.bf16.mxu0 %v8078_v0 }
 0x80f   : > { %7366 = vmatpush3.bf16.msra.mxu0 %v7365_v32 }
 0x810   : > { %7367 = vmatprep.subr.bf16.mxu0 %v8078_v0 }
 0x812   : > { %6832 = vmatmul.mubr.f32.vlgmr.msra.gmra.mrb[22].mxu0 %v9541_v15 }
 0x813   : > { %7369 = vmatpush3.bf16.msra.mxu0 %v9360_v16  ;;  %6866 = vmatprep.mubr.msk.f32.mxu0 %vm8079_vm0, %v8080_v1  ;;  %v5076_v16 = vld [vmem:[#allocation14] sm:$0xff] }
 0x814   : > { %7370 = vmatprep.subr.bf16.mxu0 %v8078_v0 }
 0x817   : > { %7372 = vmatpush3.bf16.msra.mxu0 %v9368_v8  ;;  %v5077_v8 = vld [vmem:[#allocation14 + $0x8] sm:$0xff] }
 0x818   : > { %7373 = vmatprep.subr.bf16.mxu0 %v8078_v0 }
 0x81b   : > { %7375 = vmatpush3.bf16.msra.mxu0 %v9388_v62  ;;  %v5091_v62 = vand.u32 4294901760, %v5076_v16 }
 0x81c   : > { %7376 = vmatprep.subr.bf16.mxu0 %v8078_v0 }
 0x81f   : > { %7378 = vmatpush3.bf16.msra.mxu0 %v9393_v56  ;;  %v5094_v56 = vand.u32 4294901760, %v5077_v8 }
 0x820   : > { %7379 = vmatprep.subr.bf16.mxu0 %v8078_v0 }
 0x821   : > { %v5178_v25 = vsub.f32 %v5077_v8, %v5094_v56 }
 0x823   : > { %7381 = vmatpush3.bf16.msra.mxu0 %v9398_v23  ;;  %v9649_v23 = vpack.c.bf16 %v5094_v56, %v5091_v62  ;;  %v5179_v45 = vand.u32 4294901760, %v5178_v25 }
 0x824   : > { %7382 = vmatprep.subr.bf16.mxu0 %v8078_v0 }
 0x825   : > { %v5180_v11 = vsub.f32 %v5178_v25, %v5179_v45 }
 0x827   : > { %7384 = vmatpush3.bf16.msra.mxu0 %v9433_v26  ;;  %v5171_v26 = vsub.f32 %v5076_v16, %v5091_v62  ;;  %v5181_v18 = vand.u32 4294901760, %v5180_v11 }
 0x828   : > { %7385 = vmatprep.subr.bf16.mxu0 %v8078_v0 }
 0x829   : > { %v5172_v28 = vand.u32 4294901760, %v5171_v26  ;;  %v7404_v19 = vpack.c.bf16 %v5178_v25, %v5171_v26 }
 0x82b   : > { %7387 = vmatpush3.bf16.msra.mxu0 %v9437_v21  ;;  %v5078_v21 = vld [vmem:[#allocation14 + $0x10] sm:$0xff]  ;;  %v5173_v36 = vsub.f32 %v5171_v26, %v5172_v28  ;;  %v7416_v58 = vpack.c.bf16 %v5179_v45, %v5172_v28 }
 0x82c   : > { %7388 = vmatprep.subr.bf16.mxu0 %v8078_v0 }
 0x82d   : > { %v5174_v51 = vand.u32 4294901760, %v5173_v36 }
 0x82f   : > { %7390 = vmatpush3.bf16.msra.mxu0 %v9443_v22  ;;  %v5097_v22 = vand.u32 4294901760, %v5078_v21  ;;  %v7398_v57 = vpack.c.bf16 %v5181_v18, %v5174_v51 }
 0x830   : > { %7391 = vmatprep.subr.bf16.mxu0 %v8078_v0 }
 0x831   : > { %v7395_v12 = vpack.c.bf16 %v5100_v24, %v5097_v22  ;;  %v5185_v10 = vsub.f32 %v5078_v21, %v5097_v22 }
 0x832   : > { %6867 = vmatmul.mubr.f32.vlgmr.msra.gmra.mrb[22].mxu0 %v9541_v15 }
 0x833   : > { %6877 = vmatprep.mubr.msk.f32.mxu0 %vm8079_vm0, %v8080_v1  ;;  %7393 = vmatpush3.bf16.msra.mxu0 %v9649_v23  ;;  %v5186_v40 = vand.u32 4294901760, %v5185_v10  ;;  %v7407_v13 = vpack.c.bf16 %v5192_v33, %v5185_v10 }
 0x834   : > { %7394 = vmatprep.subr.bf16.mxu0 %v8078_v0 }
 0x835   : > { %v5187_v39 = vsub.f32 %v5185_v10, %v5186_v40  ;;  %v7419_v63 = vpack.c.bf16 %v5193_v27, %v5186_v40 }
 0x837   : > { %7396 = vmatpush3.bf16.msra.mxu0 %v7395_v12  ;;  %v5188_v15 = vand.u32 4294901760, %v5187_v39 }
 0x838   : > { %7397 = vmatprep.subr.bf16.mxu0 %v8078_v0 }
 0x839   : > { %v7401_v49 = vpack.c.bf16 %v5195_v55, %v5188_v15 }
 0x905   : > { %v5072_v31 = vpop.f32.mrb[22].mxu0 }
 0x906   : > { %v5088_v2 = vsel %vm463_vm1, %v5072_v31, 0  ;;  %v6868_v47 = vpop.f32.mrb[23].mxu0 }
 0x907   : > { %v5159_v38 = vand.u32 4294901760, %v5088_v2 }
 0x909   : > { %v5160_v50 = vsub.f32 %v5088_v2, %v5159_v38 }
 0x90b   : > { %v5161_v59 = vand.u32 4294901760, %v5160_v50 }
 0x90d   : > { %v5162_v4 = vsub.f32 %v5160_v50, %v5161_v59 }
 0x90f   : > { %v5163_v3 = vand.u32 4294901760, %v5162_v4 }
 0x911   : > { %6878 = vmatmul.mubr.f32.vlgmr.msra.gmra.mrb[24].mxu0 %v5163_v3 }
 0x912   : > { %7399 = vmatpush3.bf16.msra.mxu0 %v7398_v57  ;;  %6888 = vmatprep.mubr.msk.f32.mxu0 %vm8079_vm0, %v8080_v1 }
 0x913   : > { %7400 = vmatprep.subr.bf16.mxu0 %v8078_v0 }
 0x916   : > { %7402 = vmatpush3.bf16.msra.mxu0 %v7401_v49 }
 0x917   : > { %7403 = vmatprep.subr.bf16.mxu0 %v8078_v0 }
 0x919   : > { %6889 = vmatmul.mubr.f32.vlgmr.msra.gmra.mrb[24].mxu0 %v5159_v38 }
 0x91a   : > { %7405 = vmatpush3.bf16.msra.mxu0 %v7404_v19  ;;  %6899 = vmatprep.mubr.msk.f32.mxu0 %vm8079_vm0, %v8080_v1 }
 0x91b   : > { %7406 = vmatprep.subr.bf16.mxu0 %v8078_v0 }
 0x91e   : > { %7408 = vmatpush3.bf16.msra.mxu0 %v7407_v13 }
 0x91f   : > { %7409 = vmatprep.subr.bf16.mxu0 %v8078_v0 }
 0x921   : > { %6900 = vmatmul.mubr.f32.vlgmr.msra.gmra.mrb[24].mxu0 %v5160_v50 }
 0x922   : > { %7411 = vmatpush3.bf16.msra.mxu0 %v9649_v23  ;;  %6910 = vmatprep.mubr.msk.f32.mxu0 %vm8079_vm0, %v8080_v1 }
 0x923   : > { %7412 = vmatprep.subr.bf16.mxu0 %v8078_v0 }
 0x926   : > { %7414 = vmatpush3.bf16.msra.mxu0 %v7395_v12 }
 0x927   : > { %7415 = vmatprep.subr.bf16.mxu0 %v8078_v0 }
 0x929   : > { %6911 = vmatmul.mubr.f32.vlgmr.msra.gmra.mrb[24].mxu0 %v5161_v59 }
 0x92a   : > { %7417 = vmatpush3.bf16.msra.mxu0 %v7416_v58  ;;  %6921 = vmatprep.mubr.msk.f32.mxu0 %vm8079_vm0, %v8080_v1 }
 0x92b   : > { %7418 = vmatprep.subr.bf16.mxu0 %v8078_v0 }
 0x92e   : > { %7420 = vmatpush3.bf16.msra.mxu0 %v7419_v63 }
 0x92f   : > { %7421 = vmatprep.subr.bf16.mxu0 %v8078_v0 }
 0x931   : > { %6922 = vmatmul.mubr.f32.vlgmr.msra.gmra.mrb[24].mxu0 %v5159_v38 }
 0x932   : > { %7423 = vmatpush3.bf16.msra.mxu0 %v9649_v23  ;;  %6932 = vmatprep.mubr.msk.f32.mxu0 %vm8079_vm0, %v8080_v1 }
 0x933   : > { %7424 = vmatprep.subr.bf16.mxu0 %v8078_v0 }
 0x936   : > { %7426 = vmatpush3.bf16.msra.mxu0 %v7395_v12 }
 0x939   : > { %6933 = vmatmul.mubr.f32.vlgmr.msra.gmra.mrb[24].mxu0 %v5159_v38 }
 0xa0c   : > { %v5571_v35 = vpop.f32.mrb[24].mxu0 }
 0xa0d   : > { %v7450_v44 = vadd.f32 %v5760_v29, %v5571_v35  ;;  %v6934_v5 = vpop.f32.mrb[25].mxu0 }
 0xa0f   : > { %5575 = vst [vmem:[%s457_s13] sm:$0xff] %v7450_v44 }
 0xa10   : > { %7992 = shalt.err (!%p7989_p10)
}
 0xa11   : > { %s7993_s20 = scalar_lea.hbm %s9682_s14, 128  ;;  %s7997_s16 = scalar_lea.hbm %s9784_s17, 256 }
 0xa12   : > { %p7994_p11 = scmp.ne.s32.totalorder %s9682_s14, %s7993_s20  ;;  %p7998_p7 = scmp.lt.u32.totalorder %s9682_s14, %s9784_s17 }
 0xa13   : > { %p7999_p6 = scmp.lt.u32.totalorder %s7997_s16, %s7993_s20  ;;  %p8001_p12 = scmp.lt.u32.totalorder %s7993_s20, %s9682_s14 }
 0xa14   : > { %p7995_p8 = pnand %p7994_p11, %p9785_p1 }
 0xa15   : > { %p8000_p9 = por %p7999_p6, %p7998_p7 }
 0xa16   : > { %p7996_p5 = pneg %p7995_p8 }
 0xa17   : > { %p8002_p13 = por %p8001_p12, %p8000_p9 }
 0xa19   : > { %p8003_p0 = pnand %p8002_p13, %p7996_p5 }
 0xa1b   : > { %8006 = shalt.err (!%p8003_p0)
}
 0xa1c   : > { %7617 = dma.vmem_to_hbm [thread:$0]  (%p9785_p1), %s9684_s25, 128, %s9682_s14, %s5577_s29  }
 0xa1d PF: > { %s5602_s19 = sand.u32 1, %s8049_s30   ;;  %p9786_p2 = scmp.ne.s32.totalorder %s9763_s22, 0 }
 0xa1e   : > { %p9787_p3 = scmp.ge.s32.totalorder %s8061_s12, 2  ;;  %s5603_s21 = scalar_lea.sflag [#allocation4], %s5602_s19 }
 0xa20   : > { %p7649_p4 = pnand %p9787_p3, %p9786_p2 }
 0xa22   : > { %8044 = dma.done.wait (!%p7649_p4), %s5603_s21, 128  }
 0xa23   : > { %8046 = vsyncadd (!%p7649_p4), %s5603_s21, 4294967168  ;;  %p26_p10 = scmp.ge.s32.totalorder %s8362_s27, 4   ;;  %s9788_s30 = smov %s8053_s10 }
 0xa24   : > { %s9789_s10 = smov %s8057_s11  ;;  %s9790_s11 = smov %s8373_s23 }
 0xa25   : > { %s9791_s12 = smov %s8362_s27  ;;  %28 = sbr.rel (!%p26_p10) target bundleno = 12 (0xc), region = 133 }
 0xa2c   :  { %5608 = vsyncpa [#allocation3], 1 }
 0xa2d   :  { %5610 = vsyncpa [#allocation3 + $0x1], 1 }
 0xa2e   :  { %5611 = vsyncpa [#allocation6], 1 }
 0xa2f   :  { %5612 = vsyncpa [#allocation9], 1 }
 0xa30   :  { %5613 = vsyncpa [#allocation12], 1 }
 0xa31   :  { %5614 = vsyncpa [#allocation15], 1 }
 0xa32   :  { %5615 = vsyncpa [#allocation4], 1 }
 0xa33   :  { %5617 = vsyncpa [#allocation4 + $0x1], 1 }

// kernel: tpu_custom_call.1
= control target key start
LH: loop header
LB: loop body
LE: loop exit
PB: predicated region body
PF: predicated region fallthrough
CT: control target
= control target key end

     0   :  { %s9726_s0 = inlined_call_operand.hbm [shape: f32[16,32], index: 0, kind: input, shape index: {}]   ;;  %s9727_s1 = inlined_call_operand.hbm [shape: f32[32,32], index: 1, kind: input, shape index: {}]   ;;  %s9728_s2 = inlined_call_operand.hbm [shape: f32[32,384], index: 2, kind: input, shape index: {}]   ;;  %s9729_s3 = inlined_call_operand.hbm [shape: f32[1,384], index: 3, kind: input, shape index: {}]   ;;  %s9730_s4 = inlined_call_operand.hbm [shape: f32[32,256], index: 4, kind: input, shape index: {}]   ;;  %s9731_s5 = inlined_call_operand.hbm [shape: f32[1,256], index: 5, kind: input, shape index: {}]   ;;  %s9732_s6 = inlined_call_operand.hbm [shape: f32[128,32], index: 6, kind: input, shape index: {}]   ;;  %s9733_s7 = inlined_call_operand.hbm [shape: f32[32,128], index: 7, kind: input, shape index: {}]   ;;  %s9734_s8 = inlined_call_operand.hbm [shape: f32[1,128], index: 8, kind: input, shape index: {}]   ;;  %s9735_s9 = inlined_call_operand.hbm [shape: f32[16,128], index: 9, kind: output, shape index: {}]  }
   0x1   :  { %9751 = sst [smem:[#allocation24_spill]] %s9727_s1 }
   0x2   :  { %9752 = sst [smem:[#allocation25_spill]] %s9735_s9 }
   0x3   :  { %14 = vsyncpa [#allocation3], 0 }
   0x4   :  { %16 = vsyncpa [#allocation3 + $0x1], 0 }
   0x5   :  { %17 = vsyncpa [#allocation6], 0 }
   0x6   :  { %18 = vsyncpa [#allocation9], 0 }
   0x7   :  { %19 = vsyncpa [#allocation12], 0 }
   0x8   :  { %20 = vsyncpa [#allocation15], 0 }
   0x9   :  { %21 = vsyncpa [#allocation4], 0 }
   0xa   :  { %23 = vsyncpa [#allocation4 + $0x1], 0  ;;  %s8132_s30 = smov 0   ;;  %s8134_s10 = smov 0  }
   0xb   :  { %s8136_s11 = smov 0   ;;  %s8138_s12 = smov 0  }
   0xc LB: > { %s8063_s13 = smov [#allocation5]   ;;  %s8153_s15 = sadd.s32 4294967295, %s8061_s12   ;;  %s8061_s12 = sphi %s8138_s12, %s9791_s12   ;;  %s8057_s11 = sphi %s8136_s11, %s9790_s11   ;;  %s8053_s10 = sphi %s8134_s10, %s9789_s10   ;;  %s8049_s30 = sphi %s8132_s30, %s9788_s30  }
   0xd   : > { %s266_s14 = sshll.u32 %s8063_s13, 4  ;;  %p5737_p0 = scmp.ge.s32.totalorder %s8061_s12, 1  ;;  %s8158_s14 = int_to_ptr.vmem [resolvable:$true] %s266_s14 }
   0xe   : > { %p9739_p1 = scmp.eq.s32.totalorder %s8153_s15, 0  ;;  %p254_p2 = scmp.lt.s32.totalorder %s8061_s12, 3 }
   0xf   : > { %s8064_s17 = smov [#allocation8]   ;;  %s8065_s20 = smov [#allocation11]  }
  0x10   : > { %p8160_p3 = pnand %p5737_p0, %p254_p2  ;;  %s293_s18 = sshll.u32 %s8064_s17, 4  ;;  %s8173_s18 = int_to_ptr.vmem [resolvable:$true] %s293_s18 }
  0x11   : > { %s317_s21 = sshll.u32 %s8065_s20, 4  ;;  %s9755_s1 = sld [smem:[#allocation24_spill]]  ;;  %s8175_s21 = int_to_ptr.vmem [resolvable:$true] %s317_s21 }
  0x12   : > { %s9753_s16 = scalar_select %p8160_p3, 1, 0 }
  0x13   : > { %p7619_p5 = pneg %p8160_p3 }
  0x15   : > { %p8169_p6 = pnand %p7619_p5, %p9739_p1 }
  0x17   : > { %s7725_s24 = scalar_lea.hbm %s9755_s1, 512  ;;  %p8185_p8 = pneg %p8169_p6 }
  0x18   : > { %p7726_p7 = scmp.ne.s32.totalorder %s9755_s1, %s7725_s24  ;;  %p7732_p11 = scmp.lt.u32.totalorder %s7725_s24, %s9755_s1 }
  0x1a   : > { %p7728_p9 = pnand %p8185_p8, %p7726_p7 }
  0x1c   : > { %p7729_p10 = pneg %p7728_p9 }
  0x1e   : > { %p7734_p12 = pnand %p7732_p11, %p7729_p10 }
  0x20   : > { %7737 = shalt.err (!%p7734_p12)
}
  0x21   : > { %s7738_s13 = scalar_lea.vmem %s8158_s14, 512  ;;  %p7746_p5 = scmp.lt.s32.totalorder %s8158_s14, %s8158_s14 }
  0x22   : > { %p7739_p13 = scmp.ne.s32.totalorder %s8158_s14, %s7738_s13  ;;  %p7747_p4 = scmp.lt.s32.totalorder %s7738_s13, %s7738_s13 }
  0x24   : > { %p7741_p0 = pnand %p7739_p13, %p8185_p8  ;;  %p7748_p7 = por %p7747_p4, %p7746_p5 }
  0x26   : > { %p7742_p2 = pneg %p7741_p0 }
  0x28   : > { %p7749_p9 = pnand %p7748_p7, %p7742_p2 }
  0x2a   : > { %7752 = shalt.err (!%p7749_p9)
}
  0x2b   : > { %s9737_s17 = smov 128   ;;  %s9741_s20 = smov 8  }
  0x2c   : > { %7622 = dma.hbm_to_vmem [thread:$0]  (!%p8169_p6), %s9755_s1, 512, %s8158_s14, [#allocation6], %s9737_s17, %s9737_s17, %s9741_s20  }
  0x2d   : > { %s7753_s26 = scalar_lea.hbm %s9729_s3, 48 }
  0x2e   : > { %p7754_p4 = scmp.ne.s32.totalorder %s9729_s3, %s7753_s26  ;;  %p7760_p12 = scmp.lt.u32.totalorder %s7753_s26, %s9729_s3 }
  0x30   : > { %p7756_p10 = pnand %p7754_p4, %p8185_p8 }
  0x32   : > { %p7757_p11 = pneg %p7756_p10 }
  0x34   : > { %p7762_p13 = pnand %p7760_p12, %p7757_p11 }
  0x36   : > { %7765 = shalt.err (!%p7762_p13)
}
  0x37   : > { %s7766_s14 = scalar_lea.vmem %s8173_s18, 48  ;;  %s7773_s22 = scalar_lea.vmem %s8173_s18, 64 }
  0x38   : > { %p7767_p0 = scmp.ne.s32.totalorder %s8173_s18, %s7766_s14  ;;  %p7774_p7 = scmp.lt.s32.totalorder %s8173_s18, %s8173_s18 }
  0x39   : > { %p7775_p9 = scmp.lt.s32.totalorder %s7773_s22, %s7766_s14 }
  0x3a   : > { %p7769_p2 = pnand %p7767_p0, %p8185_p8 }
  0x3b   : > { %p7776_p4 = por %p7775_p9, %p7774_p7 }
  0x3c   : > { %p7770_p5 = pneg %p7769_p2 }
  0x3e   : > { %p7777_p10 = pnand %p7776_p4, %p7770_p5 }
  0x40   : > { %7780 = shalt.err (!%p7777_p10)
}
  0x41   : > { %7628 = dma.hbm_to_vmem [thread:$0]  (!%p8169_p6), %s9729_s3, 48, %s8173_s18, [#allocation9]  }
  0x42   : > { %s7781_s26 = scalar_lea.hbm %s9731_s5, 32 }
  0x43   : > { %p7782_p11 = scmp.ne.s32.totalorder %s9731_s5, %s7781_s26  ;;  %p7788_p0 = scmp.lt.u32.totalorder %s7781_s26, %s9731_s5 }
  0x45   : > { %p7784_p12 = pnand %p7782_p11, %p8185_p8 }
  0x47   : > { %p7785_p13 = pneg %p7784_p12 }
  0x49   : > { %p7790_p2 = pnand %p7788_p0, %p7785_p13 }
  0x4b   : > { %7793 = shalt.err (!%p7790_p2)
}
  0x4c   : > { %s7794_s18 = scalar_lea.vmem %s8175_s21, 32  ;;  %p7802_p4 = scmp.lt.s32.totalorder %s8175_s21, %s8175_s21 }
  0x4d   : > { %p7795_p5 = scmp.ne.s32.totalorder %s8175_s21, %s7794_s18  ;;  %p7803_p10 = scmp.lt.s32.totalorder %s7794_s18, %s7794_s18 }
  0x4f   : > { %p7797_p7 = pnand %p7795_p5, %p8185_p8  ;;  %p7804_p11 = por %p7803_p10, %p7802_p4 }
  0x51   : > { %p7798_p9 = pneg %p7797_p7 }
  0x53   : > { %p7805_p12 = pnand %p7804_p11, %p7798_p9 }
  0x55   : > { %7808 = shalt.err (!%p7805_p12)
}
  0x56   : > { %7634 = dma.hbm_to_vmem [thread:$0]  (!%p8169_p6), %s9731_s5, 32, %s8175_s21, [#allocation12]  }
  0x57   : > { %s8068_s23 = smov [#allocation14]   ;;  %s8069_s25 = smov [#allocation7]  }
  0x58   : > { %s340_s24 = sshll.u32 %s8068_s23, 4  ;;  %s279_s26 = sshll.u32 %s8069_s25, 4  ;;  %s341_s24 = int_to_ptr.vmem [resolvable:$true] %s340_s24  ;;  %s280_s26 = int_to_ptr.vmem [resolvable:$true] %s279_s26 }
  0x59   : > { %s7809_s13 = scalar_lea.hbm %s9733_s7, 512 }
  0x5a   : > { %p7810_p13 = scmp.ne.s32.totalorder %s9733_s7, %s7809_s13  ;;  %p7816_p5 = scmp.lt.u32.totalorder %s7809_s13, %s9733_s7 }
  0x5c   : > { %p7812_p0 = pnand %p7810_p13, %p8185_p8 }
  0x5e   : > { %p7813_p2 = pneg %p7812_p0 }
  0x60   : > { %p7818_p7 = pnand %p7816_p5, %p7813_p2 }
  0x62   : > { %7821 = shalt.err (!%p7818_p7)
}
  0x63   : > { %s7822_s21 = scalar_lea.vmem %s341_s24, 512  ;;  %p7830_p11 = scmp.lt.s32.totalorder %s341_s24, %s341_s24 }
  0x64   : > { %p7823_p9 = scmp.ne.s32.totalorder %s341_s24, %s7822_s21  ;;  %p7831_p12 = scmp.lt.s32.totalorder %s7822_s21, %s7822_s21 }
  0x66   : > { %p7825_p4 = pnand %p7823_p9, %p8185_p8  ;;  %p7832_p1 = por %p7831_p12, %p7830_p11 }
  0x68   : > { %p7826_p10 = pneg %p7825_p4 }
  0x6a   : > { %p7833_p3 = pnand %p7832_p1, %p7826_p10 }
  0x6c   : > { %7836 = shalt.err (!%p7833_p3)
}
  0x6d   : > { %s9757_s9 = smov 128   ;;  %s7837_s29 = scalar_lea.hbm %s9728_s2, 1536 }
  0x6e   : > { %7640 = dma.hbm_to_vmem [thread:$0]  (!%p8169_p6), %s9733_s7, 512, %s341_s24, [#allocation15], %s9757_s9, %s9757_s9, %s9741_s20  }
  0x6f   : > { %p7838_p1 = scmp.ne.s32.totalorder %s9728_s2, %s7837_s29  ;;  %p7844_p0 = scmp.lt.u32.totalorder %s7837_s29, %s9728_s2 }
  0x71   : > { %p7840_p3 = pnand %p7838_p1, %p8185_p8 }
  0x73   : > { %p7841_p13 = pneg %p7840_p3 }
  0x75   : > { %p7846_p2 = pnand %p7844_p0, %p7841_p13 }
  0x77   : > { %7849 = shalt.err (!%p7846_p2)
}
  0x78   : > { %s7850_s21 = scalar_lea.vmem %s280_s26, 1536  ;;  %p7858_p4 = scmp.lt.s32.totalorder %s280_s26, %s280_s26 }
  0x79   : > { %p7851_p5 = scmp.ne.s32.totalorder %s280_s26, %s7850_s21  ;;  %p7859_p10 = scmp.lt.s32.totalorder %s7850_s21, %s7850_s21 }
  0x7b   : > { %p7853_p7 = pnand %p7851_p5, %p8185_p8  ;;  %p7860_p11 = por %p7859_p10, %p7858_p4 }
  0x7d   : > { %p7854_p9 = pneg %p7853_p7 }
  0x7f   : > { %p7861_p12 = pnand %p7860_p11, %p7854_p9 }
  0x81   : > { %7864 = shalt.err (!%p7861_p12)
}
  0x82   : > { %s8070_s24 = smov 384   ;;  %s8071_s17 = smov 24  }
  0x83   : > { %7625 = dma.hbm_to_vmem [thread:$0]  (!%p8169_p6), %s9728_s2, 1536, %s280_s26, [#allocation6], %s8070_s24, %s8070_s24, %s8071_s17  }
  0x84   : > { %s8072_s28 = smov [#allocation10]   ;;  %s7865_s18 = scalar_lea.hbm %s9730_s4, 1024 }
  0x85   : > { %s303_s29 = sshll.u32 %s8072_s28, 4  ;;  %p7866_p1 = scmp.ne.s32.totalorder %s9730_s4, %s7865_s18  ;;  %s304_s29 = int_to_ptr.vmem [resolvable:$true] %s303_s29 }
  0x86   : > { %p7872_p0 = scmp.lt.u32.totalorder %s7865_s18, %s9730_s4 }
  0x87   : > { %p7868_p3 = pnand %p7866_p1, %p8185_p8 }
  0x89   : > { %p7869_p13 = pneg %p7868_p3 }
  0x8b   : > { %p7874_p2 = pnand %p7872_p0, %p7869_p13 }
  0x8d   : > { %7877 = shalt.err (!%p7874_p2)
}
  0x8e   : > { %s7878_s26 = scalar_lea.vmem %s304_s29, 1024  ;;  %p7886_p4 = scmp.lt.s32.totalorder %s304_s29, %s304_s29 }
  0x8f   : > { %p7879_p5 = scmp.ne.s32.totalorder %s304_s29, %s7878_s26  ;;  %p7887_p10 = scmp.lt.s32.totalorder %s7878_s26, %s7878_s26 }
  0x91   : > { %p7881_p7 = pnand %p7879_p5, %p8185_p8  ;;  %p7888_p11 = por %p7887_p10, %p7886_p4 }
  0x93   : > { %p7882_p9 = pneg %p7881_p7 }
  0x95   : > { %p7889_p12 = pnand %p7888_p11, %p7882_p9 }
  0x97   : > { %7892 = shalt.err (!%p7889_p12)
}
  0x98   : > { %s8073_s24 = smov 256   ;;  %s8074_s17 = smov 16  }
  0x99   : > { %7631 = dma.hbm_to_vmem [thread:$0]  (!%p8169_p6), %s9730_s4, 1024, %s304_s29, [#allocation9], %s8073_s24, %s8073_s24, %s8074_s17  }
  0x9a   : > { %s8075_s23 = smov [#allocation13]   ;;  %s8076_s28 = smov [#allocation16]  }
  0x9b   : > { %s327_s25 = sshll.u32 %s8075_s23, 4  ;;  %s354_s13 = sshll.u32 %s8076_s28, 4  ;;  %s328_s25 = int_to_ptr.vmem [resolvable:$true] %s327_s25  ;;  %s8313_s13 = int_to_ptr.vmem [resolvable:$true] %s354_s13 }
  0x9c   : > { %s7893_s22 = scalar_lea.hbm %s9732_s6, 2048 }
  0x9d   : > { %p7894_p1 = scmp.ne.s32.totalorder %s9732_s6, %s7893_s22  ;;  %p7900_p0 = scmp.lt.u32.totalorder %s7893_s22, %s9732_s6 }
  0x9f   : > { %p7896_p3 = pnand %p7894_p1, %p8185_p8 }
  0xa1   : > { %p7897_p13 = pneg %p7896_p3 }
  0xa3   : > { %p7902_p2 = pnand %p7900_p0, %p7897_p13 }
  0xa5   : > { %7905 = shalt.err (!%p7902_p2)
}
  0xa6   : > { %s7906_s24 = scalar_lea.vmem %s328_s25, 2048  ;;  %p7914_p4 = scmp.lt.s32.totalorder %s328_s25, %s328_s25 }
  0xa7   : > { %p7907_p5 = scmp.ne.s32.totalorder %s328_s25, %s7906_s24  ;;  %p7915_p10 = scmp.lt.s32.totalorder %s7906_s24, %s7906_s24 }
  0xa9   : > { %p7909_p7 = pnand %p7907_p5, %p8185_p8  ;;  %p7916_p11 = por %p7915_p10, %p7914_p4 }
  0xab   : > { %p7910_p9 = pneg %p7909_p7 }
  0xad   : > { %p7917_p12 = pnand %p7916_p11, %p7910_p9 }
  0xaf   : > { %7920 = shalt.err (!%p7917_p12)
}
  0xb0   : > { %s9758_s17 = smov 8   ;;  %s7921_s18 = scalar_lea.hbm %s9734_s8, 16 }
  0xb1   : > { %7637 = dma.hbm_to_vmem [thread:$0]  (!%p8169_p6), %s9732_s6, 2048, %s328_s25, [#allocation12], %s9757_s9, %s9757_s9, %s9758_s17  }
  0xb2   : > { %p7922_p1 = scmp.ne.s32.totalorder %s9734_s8, %s7921_s18  ;;  %p7928_p0 = scmp.lt.u32.totalorder %s7921_s18, %s9734_s8 }
  0xb4   : > { %p7924_p3 = pnand %p7922_p1, %p8185_p8 }
  0xb6   : > { %p7925_p13 = pneg %p7924_p3 }
  0xb8   : > { %p7930_p2 = pnand %p7928_p0, %p7925_p13 }
  0xba   : > { %7933 = shalt.err (!%p7930_p2)
}
  0xbb   : > { %s7934_s9 = scalar_lea.vmem %s8313_s13, 16  ;;  %s7941_s25 = scalar_lea.vmem %s8313_s13, 32 }
  0xbc   : > { %p7935_p5 = scmp.ne.s32.totalorder %s8313_s13, %s7934_s9  ;;  %p7942_p4 = scmp.lt.s32.totalorder %s8313_s13, %s8313_s13 }
  0xbd   : > { %p7943_p10 = scmp.lt.s32.totalorder %s7941_s25, %s7934_s9 }
  0xbe   : > { %p7937_p7 = pnand %p7935_p5, %p8185_p8 }
  0xbf   : > { %p7944_p11 = por %p7943_p10, %p7942_p4 }
  0xc0   : > { %p7938_p9 = pneg %p7937_p7 }
  0xc2   : > { %p7945_p12 = pnand %p7944_p11, %p7938_p9 }
  0xc4   : > { %7948 = shalt.err (!%p7945_p12)
}
  0xc5   : > { %7643 = dma.hbm_to_vmem [thread:$0]  (!%p8169_p6), %s9734_s8, 16, %s8313_s13, [#allocation15]  }
  0xc6   : > { %s5736_s19 = sadd.s32 4294967294, %s8061_s12   ;;  %s8362_s27 = sadd.s32 1, %s8061_s12  }
  0xc7   : > { %s33_s17 = ssub.s32 %s8061_s12, %s8362_s27  ;;  %s36_s20 = sadd.s32 1, %s8057_s11 }
  0xc8   : > { %p34_p8 = scmp.eq.s32.totalorder %s33_s17, 0  ;;  %p43_p1 = scmp.ne.s32.totalorder %s8057_s11, %s8053_s10 }
  0xc9   : > { %p44_p3 = scmp.eq.s32.totalorder %s8061_s12, 0  ;;  %p49_p13 = scmp.ne.s32.totalorder %s8053_s10, %s8049_s30 }
  0xca   : > { %s8373_s23 = scalar_select %p34_p8, %s8057_s11, %s36_s20  }
  0xcb   : > { %p8375_p0 = por %p44_p3, %p43_p1  ;;  %p9760_p2 = scmp.eq.s32.totalorder %s8153_s15, 0 }
  0xcc   : > { %p241_p5 = scmp.eq.s32.totalorder %s8153_s15, 1  ;;  %p247_p7 = scmp.eq.s32.totalorder %s5736_s19, 1 }
  0xcd   : > { %p8381_p6 = por %p9760_p2, %p49_p13  ;;  %p7660_p9 = scmp.lt.s32.totalorder %s8061_s12, 2 }
  0xce   : > { %s365_s14 = sand.u32 1, %s8057_s11   ;;  %p8388_p4 = por %p241_p5, %p43_p1 }
  0xcf   : > { %p8392_p10 = por %p247_p7, %p49_p13  ;;  %s5747_s21 = sshll.u32 %s365_s14, 3 }
  0xd0   : > { %s9762_s18 = scalar_select %p8388_p4, 1, 0 }
  0xd1   : > { %s9763_s22 = scalar_select %p8392_p10, 1, 0 }
  0xd2   : > { %s5748_s26 = sshll.u32 %s8061_s12, 7  ;;  %s369_s29 = scalar_lea.vmem [#allocation2], %s5747_s21 }
  0xd3   : > { %s8400_s25 = scalar_lea.hbm %s9726_s0, %s5748_s26  ;;  %s376_s24 = sshll.u32 %s369_s29, 4  ;;  %s8402_s24 = int_to_ptr.vmem [resolvable:$true] %s376_s24 }
  0xd4   : > { %p8406_p11 = pnand %p7660_p9, %p8375_p0  ;;  %s366_s17 = scalar_lea.sflag [#allocation3], %s365_s14 }
  0xd5   : > { %s7949_s20 = scalar_lea.hbm %s8400_s25, 128  ;;  %s7954_s1 = scalar_lea.hbm %s9726_s0, 256 }
  0xd6   : > { %p7950_p12 = scmp.ne.s32.totalorder %s8400_s25, %s7949_s20  ;;  %p7951_p8 = pneg %p8406_p11 }
  0xd7   : > { %p7955_p13 = scmp.lt.u32.totalorder %s8400_s25, %s9726_s0  ;;  %p7956_p0 = scmp.lt.u32.totalorder %s7954_s1, %s7949_s20 }
  0xd8   : > { %p7952_p1 = pnand %p7951_p8, %p7950_p12  ;;  %p7958_p5 = scmp.lt.u32.totalorder %s7949_s20, %s8400_s25 }
  0xd9   : > { %p7957_p2 = por %p7956_p0, %p7955_p13 }
  0xda   : > { %p7953_p3 = pneg %p7952_p1 }
  0xdb   : > { %p7959_p7 = por %p7958_p5, %p7957_p2 }
  0xdd   : > { %p7960_p9 = pnand %p7959_p7, %p7953_p3 }
  0xdf   : > { %7963 = shalt.err (!%p7960_p9)
}
  0xe0   : > { %s7964_s14 = scalar_lea.vmem %s8402_s24, 128  ;;  %s8077_s29 = smov [#allocation2]  }
  0xe1   : > { %p7965_p12 = scmp.ne.s32.totalorder %s8402_s24, %s7964_s14  ;;  %s7969_s21 = sshll.u32 %s8077_s29, 4  ;;  %s7970_s21 = int_to_ptr.vmem [resolvable:$false] %s7969_s21 }
  0xe2   : > { %s7971_s26 = scalar_lea.vmem %s7970_s21, 256  ;;  %p7972_p4 = scmp.lt.s32.totalorder %s8402_s24, %s7970_s21 }
  0xe3   : > { %p7967_p1 = pnand %p7965_p12, %p7951_p8  ;;  %p7973_p13 = scmp.lt.s32.totalorder %s7971_s26, %s7964_s14 }
  0xe5   : > { %p7968_p10 = pneg %p7967_p1  ;;  %p7974_p0 = por %p7973_p13, %p7972_p4 }
  0xe7   : > { %p7975_p2 = pnand %p7974_p0, %p7968_p10 }
  0xe9   : > { %7978 = shalt.err (!%p7975_p2)
}
  0xea   : > { %7647 = dma.hbm_to_vmem [thread:$0]  (!%p8406_p11), %s8400_s25, 128, %s8402_s24, %s366_s17  }
  0xeb   : > { %p9765_p3 = scmp.ne.s32.totalorder %s9753_s16, 0 }
  0xec   : > { %s8438_s20 = sand.u32 (!%p9765_p3), 1, %s8053_s10  }
  0xed   : > { %385 = sbr.rel (%p9765_p3) target bundleno = 2589 (0xa1d), region = 56  ;;  %s5750_s1 = sshll.u32 (!%p9765_p3), %s8438_s20, 3 }
  0xee   : > { %s388_s28 = scalar_lea.sflag (!%p9765_p3), [#allocation3], %s8438_s20  ;;  %s391_s9 = scalar_lea.vmem (!%p9765_p3), [#allocation2], %s5750_s1 }
  0xf4   : > { %8024 = dma.done.wait (%p8381_p6), %s388_s28, 128  }
  0xf5   : > { %8026 = vsyncadd (%p8381_p6), %s388_s28, 4294967168  ;;  %p9766_p4 = scmp.eq.s32.totalorder %s8153_s15, 0 }
  0xf7   : > { %8028 = dma.done.wait (%p9766_p4), [#allocation6], 2048   ;;  %p9767_p10 = pmov %p9766_p4 }
  0xf8   : > { %p9768_p11 = pmov %p9766_p4 }
  0xf9   : > { %8030 = vsyncadd (%p9767_p10), [#allocation6], 4294965248 }
  0xfa   : > { %8032 = dma.done.wait (%p9768_p11), [#allocation9], 1072   ;;  %p9769_p8 = pmov %p9766_p4 }
  0xfb   : > { %p9770_p5 = pmov %p9766_p4 }
  0xfc   : > { %8034 = vsyncadd (%p9769_p8), [#allocation9], 4294966224 }
  0xfd   : > { %8036 = dma.done.wait (%p9770_p5), [#allocation12], 2080   ;;  %p9771_p7 = pmov %p9766_p4 }
  0xfe   : > { %p9772_p6 = pmov %p9766_p4 }
  0xff   : > { %8038 = vsyncadd (%p9771_p7), [#allocation12], 4294965216 }
 0x100   : > { %8040 = dma.done.wait (%p9772_p6), [#allocation15], 528   ;;  %p9773_p9 = pmov %p9766_p4 }
 0x101   : > { %v8078_v0 = vmov 0.0|0.0   ;;  %vm8079_vm0 = vmmov 0   ;;  %v8080_v1 = vmov 0.0   ;;  %vm463_vm1 = vcmask 261120   ;;  %v459_v2 = vld [vmem:[#allocation5] sm:$0xff]  ;;  %v460_v3 = vld [vmem:[#allocation5 + $0x8] sm:$0xff] }
 0x102   : > { %8042 = vsyncadd (%p9773_p9), [#allocation15], 4294966768  ;;  %6935 = vmatprep.subr.bf16.mxu0 %v8078_v0  ;;  %6169 = vmatprep.mubr.msk.f32.mxu0 %vm8079_vm0, %v8080_v1  ;;  %v461_v4 = vld [vmem:[#allocation5 + $0x10] sm:$0xff]  ;;  %v468_v5 = vand.u32 4294901760, %v459_v2  ;;  %v471_v6 = vand.u32 4294901760, %v460_v3  ;;  %v462_v7 = vld [vmem:[#allocation5 + $0x18] sm:$0xff] }
 0x103   : > { %1172 = vmatprep.mubr.f32.mxu1 %v8080_v1  ;;  %v474_v8 = vand.u32 4294901760, %v461_v4  ;;  %v458_v9 = vld [vmem:[%s391_s9] sm:$0xff]  ;;  %v8468_v10 = vld [vmem:[#allocation7 + $0x8] sm:$0xff]  ;;  %v477_v11 = vand.u32 4294901760, %v462_v7  ;;  %v8471_v13 = vld [vmem:[#allocation7 + $0x20] sm:$0xff]  ;;  %vm2632_vm2 = vcmask 64512  }
 0x104   : > { %v465_v12 = vsel %vm463_vm1, %v458_v9, 0  ;;  %v984_v14 = vand.u32 4294901760, %v8468_v10  ;;  %v8474_v15 = vpack.c.bf16 %v471_v6, %v468_v5  ;;  %v8476_v16 = vsub.f32 %v459_v2, %v468_v5  ;;  %v8512_v32 = vld [vmem:[#allocation7] sm:$0xff]  ;;  %v8519_v36 = vld [vmem:[#allocation7 + $0x18] sm:$0xff]  ;;  %v8537_v46 = vld [vmem:[#allocation7 + $0x50] sm:$0xff]  ;;  %s5762_s16 = sshll.u32 %s8153_s15, 7 }
 0x105   : > { %v8478_v17 = vsub.f32 %v460_v3, %v471_v6  ;;  %v8480_v18 = vsub.f32 %v461_v4, %v474_v8  ;;  %v8482_v19 = vpack.c.bf16 %v477_v11, %v474_v8  ;;  %v8484_v20 = vsub.f32 %v462_v7, %v477_v11  ;;  %v8521_v37 = vld [vmem:[#allocation7 + $0x38] sm:$0xff]  ;;  %s457_s13 = scalar_lea.vmem [#allocation17], %s5750_s1  ;;  %s9784_s17 = sld [smem:[#allocation25_spill]] }
 0x106   : > { %v8486_v21 = vand.u32 4294901760, %v465_v12  ;;  %6937 = vmatpush3.bf16.msra.mxu0 %v8474_v15  ;;  %v549_v22 = vand.u32 4294901760, %v8476_v16  ;;  %v988_v25 = vand.u32 4294901760, %v8471_v13  ;;  %v8501_v28 = vsub.f32 %v8468_v10, %v984_v14  ;;  %s5590_s25 = sshll.u32 %s457_s13, 4  ;;  %s5577_s29 = scalar_lea.sflag [#allocation4], %s8438_s20  ;;  %s9684_s25 = int_to_ptr.vmem [resolvable:$true] %s5590_s25 }
 0x107   : > { %v556_v23 = vand.u32 4294901760, %v8478_v17  ;;  %v563_v24 = vand.u32 4294901760, %v8480_v18  ;;  %6938 = vmatprep.subr.bf16.mxu0 %v8078_v0  ;;  %v570_v27 = vand.u32 4294901760, %v8484_v20  ;;  %v986_v45 = vand.u32 4294901760, %v8512_v32  ;;  %s7979_s21 = scalar_lea.vmem %s9684_s25, 128  ;;  %p9785_p1 = scmp.ne.s32.totalorder %s9762_s18, 0 }
 0x108   : > { %v8495_v26 = vsub.f32 %v465_v12, %v8486_v21  ;;  %v550_v29 = vsub.f32 %v8476_v16, %v549_v22  ;;  %v1070_v35 = vand.u32 4294901760, %v8501_v28  ;;  %v8527_v41 = vsub.f32 %v8471_v13, %v988_v25  ;;  %p7980_p12 = scmp.ne.s32.totalorder %s9684_s25, %s7979_s21  ;;  %s8081_s15 = smov [#allocation17]  }
 0x109   : > { %v557_v30 = vsub.f32 %v8478_v17, %v556_v23  ;;  %v564_v31 = vsub.f32 %v8480_v18, %v563_v24  ;;  %v571_v34 = vsub.f32 %v8484_v20, %v570_v27  ;;  %v990_v49 = vand.u32 4294901760, %v8519_v36  ;;  %s7983_s26 = sshll.u32 %s8081_s15, 4  ;;  %s7984_s26 = int_to_ptr.vmem [resolvable:$false] %s7983_s26 }
 0x10a   : > { %v538_v33 = vand.u32 4294901760, %v8495_v26  ;;  %6940 = vmatpush3.bf16.msra.mxu0 %v8482_v19  ;;  %v551_v38 = vand.u32 4294901760, %v550_v29  ;;  %v1071_v44 = vsub.f32 %v8501_v28, %v1070_v35  ;;  %v1082_v48 = vand.u32 4294901760, %v8527_v41  ;;  %p7981_p13 = pnand %p7980_p12, %p9785_p1  ;;  %s7985_s1 = scalar_lea.vmem %s7984_s26, 256 }
 0x10b   : > { %v558_v39 = vand.u32 4294901760, %v557_v30  ;;  %v565_v40 = vand.u32 4294901760, %v564_v31  ;;  %6941 = vmatprep.subr.bf16.mxu0 %v8078_v0  ;;  %v572_v43 = vand.u32 4294901760, %v571_v34  ;;  %v992_v50 = vand.u32 4294901760, %v8521_v37  ;;  %s9682_s14 = scalar_lea.hbm %s9784_s17, %s5762_s16  ;;  %p7986_p2 = scmp.lt.s32.totalorder %s9684_s25, %s7984_s26 }
 0x10c   : > { %v539_v42 = vsub.f32 %v8495_v26, %v538_v33  ;;  %v1072_v52 = vand.u32 4294901760, %v1071_v44  ;;  %v8545_v53 = vsub.f32 %v8512_v32, %v986_v45  ;;  %v1083_v54 = vsub.f32 %v8527_v41, %v1082_v48  ;;  %v954_v32 = vld [vmem:[#allocation7 + $0x10] sm:$0xff]  ;;  %p7982_p0 = pneg %p7981_p13  ;;  %p7987_p3 = scmp.lt.s32.totalorder %s7985_s1, %s7979_s21 }
 0x10d   : > { %v6942_v47 = vpack.c.bf16 %v558_v39, %v551_v38  ;;  %v8553_v55 = vsub.f32 %v8519_v36, %v990_v49  ;;  %v996_v56 = vand.u32 4294901760, %v8537_v46  ;;  %v8559_v57 = vsub.f32 %v8521_v37, %v992_v50  ;;  %v957_v36 = vld [vmem:[#allocation7 + $0x28] sm:$0xff]  ;;  %v960_v37 = vld [vmem:[#allocation7 + $0x40] sm:$0xff] }
 0x10e   : > { %v540_v51 = vand.u32 4294901760, %v539_v42  ;;  %v6945_v58 = vpack.c.bf16 %v572_v43, %v565_v40  ;;  %v1076_v59 = vand.u32 4294901760, %v8545_v53  ;;  %v1084_v60 = vand.u32 4294901760, %v1083_v54  ;;  %p7988_p4 = por %p7987_p3, %p7986_p2 }
 0x10f   : > { %v1088_v61 = vand.u32 4294901760, %v8553_v55  ;;  %v1094_v62 = vand.u32 4294901760, %v8559_v57  ;;  %v8569_v63 = vsub.f32 %v8537_v46, %v996_v56  ;;  %v6948_v8 = vpack.c.bf16 %v8478_v17, %v8476_v16  ;;  %v958_v16 = vld [vmem:[#allocation7 + $0x30] sm:$0xff]  ;;  %v961_v17 = vld [vmem:[#allocation7 + $0x48] sm:$0xff] }
 0x110   : > { %6170 = vmatmul.mubr.f32.vlgmr.msra.gmra.mrb[0].mxu0 %v540_v51  ;;  %v1077_v2 = vsub.f32 %v8545_v53, %v1076_v59  ;;  %v6979_v3 = vpack.c.bf16 %v1084_v60, %v1072_v52  ;;  %v6951_v31 = vpack.c.bf16 %v8484_v20, %v8480_v18  ;;  %v6960_v38 = vpack.c.bf16 %v556_v23, %v549_v22  ;;  %p7989_p10 = pnand %p7988_p4, %p7982_p0 }
 0x111   : > { %6943 = vmatpush3.bf16.msra.mxu0 %v6942_v47  ;;  %6180 = vmatprep.mubr.msk.f32.mxu0 %vm8079_vm0, %v8080_v1  ;;  %v1089_v4 = vsub.f32 %v8553_v55, %v1088_v61  ;;  %v1095_v5 = vsub.f32 %v8559_v57, %v1094_v62  ;;  %v1106_v6 = vand.u32 4294901760, %v8569_v63  ;;  %v6963_v39 = vpack.c.bf16 %v570_v27, %v563_v24  ;;  %v963_v47 = vld [vmem:[#allocation7 + $0x58] sm:$0xff] }
 0x112   : > { %6944 = vmatprep.subr.bf16.mxu0 %v8078_v0  ;;  %v1078_v7 = vand.u32 4294901760, %v1077_v2  ;;  %6980 = vmatprep.subr.bf16.mxu1 %v6979_v3  ;;  %v994_v18 = vand.u32 4294901760, %v958_v16  ;;  %v998_v20 = vand.u32 4294901760, %v961_v17  ;;  %v8636_v43 = vpack.c.bf16 %v990_v49, %v986_v45 }
 0x113   : > { %v1090_v9 = vand.u32 4294901760, %v1089_v4  ;;  %v1096_v11 = vand.u32 4294901760, %v1095_v5  ;;  %v1107_v12 = vsub.f32 %v8569_v63, %v1106_v6  ;;  %v8644_v10 = vpack.c.bf16 %v996_v56, %v992_v50 }
 0x114   : > { %v1099_v22 = vsub.f32 %v958_v16, %v994_v18  ;;  %v1111_v23 = vsub.f32 %v961_v17, %v998_v20  ;;  %v8646_v13 = vpack.c.bf16 %v998_v20, %v994_v18  ;;  %v1528_v44 = vand.u32 4294901760, %v954_v32 }
 0x115   : > { %6946 = vmatpush3.bf16.msra.mxu0 %v6945_v58  ;;  %v6981_v29 = vpack.c.bf16 %v1090_v9, %v1078_v7  ;;  %v1108_v30 = vand.u32 4294901760, %v1107_v12  ;;  %v1531_v45 = vand.u32 4294901760, %v957_v36  ;;  %v6989_v49 = vpack.c.bf16 %v8553_v55, %v8545_v53  ;;  %v2019_v53 = vld [vmem:[#allocation10 + $0x38] sm:$0xff] }
 0x116   : > { %6947 = vmatprep.subr.bf16.mxu0 %v8078_v0  ;;  %v1100_v24 = vand.u32 4294901760, %v1099_v22  ;;  %v8655_v50 = vsub.f32 %v954_v32, %v1528_v44  ;;  %v1534_v56 = vand.u32 4294901760, %v960_v37  ;;  %v1537_v58 = vand.u32 4294901760, %v963_v47 }
 0x117   : > { %v6983_v34 = vpack.c.bf16 %v1108_v30, %v1096_v11  ;;  %6982 = vmatpush1.bf16.msra.mxu1 %v6981_v29  ;;  %v8658_v54 = vsub.f32 %v957_v36, %v1531_v45  ;;  %v6991_v2 = vpack.c.bf16 %v8569_v63, %v8559_v57  ;;  %v8680_v12 = vpack.c.bf16 %v1531_v45, %v1528_v44 }
 0x118   : > { %6181 = vmatmul.mubr.f32.vlgmr.msra.gmra.mrb[0].mxu0 %v8486_v21  ;;  %v8669_v4 = vsub.f32 %v960_v37, %v1534_v56  ;;  %v8671_v5 = vsub.f32 %v963_v47, %v1537_v58  ;;  %v1609_v7 = vand.u32 4294901760, %v8655_v50 }
 0x119   : > { %6949 = vmatpush3.bf16.msra.mxu0 %v6948_v8  ;;  %6191 = vmatprep.mubr.msk.f32.mxu0 %vm8079_vm0, %v8080_v1  ;;  %v1616_v8 = vand.u32 4294901760, %v8658_v54  ;;  %v7032_v32 = vpack.c.bf16 %v8658_v54, %v8655_v50 }
 0x11a   : > { %6950 = vmatprep.subr.bf16.mxu0 %v8078_v0  ;;  %6984 = vmatprep.subr.bf16.mxu1 %v6983_v34  ;;  %v1610_v29 = vsub.f32 %v8655_v50, %v1609_v7  ;;  %v1630_v34 = vand.u32 4294901760, %v8671_v5 }
 0x11b   : > { %v1617_v30 = vsub.f32 %v8658_v54, %v1616_v8 }
 0x11c   : > { %v1611_v16 = vand.u32 4294901760, %v1610_v29  ;;  %v1631_v20 = vsub.f32 %v8671_v5, %v1630_v34 }
 0x11d   : > { %6952 = vmatpush3.bf16.msra.mxu0 %v6951_v31  ;;  %v1623_v31 = vand.u32 4294901760, %v8669_v4  ;;  %v1618_v17 = vand.u32 4294901760, %v1617_v30 }
 0x11e   : > { %6953 = vmatprep.subr.bf16.mxu0 %v8078_v0 }
 0x11f   : > { %v1624_v18 = vsub.f32 %v8669_v4, %v1623_v31  ;;  %v7047_v50 = vpack.c.bf16 %v1630_v34, %v1623_v31 }
 0x120   : > { %6192 = vmatmul.mubr.f32.vlgmr.msra.gmra.mrb[0].mxu0 %v8495_v26  ;;  %v1112_v26 = vand.u32 4294901760, %v1111_v23 }
 0x121   : > { %6955 = vmatpush3.bf16.msra.mxu0 %v8474_v15  ;;  %6202 = vmatprep.mubr.msk.f32.mxu0 %vm8079_vm0, %v8080_v1 }
 0x122   : > { %6956 = vmatprep.subr.bf16.mxu0 %v8078_v0  ;;  %v1113_v27 = vsub.f32 %v1111_v23, %v1112_v26 }
 0x124   : > { %v1114_v40 = vand.u32 4294901760, %v1113_v27 }
 0x125   : > { %6958 = vmatpush3.bf16.msra.mxu0 %v8482_v19 }
 0x126   : > { %6959 = vmatprep.subr.bf16.mxu0 %v8078_v0 }
 0x128   : > { %6203 = vmatmul.mubr.f32.vlgmr.msra.gmra.mrb[0].mxu0 %v538_v33 }
 0x129   : > { %6961 = vmatpush3.bf16.msra.mxu0 %v6960_v38  ;;  %6213 = vmatprep.mubr.msk.f32.mxu0 %vm8079_vm0, %v8080_v1 }
 0x12a   : > { %6962 = vmatprep.subr.bf16.mxu0 %v8078_v0 }
 0x12d   : > { %6964 = vmatpush3.bf16.msra.mxu0 %v6963_v39  ;;  %v8695_v39 = vpack.c.bf16 %v1537_v58, %v1534_v56 }
 0x12e   : > { %6965 = vmatprep.subr.bf16.mxu0 %v8078_v0 }
 0x130   : > { %6214 = vmatmul.mubr.f32.vlgmr.msra.gmra.mrb[0].mxu0 %v8486_v21 }
 0x131   : > { %6967 = vmatpush3.bf16.msra.mxu0 %v8474_v15  ;;  %6224 = vmatprep.mubr.msk.f32.mxu0 %vm8079_vm0, %v8080_v1  ;;  %v1101_v15 = vsub.f32 %v1099_v22, %v1100_v24 }
 0x132   : > { %6968 = vmatprep.subr.bf16.mxu0 %v8078_v0 }
 0x133   : > { %v1102_v33 = vand.u32 4294901760, %v1101_v15  ;;  %v1625_v15 = vand.u32 4294901760, %v1624_v18 }
 0x135   : > { %6970 = vmatpush3.bf16.msra.mxu0 %v8482_v19  ;;  %v6985_v42 = vpack.c.bf16 %v1114_v40, %v1102_v33  ;;  %v8628_v19 = vpack.c.bf16 %v988_v25, %v984_v14  ;;  %v6993_v14 = vpack.c.bf16 %v1111_v23, %v1099_v22  ;;  %v8651_v25 = vpack.c.bf16 %v1112_v26, %v1100_v24  ;;  %v2013_v23 = vld [vmem:[#allocation10 + $0x8] sm:$0xff]  ;;  %v2015_v24 = vld [vmem:[#allocation10 + $0x18] sm:$0xff]  ;;  %v2012_v33 = vld [vmem:[#allocation10] sm:$0xff] }
 0x136   : > { %v7003_v22 = vpack.c.bf16 %v1082_v48, %v1070_v35  ;;  %v7005_v26 = vpack.c.bf16 %v1088_v61, %v1076_v59  ;;  %v7007_v35 = vpack.c.bf16 %v1106_v6, %v1094_v62  ;;  %v2032_v48 = vand.u32 4294901760, %v2013_v23  ;;  %v2014_v40 = vld [vmem:[#allocation10 + $0x10] sm:$0xff] }
 0x137   : > { %6986 = vmatpush1.bf16.msra.mxu1 %v6985_v42  ;;  %6972 = vmatprep.subr.bf16.mxu0 %v8628_v19  ;;  %v2036_v27 = vand.u32 4294901760, %v2015_v24  ;;  %v2017_v42 = vld [vmem:[#allocation10 + $0x28] sm:$0xff]  ;;  %v2034_v59 = vand.u32 4294901760, %v2012_v33  ;;  %v2038_v61 = vand.u32 4294901760, %v2014_v40  ;;  %v2044_v6 = vand.u32 4294901760, %v2019_v53 }
 0x138   : > { %6225 = vmatmul.mubr.f32.vlgmr.msra.gmra.mrb[0].mxu0 %v8486_v21  ;;  %v6987_v21 = vpack.c.bf16 %v8527_v41, %v8501_v28  ;;  %v7026_v28 = vpack.c.bf16 %v1618_v17, %v1611_v16  ;;  %v1632_v41 = vand.u32 4294901760, %v1631_v20  ;;  %v8728_v57 = vsub.f32 %v2013_v23, %v2032_v48 }
 0x139   : > { %1056 = vmatprep.mubr.f32.mxu0 %v8080_v1  ;;  %6974 = vmatpush1.bf16.msra.mxu0 %v8636_v43  ;;  %v8730_v62 = vsub.f32 %v2015_v24, %v2036_v27  ;;  %v2040_v63 = vand.u32 4294901760, %v2017_v42  ;;  %v8738_v36 = vsub.f32 %v2012_v33, %v2034_v59  ;;  %v8740_v44 = vsub.f32 %v2014_v40, %v2038_v61 }
 0x13a   : > { %6988 = vmatprep.subr.bf16.mxu1 %v6987_v21  ;;  %6976 = vmatprep.subr.bf16.mxu0 %v8644_v10  ;;  %v7029_v55 = vpack.c.bf16 %v1632_v41, %v1625_v15  ;;  %v2016_v21 = vld [vmem:[#allocation10 + $0x20] sm:$0xff] }
 0x13b   : > { %v2042_v45 = vand.u32 4294901760, %v2016_v21  ;;  %v8744_v47 = vsub.f32 %v2017_v42, %v2040_v63  ;;  %v2124_v58 = vand.u32 4294901760, %v8738_v36  ;;  %v8778_v16 = vpack.c.bf16 %v2044_v6, %v2040_v63  ;;  %v964_v63 = vld [vmem:[#allocation8] sm:$0x7] }
 0x13c   : > { %v7044_v42 = vpack.c.bf16 %v1616_v8, %v1609_v7  ;;  %v7071_v7 = vpack.c.bf16 %v8730_v62, %v8728_v57 }
 0x13d   : > { %6978 = vmatpush1.bf16.msra.mxu0 %v8646_v13  ;;  %v2142_v29 = vand.u32 4294901760, %v8744_v47  ;;  %v2125_v17 = vsub.f32 %v8738_v36, %v2124_v58 }
 0x13e   : > { %7019 = vmatprep.subr.bf16.mxu0 %v8078_v0 }
 0x13f   : > { %v2126_v15 = vand.u32 4294901760, %v2125_v17 }
 0x20b   : > { %v948_v46 = vpop.f32.mrb[0].mxu0 }
 0x20c   : > { %v982_v51 = vsel %vm463_vm1, %v948_v46, 0  ;;  %v6226_v52 = vpop.f32.mrb[1].mxu0  ;;  %v8746_v46 = vsub.f32 %v2019_v53, %v2044_v6 }
 0x20d   : > { %v8660_v60 = vand.u32 4294901760, %v982_v51  ;;  %v8754_v52 = vpack.c.bf16 %v2036_v27, %v2032_v48 }
 0x20e   : > { %v2154_v30 = vand.u32 4294901760, %v8746_v46 }
 0x20f   : > { %v8665_v3 = vsub.f32 %v982_v51, %v8660_v60  ;;  %1174 = vmatmul.mubr.f32.vlgmr.msra.gmra.mrb[0].mxu1 %v8660_v60  ;;  %v2130_v51 = vand.u32 4294901760, %v8730_v62 }
 0x210   : > { %6990 = vmatpush1.bf16.msra.mxu1 %v6989_v49  ;;  %1260 = vmatprep.mubr.f32.mxu1 %v8080_v1  ;;  %v2118_v49 = vand.u32 4294901760, %v8728_v57 }
 0x211   : > { %v8676_v9 = vand.u32 4294901760, %v8665_v3  ;;  %6992 = vmatprep.subr.bf16.mxu1 %v6991_v2  ;;  %v2136_v2 = vand.u32 4294901760, %v8740_v44 }
 0x213   : > { %v1060_v11 = vsub.f32 %v8665_v3, %v8676_v9  ;;  %v2137_v18 = vsub.f32 %v8740_v44, %v2136_v2  ;;  %v7089_v31 = vpack.c.bf16 %v2136_v2, %v2124_v58  ;;  %v2020_v2 = vld [vmem:[#allocation11] sm:$0x3] }
 0x214   : > { %6994 = vmatpush1.bf16.msra.mxu1 %v6993_v14  ;;  %v2018_v14 = vld [vmem:[#allocation10 + $0x30] sm:$0xff] }
 0x215   : > { %6996 = vmatprep.subr.bf16.mxu1 %v8628_v19  ;;  %v8691_v38 = vand.u32 4294901760, %v1060_v11  ;;  %v2046_v37 = vand.u32 4294901760, %v2018_v14  ;;  %v2119_v11 = vsub.f32 %v8728_v57, %v2118_v49  ;;  %v2138_v41 = vand.u32 4294901760, %v2137_v18 }
 0x217   : > { %1062 = vmatmul.mubr.f32.vlgmr.msra.gmra.mrb[2].mxu0 %v8691_v38  ;;  %1263 = vmatmul.mubr.f32.vlgmr.msra.gmra.mrb[0].mxu1 %v8665_v3  ;;  %v8759_v56 = vsub.f32 %v2018_v14, %v2046_v37  ;;  %v2120_v23 = vand.u32 4294901760, %v2119_v11  ;;  %v7065_v53 = vpack.c.bf16 %v2138_v41, %v2126_v15 }
 0x218   : > { %6998 = vmatpush1.bf16.msra.mxu1 %v8636_v43  ;;  %7021 = vmatpush3.bf16.msra.mxu0 %v8680_v12 }
 0x219   : > { %7000 = vmatprep.subr.bf16.mxu1 %v8644_v10  ;;  %7022 = vmatprep.subr.bf16.mxu0 %v8078_v0 }
 0x21a   : > { %6235 = vmatprep.mubr.msk.f32.mxu0 %vm8079_vm0, %v8080_v1  ;;  %1341 = vmatprep.mubr.f32.mxu1 %v8080_v1 }
 0x21c   : > { %7002 = vmatpush1.bf16.msra.mxu1 %v8646_v13  ;;  %7024 = vmatpush3.bf16.msra.mxu0 %v8695_v39 }
 0x21d   : > { %7004 = vmatprep.subr.bf16.mxu1 %v7003_v22  ;;  %7025 = vmatprep.subr.bf16.mxu0 %v8078_v0  ;;  %v2160_v22 = vand.u32 4294901760, %v8759_v56 }
 0x21f   : > { %6236 = vmatmul.mubr.f32.vlgmr.msra.gmra.mrb[4].mxu0 %v8691_v38  ;;  %1345 = vmatmul.mubr.f32.vlgmr.msra.gmra.mrb[0].mxu1 %v8676_v9  ;;  %v2161_v48 = vsub.f32 %v8759_v56, %v2160_v22 }
 0x220   : > { %7006 = vmatpush1.bf16.msra.mxu1 %v7005_v26  ;;  %7027 = vmatpush3.bf16.msra.mxu0 %v7026_v28  ;;  %v2155_v26 = vsub.f32 %v8746_v46, %v2154_v30  ;;  %v8799_v28 = vpack.c.bf16 %v2046_v37, %v2042_v45 }
 0x221   : > { %7008 = vmatprep.subr.bf16.mxu1 %v7007_v35  ;;  %7028 = vmatprep.subr.bf16.mxu0 %v8078_v0 }
 0x222   : > { %6246 = vmatprep.mubr.msk.f32.mxu0 %vm8079_vm0, %v8080_v1  ;;  %1439 = vmatprep.mubr.f32.mxu1 %v8080_v1  ;;  %v2156_v40 = vand.u32 4294901760, %v2155_v26 }
 0x224   : > { %7010 = vmatpush1.bf16.msra.mxu1 %v8651_v25  ;;  %7030 = vmatpush3.bf16.msra.mxu0 %v7029_v55  ;;  %v7035_v25 = vpack.c.bf16 %v8671_v5, %v8669_v4  ;;  %v7073_v4 = vpack.c.bf16 %v8740_v44, %v8738_v36  ;;  %v7075_v5 = vpack.c.bf16 %v8746_v46, %v8744_v47 }
 0x225   : > { %7012 = vmatprep.subr.bf16.mxu1 %v8628_v19  ;;  %7031 = vmatprep.subr.bf16.mxu0 %v8078_v0  ;;  %v8757_v19 = vsub.f32 %v2016_v21, %v2042_v45 }
 0x227   : > { %6247 = vmatmul.mubr.f32.vlgmr.msra.gmra.mrb[4].mxu0 %v8660_v60  ;;  %1441 = vmatmul.mubr.f32.vlgmr.msra.gmra.mrb[0].mxu1 %v8660_v60  ;;  %v2148_v20 = vand.u32 4294901760, %v8757_v19  ;;  %v7077_v8 = vpack.c.bf16 %v8759_v56, %v8757_v19 }
 0x228   : > { %7014 = vmatpush1.bf16.msra.mxu1 %v8636_v43  ;;  %7033 = vmatpush3.bf16.msra.mxu0 %v7032_v32  ;;  %v2131_v43 = vsub.f32 %v8730_v62, %v2130_v51 }
 0x229   : > { %7016 = vmatprep.subr.bf16.mxu1 %v8644_v10  ;;  %7034 = vmatprep.subr.bf16.mxu0 %v8078_v0  ;;  %v8776_v10 = vpack.c.bf16 %v2038_v61, %v2034_v59  ;;  %v2149_v35 = vsub.f32 %v8757_v19, %v2148_v20  ;;  %v2162_v59 = vand.u32 4294901760, %v2161_v48  ;;  %v7093_v34 = vpack.c.bf16 %v2160_v22, %v2148_v20 }
 0x22a   : > { %6257 = vmatprep.mubr.msk.f32.mxu0 %vm8079_vm0, %v8080_v1  ;;  %1519 = vmatprep.mubr.f32.mxu1 %v8080_v1  ;;  %v2132_v24 = vand.u32 4294901760, %v2131_v43 }
 0x22b   : > { %v2150_v55 = vand.u32 4294901760, %v2149_v35 }
 0x22c   : > { %7018 = vmatpush1.bf16.msra.mxu1 %v8646_v13  ;;  %7036 = vmatpush3.bf16.msra.mxu0 %v7035_v25  ;;  %v2143_v13 = vsub.f32 %v8744_v47, %v2142_v29  ;;  %v7063_v27 = vpack.c.bf16 %v2132_v24, %v2120_v23 }
 0x22d   : > { %7037 = vmatprep.subr.bf16.mxu0 %v8078_v0  ;;  %7056 = vmatprep.subr.bf16.mxu1 %v8754_v52  ;;  %v7069_v54 = vpack.c.bf16 %v2162_v59, %v2150_v55 }
 0x22e   : > { %v2144_v33 = vand.u32 4294901760, %v2143_v13 }
 0x22f   : > { %6258 = vmatmul.mubr.f32.vlgmr.msra.gmra.mrb[4].mxu0 %v8665_v3  ;;  %1521 = vmatmul.mubr.f32.vlgmr.msra.gmra.mrb[0].mxu1 %v8660_v60 }
 0x230   : > { %7039 = vmatpush3.bf16.msra.mxu0 %v8680_v12  ;;  %7058 = vmatpush1.bf16.msra.mxu1 %v8776_v10  ;;  %v7067_v61 = vpack.c.bf16 %v2156_v40, %v2144_v33 }
 0x231   : > { %7040 = vmatprep.subr.bf16.mxu0 %v8078_v0  ;;  %7060 = vmatprep.subr.bf16.mxu1 %v8778_v16 }
 0x232   : > { %6268 = vmatprep.mubr.msk.f32.mxu0 %vm8079_vm0, %v8080_v1  ;;  %2104 = vmatprep.mubr.f32.mxu1 %v8080_v1 }
 0x234   : > { %7042 = vmatpush3.bf16.msra.mxu0 %v8695_v39  ;;  %7062 = vmatpush1.bf16.msra.mxu1 %v8799_v28 }
 0x235   : > { %7043 = vmatprep.subr.bf16.mxu0 %v8078_v0  ;;  %7064 = vmatprep.subr.bf16.mxu1 %v7063_v27 }
 0x237   : > { %6269 = vmatmul.mubr.f32.vlgmr.msra.gmra.mrb[4].mxu0 %v8676_v9  ;;  %2110 = vmatmul.mubr.f32.vlgmr.msra.gmra.mrb[2].mxu1 %v8691_v38 }
 0x238   : > { %7045 = vmatpush3.bf16.msra.mxu0 %v7044_v42  ;;  %7066 = vmatpush1.bf16.msra.mxu1 %v7065_v53 }
 0x239   : > { %7046 = vmatprep.subr.bf16.mxu0 %v8078_v0  ;;  %7068 = vmatprep.subr.bf16.mxu1 %v7067_v61 }
 0x23a   : > { %6279 = vmatprep.mubr.msk.f32.mxu0 %vm8079_vm0, %v8080_v1  ;;  %2220 = vmatprep.mubr.f32.mxu1 %v8080_v1 }
 0x23c   : > { %7048 = vmatpush3.bf16.msra.mxu0 %v7047_v50  ;;  %7070 = vmatpush1.bf16.msra.mxu1 %v7069_v54 }
 0x23d   : > { %7049 = vmatprep.subr.bf16.mxu0 %v8078_v0  ;;  %7072 = vmatprep.subr.bf16.mxu1 %v7071_v7 }
 0x23f   : > { %6280 = vmatmul.mubr.f32.vlgmr.msra.gmra.mrb[4].mxu0 %v8660_v60  ;;  %2222 = vmatmul.mubr.f32.vlgmr.msra.gmra.mrb[2].mxu1 %v8660_v60 }
 0x240   : > { %7051 = vmatpush3.bf16.msra.mxu0 %v8680_v12  ;;  %7074 = vmatpush1.bf16.msra.mxu1 %v7073_v4  ;;  %v7087_v12 = vpack.c.bf16 %v2130_v51, %v2118_v49 }
 0x241   : > { %7052 = vmatprep.subr.bf16.mxu0 %v8078_v0  ;;  %7076 = vmatprep.subr.bf16.mxu1 %v7075_v5 }
 0x242   : > { %6290 = vmatprep.mubr.msk.f32.mxu0 %vm8079_vm0, %v8080_v1  ;;  %2308 = vmatprep.mubr.f32.mxu1 %v8080_v1 }
 0x244   : > { %7054 = vmatpush3.bf16.msra.mxu0 %v8695_v39  ;;  %7078 = vmatpush1.bf16.msra.mxu1 %v7077_v8  ;;  %v966_v39 = vlaneseq }
 0x245   : > { %7080 = vmatprep.subr.bf16.mxu1 %v8754_v52 }
 0x246   : > { %v967_v57 = vshrl.u32 %v966_v39, 7 }
 0x247   : > { %6291 = vmatmul.mubr.f32.vlgmr.msra.gmra.mrb[4].mxu0 %v8660_v60  ;;  %2311 = vmatmul.mubr.f32.vlgmr.msra.gmra.mrb[2].mxu1 %v8665_v3  ;;  %v7091_v3 = vpack.c.bf16 %v2154_v30, %v2142_v29 }
 0x248   : > { %7082 = vmatpush1.bf16.msra.mxu1 %v8776_v10  ;;  %2389 = vmatprep.mubr.f32.mxu1 %v8080_v1  ;;  %v968_v62 = vsub.s32 0, %v967_v57  ;;  %v972_v6 = vsub.s32 1, %v967_v57  ;;  %v976_v25 = vsub.s32 2, %v967_v57 }
 0x249   : > { %7084 = vmatprep.subr.bf16.mxu1 %v8778_v16 }
 0x24a   : > { %v969_v21 = vrot.slane %v964_v63, %v968_v62  ;;  %v973_v14 = vrot.slane %v964_v63, %v972_v6  ;;  %v2025_v11 = vrot.slane %v2020_v2, %v968_v62 }
 0x24c   : > { %7086 = vmatpush1.bf16.msra.mxu1 %v8799_v28 }
 0x24d   : > { %7088 = vmatprep.subr.bf16.mxu1 %v7087_v12 }
 0x24f   : > { %2393 = vmatmul.mubr.f32.vlgmr.msra.gmra.mrb[2].mxu1 %v8676_v9 }
 0x250   : > { %7090 = vmatpush1.bf16.msra.mxu1 %v7089_v31  ;;  %2487 = vmatprep.mubr.f32.mxu1 %v8080_v1 }
 0x251   : > { %7092 = vmatprep.subr.bf16.mxu1 %v7091_v3 }
 0x254   : > { %7094 = vmatpush1.bf16.msra.mxu1 %v7093_v34 }
 0x255   : > { %7096 = vmatprep.subr.bf16.mxu1 %v8754_v52  ;;  %v977_v52 = vrot.slane %v964_v63, %v976_v25 }
 0x257   : > { %2489 = vmatmul.mubr.f32.vlgmr.msra.gmra.mrb[2].mxu1 %v8660_v60 }
 0x258   : > { %7098 = vmatpush1.bf16.msra.mxu1 %v8776_v10  ;;  %2567 = vmatprep.mubr.f32.mxu1 %v8080_v1 }
 0x259   : > { %7100 = vmatprep.subr.bf16.mxu1 %v8778_v16  ;;  %v2029_v16 = vrot.slane %v2020_v2, %v972_v6 }
 0x25c   : > { %7102 = vmatpush1.bf16.msra.mxu1 %v8799_v28 }
 0x25f   : > { %2569 = vmatmul.mubr.f32.vlgmr.msra.gmra.mrb[2].mxu1 %v8660_v60 }
 0x2ea   : > { %v1063_v9 = vpop.f32.mrb[2].mxu0 }
 0x2eb   : > { %v1065_v38 = vpop.f32.mrb[3].mxu0  ;;  %v1064_v32 = vadd.f32 %v1063_v9, %v969_v21 }
 0x2ec   : > { %v1066_v36 = vadd.f32 %v1065_v38, %v973_v14 }
 0x302   : > { %v1522_v44 = vpop.f32.mrb[0].mxu1 }
 0x303   : > { %v1524_v45 = vpop.f32.mrb[1].mxu1  ;;  %v7428_v37 = vadd.f32 %v1522_v44, %v1064_v32 }
 0x304   : > { %v7430_v47 = vadd.f32 %v1524_v45, %v1066_v36 }
 0x305   : > { %v2575_v46 = vmul.f32 %v7428_v37, %v7428_v37 }
 0x306   : > { %v2579_v49 = vmul.f32 %v7430_v47, %v7430_v47 }
 0x307   : > { %2576 = vadd.xlane.f32.xlu0 %v2575_v46 }
 0x308   : > { %2580 = vadd.xlane.f32.xlu1 %v2579_v49 }
 0x31a   : > { %v2008_v60 = vpop.f32.mrb[4].mxu0 }
 0x31b   : > { %v6292_v51 = vpop.f32.mrb[5].mxu0  ;;  %v7431_v19 = vadd.f32 %v2008_v60, %v977_v52 }
 0x332   : > { %v2570_v56 = vpop.f32.mrb[2].mxu1 }
 0x333   : > { %v2572_v58 = vpop.f32.mrb[3].mxu1  ;;  %v7432_v29 = vadd.f32 %v2570_v56, %v2025_v11 }
 0x334   : > { %2600 = vxpose.xlu0.b32.start.end [1/1] (short) %v7431_v19, 128  ;;  %v7433_v22 = vadd.f32 %v2572_v58, %v2029_v16 }
 0x394   : > { %v2577_v43 = vpop.xlane.xlu0 %2576 }
 0x395   : > { %v2578_v30 = vmul.f32 0.5, %v2577_v43  ;;  %v2581_v10 = vpop.xlane.xlu1 %2580 }
 0x396   : > { %v2582_v20 = vmul.f32 0.5, %v2581_v10 }
 0x397   : > { %v2583_v17 = vsub.f32 %v7432_v29, %v2578_v30 }
 0x398   : > { %v2587_v23 = vsub.f32 %v7433_v22, %v2582_v20 }
 0x399   : > { %v2584_v18 = vmul.f32 1.442695, %v2583_v17 }
 0x39a   : > { %v2588_v24 = vmul.f32 1.442695, %v2587_v23 }
 0x39b   : > { %7719 = vpow2.f32 %v2584_v18 }
 0x39c   : > { %7721 = vpow2.f32 %v2588_v24 }
 0x3a5   : > { %v7720_v13 = vpop.eup %7719 }
 0x3a6   : > { %v2586_v26 = vmul.f32 0.25, %v7720_v13  ;;  %v7722_v42 = vpop.eup %7721 }
 0x3a7   : > { %v8889_v59 = vmul.f32 0.25, %v7722_v42 }
 0x3a8   : > { %v8880_v28 = vand.u32 4294901760, %v2586_v26  ;;  %v2591_v15 = vrot.slane %v2586_v26, 4 }
 0x3aa   : > { %6293 = vmatprep.subr.mxu1 %v8880_v28  ;;  %v2909_v41 = vsub.f32 %v2586_v26, %v8880_v28  ;;  %v2592_v35 = vadd.f32 %v2591_v15, %v2586_v26 }
 0x3ab   : > { %6294 = vmatpush3.msra.mxu1 %v8880_v28 }
 0x3ac   : > { %v8885_v48 = vand.u32 4294901760, %v2909_v41  ;;  %v2593_v27 = vrot.slane %v2592_v35, 2  ;;  %7103 = vmatprep.subr.bf16.mxu1 %v8078_v0 }
 0x3ae   : > { %v2911_v33 = vsub.f32 %v2909_v41, %v8885_v48  ;;  %v2594_v40 = vadd.f32 %v2593_v27, %v2592_v35 }
 0x3b0   : > { %v2912_v53 = vand.u32 4294901760, %v2911_v33  ;;  %v2595_v55 = vrot.slane %v2594_v40, 1 }
 0x3b2   : > { %6319 = vmatprep.subr.mxu0 %v2912_v53  ;;  %v2596_v61 = vadd.f32 %v2595_v55, %v2594_v40 }
 0x3b3   : > { %6320 = vmatpush3.msra.mxu0 %v2912_v53 }
 0x3b4   : > { %6345 = vmatprep.subr.mxu0 %v2909_v41  ;;  %v2616_v50 = vpop.trf.xlu0  ;;  %v2597_v54 = vmul.f32 %v2596_v61, %v8889_v59 }
 0x3b5   : > { %v2634_v7 = vsel %vm2632_vm2, %v2616_v50, 0 }
 0x3b6   : > { %v8893_v4 = vand.u32 4294901760, %v2634_v7  ;;  %2598 = vadd.xlane.f32.xlu1 %v2597_v54 }
 0x3b8   : > { %v8896_v5 = vsub.f32 %v2634_v7, %v8893_v4  ;;  %v2617_v8 = vpop.trf.xlu0  ;;  %6321 = vmatprep.mubr.f32.mxu0 %v8893_v4 }
 0x3b9   : > { %v2637_v12 = vsel %vm2632_vm2, %v2617_v8, 0 }
 0x3ba   : > { %v2749_v31 = vand.u32 4294901760, %v8896_v5  ;;  %v8901_v3 = vand.u32 4294901760, %v2637_v12 }
 0x3bc   : > { %v8904_v34 = vsub.f32 %v2637_v12, %v8901_v3  ;;  %6322 = vmatmul.mubr.f32.vlgmr.msra.gmra.mrb[6].mxu0 %v8901_v3  ;;  %v2618_v9 = vpop.trf.xlu0  ;;  %v2750_v38 = vsub.f32 %v8896_v5, %v2749_v31 }
 0x3bd   : > { %6346 = vmatpush3.msra.mxu0 %v2909_v41  ;;  %v2640_v39 = vsel %vm2632_vm2, %v2618_v9, 0 }
 0x3be   : > { %v2759_v57 = vand.u32 4294901760, %v8904_v34  ;;  %v8912_v62 = vand.u32 4294901760, %v2640_v39  ;;  %6371 = vmatprep.subr.mxu0 %v8880_v28  ;;  %v2751_v63 = vand.u32 4294901760, %v2750_v38 }
 0x3c0   : > { %v2760_v6 = vsub.f32 %v8904_v34, %v2759_v57  ;;  %v8919_v21 = vsub.f32 %v2640_v39, %v8912_v62  ;;  %6295 = vmatprep.mubr.f32.mxu1 %v2751_v63  ;;  %v2619_v14 = vpop.trf.xlu0  ;;  %6324 = vmatprep.mubr.f32.mxu0 %v8912_v62 }
 0x3c1   : > { %v2643_v32 = vsel %vm2632_vm2, %v2619_v14, 0 }
 0x3c2   : > { %v2761_v36 = vand.u32 4294901760, %v2760_v6  ;;  %v2769_v44 = vand.u32 4294901760, %v8919_v21  ;;  %v8924_v45 = vand.u32 4294901760, %v2643_v32 }
 0x3c4   : > { %v8927_v37 = vsub.f32 %v2643_v32, %v8924_v45  ;;  %6296 = vmatmul.mubr.f32.vlgmr.msra.gmra.mrb[4].mxu1 %v2761_v36  ;;  %v2620_v47 = vpop.trf.xlu0  ;;  %6325 = vmatmul.mubr.f32.gmra.mrb[8].mxu0 %v8924_v45  ;;  %v2770_v46 = vsub.f32 %v8919_v21, %v2769_v44 }
 0x3c5   : > { %v2646_v49 = vsel %vm2632_vm2, %v2620_v47, 0 }
 0x3c6   : > { %v2779_v60 = vand.u32 4294901760, %v8927_v37  ;;  %v8935_v51 = vand.u32 4294901760, %v2646_v49  ;;  %v2771_v25 = vand.u32 4294901760, %v2770_v46 }
 0x3c8   : > { %v8938_v52 = vsub.f32 %v2646_v49, %v8935_v51  ;;  %6298 = vmatprep.mubr.f32.mxu1 %v2771_v25  ;;  %v2621_v19 = vpop.trf.xlu0  ;;  %6327 = vmatprep.mubr.f32.mxu0 %v8935_v51  ;;  %v2780_v56 = vsub.f32 %v8927_v37, %v2779_v60 }
 0x3c9   : > { %v2649_v58 = vsel %vm2632_vm2, %v2621_v19, 0 }
 0x3ca   : > { %v2789_v2 = vand.u32 4294901760, %v8938_v52  ;;  %v8946_v11 = vand.u32 4294901760, %v2649_v58  ;;  %v2781_v43 = vand.u32 4294901760, %v2780_v56 }
 0x3cc   : > { %v8949_v29 = vsub.f32 %v2649_v58, %v8946_v11  ;;  %6299 = vmatmul.mubr.f32.gmra.mrb[6].mxu1 %v2781_v43  ;;  %v2622_v30 = vpop.trf.xlu0  ;;  %6328 = vmatmul.mubr.f32.gmra.mrb[10].mxu0 %v8946_v11  ;;  %v2790_v10 = vsub.f32 %v8938_v52, %v2789_v2 }
 0x3cd   : > { %v2652_v16 = vsel %vm2632_vm2, %v2622_v30, 0 }
 0x3ce   : > { %v2799_v17 = vand.u32 4294901760, %v8949_v29  ;;  %v8957_v18 = vand.u32 4294901760, %v2652_v16  ;;  %v2791_v20 = vand.u32 4294901760, %v2790_v10 }
 0x3d0   : > { %v8960_v22 = vsub.f32 %v2652_v16, %v8957_v18  ;;  %6301 = vmatprep.mubr.f32.mxu1 %v2791_v20  ;;  %v2623_v23 = vpop.trf.xlu0  ;;  %6330 = vmatprep.mubr.f32.mxu0 %v8957_v18  ;;  %v2800_v24 = vsub.f32 %v8949_v29, %v2799_v17 }
 0x3d1   : > { %v2655_v13 = vsel %vm2632_vm2, %v2623_v23, 0 }
 0x3d2   : > { %v2809_v26 = vand.u32 4294901760, %v8960_v22  ;;  %v8968_v15 = vand.u32 4294901760, %v2655_v13  ;;  %v2801_v41 = vand.u32 4294901760, %v2800_v24 }
 0x3d4   : > { %v8971_v35 = vsub.f32 %v2655_v13, %v8968_v15  ;;  %6302 = vmatmul.mubr.f32.gmra.mrb[8].mxu1 %v2801_v41  ;;  %v2624_v27 = vpop.trf.xlu0  ;;  %6331 = vmatmul.mubr.f32.gmra.mrb[12].mxu0 %v8968_v15  ;;  %v2810_v33 = vsub.f32 %v8960_v22, %v2809_v26 }
 0x3d5   : > { %v2658_v40 = vsel %vm2632_vm2, %v2624_v27, 0 }
 0x3d6   : > { %v2819_v42 = vand.u32 4294901760, %v8971_v35  ;;  %v8979_v53 = vand.u32 4294901760, %v2658_v40  ;;  %v2811_v55 = vand.u32 4294901760, %v2810_v33 }
 0x3d8   : > { %v8982_v61 = vsub.f32 %v2658_v40, %v8979_v53  ;;  %6304 = vmatprep.mubr.f32.mxu1 %v2811_v55  ;;  %v2625_v50 = vpop.trf.xlu0  ;;  %6333 = vmatprep.mubr.f32.mxu0 %v8979_v53  ;;  %v2820_v54 = vsub.f32 %v8971_v35, %v2819_v42 }
 0x3d9   : > { %v2661_v7 = vsel %vm2632_vm2, %v2625_v50, 0 }
 0x3da   : > { %v2829_v8 = vand.u32 4294901760, %v8982_v61  ;;  %v8990_v12 = vand.u32 4294901760, %v2661_v7  ;;  %v2821_v9 = vand.u32 4294901760, %v2820_v54 }
 0x3dc   : > { %v8993_v38 = vsub.f32 %v2661_v7, %v8990_v12  ;;  %6305 = vmatmul.mubr.f32.gmra.mrb[10].mxu1 %v2821_v9  ;;  %v2626_v39 = vpop.trf.xlu0  ;;  %6334 = vmatmul.mubr.f32.gmra.mrb[14].mxu0 %v8990_v12  ;;  %v2830_v63 = vsub.f32 %v8982_v61, %v2829_v8 }
 0x3dd   : > { %v2664_v6 = vsel %vm2632_vm2, %v2626_v39, 0 }
 0x3de   : > { %v2839_v14 = vand.u32 4294901760, %v8993_v38  ;;  %v9001_v32 = vand.u32 4294901760, %v2664_v6  ;;  %v2831_v36 = vand.u32 4294901760, %v2830_v63 }
 0x3e0   : > { %v9004_v47 = vsub.f32 %v2664_v6, %v9001_v32  ;;  %6307 = vmatprep.mubr.f32.mxu1 %v2831_v36  ;;  %v2627_v46 = vpop.trf.xlu0  ;;  %6336 = vmatprep.mubr.f32.mxu0 %v9001_v32  ;;  %v2840_v49 = vsub.f32 %v8993_v38, %v2839_v14 }
 0x3e1   : > { %v2667_v25 = vsel %vm2632_vm2, %v2627_v46, 0 }
 0x3e2   : > { %v2849_v19 = vand.u32 4294901760, %v9004_v47  ;;  %v9012_v56 = vand.u32 4294901760, %v2667_v25  ;;  %v2841_v58 = vand.u32 4294901760, %v2840_v49 }
 0x3e4   : > { %v9015_v43 = vsub.f32 %v2667_v25, %v9012_v56  ;;  %6308 = vmatmul.mubr.f32.gmra.mrb[12].mxu1 %v2841_v58  ;;  %v2628_v30 = vpop.trf.xlu0  ;;  %6337 = vmatmul.mubr.f32.gmra.mrb[16].mxu0 %v9012_v56  ;;  %v2850_v10 = vsub.f32 %v9004_v47, %v2849_v19 }
 0x3e5   : > { %v2670_v16 = vsel %vm2632_vm2, %v2628_v30, 0 }
 0x3e6   : > { %v2859_v20 = vand.u32 4294901760, %v9015_v43  ;;  %v9023_v23 = vand.u32 4294901760, %v2670_v16  ;;  %v2851_v24 = vand.u32 4294901760, %v2850_v10 }
 0x3e8   : > { %v9026_v13 = vsub.f32 %v2670_v16, %v9023_v23  ;;  %6310 = vmatprep.mubr.f32.mxu1 %v2851_v24  ;;  %v2629_v41 = vpop.trf.xlu0  ;;  %6339 = vmatprep.mubr.f32.mxu0 %v9023_v23  ;;  %v2860_v27 = vsub.f32 %v9015_v43, %v2859_v20 }
 0x3e9   : > { %v2673_v33 = vsel %vm2632_vm2, %v2629_v41, 0 }
 0x3ea   : > { %v2869_v40 = vand.u32 4294901760, %v9026_v13  ;;  %v9034_v55 = vand.u32 4294901760, %v2673_v33  ;;  %v2861_v50 = vand.u32 4294901760, %v2860_v27 }
 0x3ec   : > { %v2878_v54 = vsub.f32 %v2673_v33, %v9034_v55  ;;  %6311 = vmatmul.mubr.f32.gmra.mrb[14].mxu1 %v2861_v50  ;;  %v2630_v7 = vpop.trf.xlu0  ;;  %6340 = vmatmul.mubr.f32.gmra.mrb[18].mxu0 %v9034_v55  ;;  %v2870_v9 = vsub.f32 %v9026_v13, %v2869_v40 }
 0x3ed   : > { %v2676_v39 = vsel %vm2632_vm2, %v2630_v7, 0 }
 0x3ee   : > { %v2879_v63 = vand.u32 4294901760, %v2878_v54  ;;  %v9042_v6 = vand.u32 4294901760, %v2676_v39  ;;  %v2871_v36 = vand.u32 4294901760, %v2870_v9 }
 0x3f0   : > { %v2888_v46 = vsub.f32 %v2676_v39, %v9042_v6  ;;  %6313 = vmatprep.mubr.f32.mxu1 %v2871_v36  ;;  %v2631_v49 = vpop.trf.xlu0  ;;  %6342 = vmatprep.mubr.f32.mxu0 %v9042_v6  ;;  %v2880_v25 = vsub.f32 %v2878_v54, %v2879_v63 }
 0x3f1   : > { %v2679_v58 = vsel %vm2632_vm2, %v2631_v49, 0 }
 0x3f2   : > { %v2889_v30 = vand.u32 4294901760, %v2888_v46  ;;  %v9047_v10 = vand.u32 4294901760, %v2679_v58  ;;  %v2881_v16 = vand.u32 4294901760, %v2880_v25 }
 0x3f4   : > { %v2898_v24 = vsub.f32 %v2679_v58, %v9047_v10  ;;  %6314 = vmatmul.mubr.f32.gmra.mrb[16].mxu1 %v2881_v16  ;;  %6343 = vmatmul.mubr.f32.gmra.mrb[20].mxu0 %v9047_v10  ;;  %v2890_v41 = vsub.f32 %v2888_v46, %v2889_v30 }
 0x3f5   : > { %6347 = vmatprep.mubr.f32.mxu0 %v8896_v5 }
 0x3f6   : > { %v2899_v27 = vand.u32 4294901760, %v2898_v24  ;;  %v2891_v33 = vand.u32 4294901760, %v2890_v41 }
 0x3f8   : > { %6316 = vmatprep.mubr.f32.mxu1 %v2891_v33  ;;  %6348 = vmatmul.mubr.f32.vlgmr.msra.gmra.mrb[6].mxu0 %v8904_v34  ;;  %v2900_v50 = vsub.f32 %v2898_v24, %v2899_v27 }
 0x3f9   : > { %6372 = vmatpush3.msra.mxu0 %v8880_v28  ;;  %6350 = vmatprep.mubr.f32.mxu0 %v8919_v21 }
 0x3fa   : > { %6397 = vmatprep.subr.mxu0 %v8885_v48  ;;  %v2901_v7 = vand.u32 4294901760, %v2900_v50 }
 0x3fc   : > { %6317 = vmatmul.mubr.f32.gmra.mrb[18].mxu1 %v2901_v7  ;;  %6351 = vmatmul.mubr.f32.gmra.mrb[8].mxu0 %v8927_v37 }
 0x3fd   : > { %6353 = vmatprep.mubr.f32.mxu0 %v8938_v52  ;;  %6481 = vmatprep.mubr.msk.f32.mxu1 %vm8079_vm0, %v8080_v1 }
 0x400   : > { %6354 = vmatmul.mubr.f32.gmra.mrb[10].mxu0 %v8949_v29 }
 0x401   : > { %6356 = vmatprep.mubr.f32.mxu0 %v8960_v22 }
 0x404   : > { %6357 = vmatmul.mubr.f32.gmra.mrb[12].mxu0 %v8971_v35 }
 0x405   : > { %6359 = vmatprep.mubr.f32.mxu0 %v8982_v61 }
 0x408   : > { %6360 = vmatmul.mubr.f32.gmra.mrb[14].mxu0 %v8993_v38 }
 0x409   : > { %6362 = vmatprep.mubr.f32.mxu0 %v9004_v47 }
 0x40c   : > { %6363 = vmatmul.mubr.f32.gmra.mrb[16].mxu0 %v9015_v43 }
 0x40d   : > { %6365 = vmatprep.mubr.f32.mxu0 %v9026_v13 }
 0x410   : > { %6366 = vmatmul.mubr.f32.gmra.mrb[18].mxu0 %v2878_v54 }
 0x411   : > { %6368 = vmatprep.mubr.f32.mxu0 %v2888_v46 }
 0x414   : > { %6369 = vmatmul.mubr.f32.gmra.mrb[20].mxu0 %v2898_v24 }
 0x415   : > { %6373 = vmatprep.mubr.f32.mxu0 %v2749_v31 }
 0x418   : > { %6374 = vmatmul.mubr.f32.vlgmr.msra.gmra.mrb[6].mxu0 %v2759_v57 }
 0x419   : > { %6398 = vmatpush3.msra.mxu0 %v8885_v48  ;;  %6376 = vmatprep.mubr.f32.mxu0 %v2769_v44 }
 0x41a   : > { %6423 = vmatprep.subr.mxu0 %v8880_v28 }
 0x41c   : > { %6377 = vmatmul.mubr.f32.gmra.mrb[8].mxu0 %v2779_v60 }
 0x41d   : > { %6379 = vmatprep.mubr.f32.mxu0 %v2789_v2 }
 0x420   : > { %6380 = vmatmul.mubr.f32.gmra.mrb[10].mxu0 %v2799_v17 }
 0x421   : > { %6382 = vmatprep.mubr.f32.mxu0 %v2809_v26 }
 0x424   : > { %6383 = vmatmul.mubr.f32.gmra.mrb[12].mxu0 %v2819_v42 }
 0x425   : > { %6385 = vmatprep.mubr.f32.mxu0 %v2829_v8 }
 0x428   : > { %6386 = vmatmul.mubr.f32.gmra.mrb[14].mxu0 %v2839_v14 }
 0x429   : > { %6388 = vmatprep.mubr.f32.mxu0 %v2849_v19 }
 0x42c   : > { %6389 = vmatmul.mubr.f32.gmra.mrb[16].mxu0 %v2859_v20 }
 0x42d   : > { %6391 = vmatprep.mubr.f32.mxu0 %v2869_v40 }
 0x430   : > { %6392 = vmatmul.mubr.f32.gmra.mrb[18].mxu0 %v2879_v63 }
 0x431   : > { %6394 = vmatprep.mubr.f32.mxu0 %v2889_v30 }
 0x434   : > { %6395 = vmatmul.mubr.f32.gmra.mrb[20].mxu0 %v2899_v27 }
 0x435   : > { %6399 = vmatprep.mubr.f32.mxu0 %v8893_v4 }
 0x438   : > { %6400 = vmatmul.mubr.f32.vlgmr.msra.gmra.mrb[6].mxu0 %v8901_v3 }
 0x439   : > { %6424 = vmatpush3.msra.mxu0 %v8880_v28  ;;  %6402 = vmatprep.mubr.f32.mxu0 %v8912_v62 }
 0x43a   : > { %7247 = vmatprep.subr.bf16.mxu0 %v8078_v0 }
 0x43c   : > { %6403 = vmatmul.mubr.f32.gmra.mrb[8].mxu0 %v8924_v45 }
 0x43d   : > { %6405 = vmatprep.mubr.f32.mxu0 %v8935_v51 }
 0x440   : > { %6406 = vmatmul.mubr.f32.gmra.mrb[10].mxu0 %v8946_v11 }
 0x441   : > { %6408 = vmatprep.mubr.f32.mxu0 %v8957_v18 }
 0x444   : > { %6409 = vmatmul.mubr.f32.gmra.mrb[12].mxu0 %v8968_v15 }
 0x445   : > { %6411 = vmatprep.mubr.f32.mxu0 %v8979_v53 }
 0x448   : > { %6412 = vmatmul.mubr.f32.gmra.mrb[14].mxu0 %v8990_v12 }
 0x449   : > { %6414 = vmatprep.mubr.f32.mxu0 %v9001_v32 }
 0x44c   : > { %6415 = vmatmul.mubr.f32.gmra.mrb[16].mxu0 %v9012_v56 }
 0x44d   : > { %6417 = vmatprep.mubr.f32.mxu0 %v9023_v23 }
 0x450   : > { %6418 = vmatmul.mubr.f32.gmra.mrb[18].mxu0 %v9034_v55 }
 0x451   : > { %6420 = vmatprep.mubr.f32.mxu0 %v9042_v6 }
 0x454   : > { %6421 = vmatmul.mubr.f32.gmra.mrb[20].mxu0 %v9047_v10 }
 0x455   : > { %6425 = vmatprep.mubr.f32.mxu0 %v8893_v4 }
 0x458   : > { %6426 = vmatmul.mubr.f32.vlgmr.msra.gmra.mrb[6].mxu0 %v8901_v3 }
 0x459   : > { %6428 = vmatprep.mubr.f32.mxu0 %v8912_v62 }
 0x45c   : > { %6429 = vmatmul.mubr.f32.gmra.mrb[8].mxu0 %v8924_v45 }
 0x45d   : > { %6431 = vmatprep.mubr.f32.mxu0 %v8935_v51 }
 0x460   : > { %6432 = vmatmul.mubr.f32.gmra.mrb[10].mxu0 %v8946_v11 }
 0x461   : > { %6434 = vmatprep.mubr.f32.mxu0 %v8957_v18 }
 0x464   : > { %6435 = vmatmul.mubr.f32.gmra.mrb[12].mxu0 %v8968_v15 }
 0x465   : > { %6437 = vmatprep.mubr.f32.mxu0 %v8979_v53 }
 0x468   : > { %6438 = vmatmul.mubr.f32.gmra.mrb[14].mxu0 %v8990_v12 }
 0x469   : > { %6440 = vmatprep.mubr.f32.mxu0 %v9001_v32 }
 0x46c   : > { %6441 = vmatmul.mubr.f32.gmra.mrb[16].mxu0 %v9012_v56 }
 0x46d   : > { %6443 = vmatprep.mubr.f32.mxu0 %v9023_v23 }
 0x470   : > { %6444 = vmatmul.mubr.f32.gmra.mrb[18].mxu0 %v9034_v55 }
 0x471   : > { %6446 = vmatprep.mubr.f32.mxu0 %v9042_v6 }
 0x474   : > { %6447 = vmatmul.mubr.f32.gmra.mrb[20].mxu0 %v9047_v10 }
 0x475   : > { %6691 = vmatprep.mubr.msk.f32.mxu0 %vm8079_vm0, %v8080_v1 }
 0x497   : > { %v6297_v28 = vpop.f32.mrb[4].mxu1 }
 0x498   : > { %v2753_v48 = vpop.f32.mrb[5].mxu1 }
 0x49f   : > { %v6300_v4 = vpop.f32.mrb[6].mxu1 }
 0x4a0   : > { %v2773_v5 = vpop.f32.mrb[7].mxu1 }
 0x4a7   : > { %v6303_v31 = vpop.f32.mrb[8].mxu1 }
 0x4a8   : > { %v2793_v3 = vpop.f32.mrb[9].mxu1 }
 0x4af   : > { %v6306_v34 = vpop.f32.mrb[10].mxu1 }
 0x4b0   : > { %v2813_v57 = vpop.f32.mrb[11].mxu1 }
 0x4b7   : > { %v9132_v62 = vpop.f32.mrb[12].mxu1 }
 0x4b8   : > { %v9134_v21 = vpop.f32.mrb[13].mxu1 }
 0x4bf   : > { %v9136_v44 = vpop.f32.mrb[14].mxu1 }
 0x4c0   : > { %v9138_v45 = vpop.f32.mrb[15].mxu1 }
 0x4c7   : > { %v9140_v37 = vpop.f32.mrb[16].mxu1 }
 0x4c8   : > { %v9142_v60 = vpop.f32.mrb[17].mxu1 }
 0x4cf   : > { %v9144_v51 = vpop.f32.mrb[18].mxu1 }
 0x4d0   : > { %v9146_v52 = vpop.f32.mrb[19].mxu1 }
 0x52b   : > { %v6427_v2 = vpop.f32.mrb[6].mxu0 }
 0x52c   : > { %v7434_v11 = vadd.f32 %v6427_v2, %v6297_v28  ;;  %v3678_v29 = vpop.f32.mrb[7].mxu0 }
 0x52d   : > { %v7435_v17 = vadd.f32 %v3678_v29, %v2753_v48 }
 0x52e   : > { %v3776_v18 = vand.u32 4294901760, %v7434_v11 }
 0x52f   : > { %v3773_v22 = vand.u32 4294901760, %v7435_v17  ;;  %v6430_v26 = vpop.f32.mrb[8].mxu0 }
 0x530   : > { %v9148_v15 = vsub.f32 %v7434_v11, %v3776_v18  ;;  %v7436_v35 = vadd.f32 %v6430_v26, %v6300_v4  ;;  %v3690_v42 = vpop.f32.mrb[9].mxu0 }
 0x531   : > { %v9150_v53 = vpack.c.bf16 %v3776_v18, %v3773_v22  ;;  %v9152_v61 = vsub.f32 %v7435_v17, %v3773_v22  ;;  %v7437_v8 = vadd.f32 %v3690_v42, %v2773_v5 }
 0x532   : > { %v3873_v12 = vand.u32 4294901760, %v9148_v15  ;;  %v3782_v38 = vand.u32 4294901760, %v7436_v35 }
 0x533   : > { %v3866_v14 = vand.u32 4294901760, %v9152_v61  ;;  %v7152_v32 = vpack.c.bf16 %v9148_v15, %v9152_v61  ;;  %v3779_v47 = vand.u32 4294901760, %v7437_v8  ;;  %v6433_v19 = vpop.f32.mrb[10].mxu0  ;;  %7105 = vmatpush3.bf16.xpose.msra.mxu1 %v9150_v53 }
 0x534   : > { %v3874_v56 = vsub.f32 %v9148_v15, %v3873_v12  ;;  %v9160_v43 = vsub.f32 %v7436_v35, %v3782_v38  ;;  %v7438_v20 = vadd.f32 %v6433_v19, %v6303_v31  ;;  %v3702_v23 = vpop.f32.mrb[11].mxu0  ;;  %7106 = vmatprep.subr.bf16.mxu1 %v8078_v0 }
 0x535   : > { %v3867_v13 = vsub.f32 %v9152_v61, %v3866_v14  ;;  %v9164_v40 = vpack.c.bf16 %v3782_v38, %v3779_v47  ;;  %v9166_v55 = vsub.f32 %v7437_v8, %v3779_v47  ;;  %v7439_v54 = vadd.f32 %v3702_v23, %v2793_v3  ;;  %v4419_v61 = vld [vmem:[#allocation13] sm:$0xff] }
 0x536   : > { %v3875_v9 = vand.u32 4294901760, %v3874_v56  ;;  %v3887_v39 = vand.u32 4294901760, %v9160_v43  ;;  %v3788_v63 = vand.u32 4294901760, %v7438_v20  ;;  %v9169_v6 = vpack.c.bf16 %v3873_v12, %v3866_v14 }
 0x537   : > { %v3868_v36 = vand.u32 4294901760, %v3867_v13  ;;  %v3880_v46 = vand.u32 4294901760, %v9166_v55  ;;  %v7155_v49 = vpack.c.bf16 %v9160_v43, %v9166_v55  ;;  %v3785_v25 = vand.u32 4294901760, %v7439_v54  ;;  %v6436_v58 = vpop.f32.mrb[12].mxu0 }
 0x538   : > { %v3888_v30 = vsub.f32 %v9160_v43, %v3887_v39  ;;  %v9175_v10 = vsub.f32 %v7438_v20, %v3788_v63  ;;  %v7440_v16 = vadd.f32 %v6436_v58, %v6306_v34  ;;  %v3714_v24 = vpop.f32.mrb[13].mxu0  ;;  %v4421_v43 = vld [vmem:[#allocation13 + $0x10] sm:$0xff] }
 0x539   : > { %v3881_v41 = vsub.f32 %v9166_v55, %v3880_v46  ;;  %v9178_v27 = vpack.c.bf16 %v3788_v63, %v3785_v25  ;;  %v9180_v33 = vsub.f32 %v7439_v54, %v3785_v25  ;;  %v7441_v50 = vadd.f32 %v3714_v24, %v2813_v57 }
 0x53a   : > { %v3889_v7 = vand.u32 4294901760, %v3888_v30  ;;  %v3901_v28 = vand.u32 4294901760, %v9175_v10  ;;  %v3794_v48 = vand.u32 4294901760, %v7440_v16  ;;  %v9183_v4 = vpack.c.bf16 %v3875_v9, %v3868_v36 }
 0x53b   : > { %v3882_v5 = vand.u32 4294901760, %v3881_v41  ;;  %v3894_v31 = vand.u32 4294901760, %v9180_v33  ;;  %v7158_v3 = vpack.c.bf16 %v9175_v10, %v9180_v33  ;;  %v3791_v34 = vand.u32 4294901760, %v7441_v50  ;;  %v6439_v2 = vpop.f32.mrb[14].mxu0  ;;  %7108 = vmatpush3.bf16.xpose.msra.mxu1 %v9164_v40 }
 0x53c   : > { %v3902_v11 = vsub.f32 %v9175_v10, %v3901_v28  ;;  %v9190_v29 = vsub.f32 %v7440_v16, %v3794_v48  ;;  %v7442_v57 = vadd.f32 %v6439_v2, %v9132_v62  ;;  %v3726_v17 = vpop.f32.mrb[15].mxu0  ;;  %7109 = vmatprep.subr.bf16.mxu1 %v8078_v0  ;;  %v9194_v18 = vpack.c.bf16 %v3887_v39, %v3880_v46  ;;  %v4422_v10 = vld [vmem:[#allocation13 + $0x18] sm:$0xff] }
 0x53d   : > { %v3895_v22 = vsub.f32 %v9180_v33, %v3894_v31  ;;  %v9197_v26 = vpack.c.bf16 %v3794_v48, %v3791_v34  ;;  %v9199_v35 = vsub.f32 %v7441_v50, %v3791_v34  ;;  %v7443_v42 = vadd.f32 %v3726_v17, %v9134_v21 }
 0x53e   : > { %v3903_v8 = vand.u32 4294901760, %v3902_v11  ;;  %v3915_v12 = vand.u32 4294901760, %v9190_v29  ;;  %v3800_v38 = vand.u32 4294901760, %v7442_v57  ;;  %v9203_v14 = vpack.c.bf16 %v3889_v7, %v3882_v5 }
 0x53f   : > { %v3896_v62 = vand.u32 4294901760, %v3895_v22  ;;  %v3908_v47 = vand.u32 4294901760, %v9199_v35  ;;  %v7161_v19 = vpack.c.bf16 %v9190_v29, %v9199_v35  ;;  %v3797_v56 = vand.u32 4294901760, %v7443_v42  ;;  %v6442_v20 = vpop.f32.mrb[16].mxu0 }
 0x540   : > { %v3916_v23 = vsub.f32 %v9190_v29, %v3915_v12  ;;  %v9209_v13 = vsub.f32 %v7442_v57, %v3800_v38  ;;  %v7444_v21 = vadd.f32 %v6442_v20, %v9136_v44  ;;  %v3738_v54 = vpop.f32.mrb[17].mxu0  ;;  %v9212_v9 = vpack.c.bf16 %v3901_v28, %v3894_v31 }
 0x541   : > { %v3909_v39 = vsub.f32 %v9199_v35, %v3908_v47  ;;  %v9215_v63 = vpack.c.bf16 %v3800_v38, %v3797_v56  ;;  %v9217_v36 = vsub.f32 %v7443_v42, %v3797_v56  ;;  %v7445_v46 = vadd.f32 %v3738_v54, %v9138_v45 }
 0x542   : > { %v3917_v25 = vand.u32 4294901760, %v3916_v23  ;;  %v3929_v58 = vand.u32 4294901760, %v9209_v13  ;;  %v3806_v30 = vand.u32 4294901760, %v7444_v21  ;;  %v9221_v16 = vpack.c.bf16 %v3903_v8, %v3896_v62 }
 0x543   : > { %v3910_v24 = vand.u32 4294901760, %v3909_v39  ;;  %v3922_v44 = vand.u32 4294901760, %v9217_v36  ;;  %v7164_v41 = vpack.c.bf16 %v9209_v13, %v9217_v36  ;;  %v3803_v50 = vand.u32 4294901760, %v7445_v46  ;;  %v6445_v7 = vpop.f32.mrb[18].mxu0  ;;  %7111 = vmatpush3.bf16.xpose.msra.mxu1 %v9178_v27 }
 0x544   : > { %v3930_v28 = vsub.f32 %v9209_v13, %v3929_v58  ;;  %v9228_v48 = vsub.f32 %v7444_v21, %v3806_v30  ;;  %v7446_v45 = vadd.f32 %v6445_v7, %v9140_v37  ;;  %v3750_v5 = vpop.f32.mrb[19].mxu0  ;;  %7112 = vmatprep.subr.bf16.mxu1 %v8078_v0  ;;  %v9232_v31 = vpack.c.bf16 %v3915_v12, %v3908_v47  ;;  %v4426_v13 = vld [vmem:[#allocation13 + $0x38] sm:$0xff] }
 0x545   : > { %v3923_v34 = vsub.f32 %v9217_v36, %v3922_v44  ;;  %v9235_v2 = vpack.c.bf16 %v3806_v30, %v3803_v50  ;;  %v9237_v11 = vsub.f32 %v7445_v46, %v3803_v50  ;;  %v7447_v57 = vadd.f32 %v3750_v5, %v9142_v60  ;;  %v4427_v36 = vld [vmem:[#allocation13 + $0x40] sm:$0xff] }
 0x546   : > { %v3931_v17 = vand.u32 4294901760, %v3930_v28  ;;  %v3943_v22 = vand.u32 4294901760, %v9228_v48  ;;  %v3812_v42 = vand.u32 4294901760, %v7446_v45  ;;  %v9241_v8 = vpack.c.bf16 %v3917_v25, %v3910_v24 }
 0x547   : > { %v3924_v37 = vand.u32 4294901760, %v3923_v34  ;;  %v3936_v38 = vand.u32 4294901760, %v9237_v11  ;;  %v3809_v62 = vand.u32 4294901760, %v7447_v57  ;;  %v6448_v47 = vpop.f32.mrb[20].mxu0  ;;  %v9250_v21 = vpack.c.bf16 %v3929_v58, %v3922_v44 }
 0x548   : > { %v3944_v56 = vsub.f32 %v9228_v48, %v3943_v22  ;;  %v9247_v20 = vsub.f32 %v7446_v45, %v3812_v42  ;;  %v7448_v60 = vadd.f32 %v6448_v47, %v9144_v51  ;;  %v3762_v23 = vpop.f32.mrb[21].mxu0  ;;  %v4436_v55 = vand.u32 4294901760, %v4419_v61 }
 0x549   : > { %v3937_v54 = vsub.f32 %v9237_v11, %v3936_v38  ;;  %v9253_v39 = vpack.c.bf16 %v3812_v42, %v3809_v62  ;;  %v9255_v46 = vsub.f32 %v7447_v57, %v3809_v62  ;;  %v7449_v25 = vadd.f32 %v3762_v23, %v9146_v52 }
 0x54a   : > { %v3945_v30 = vand.u32 4294901760, %v3944_v56  ;;  %v3957_v24 = vand.u32 4294901760, %v9247_v20  ;;  %v3818_v50 = vand.u32 4294901760, %v7448_v60  ;;  %v7140_v7 = vpack.c.bf16 %v3931_v17, %v3924_v37 }
 0x54b   : > { %v3938_v28 = vand.u32 4294901760, %v3937_v54  ;;  %v3950_v45 = vand.u32 4294901760, %v9255_v46  ;;  %v3815_v58 = vand.u32 4294901760, %v7449_v25  ;;  %7114 = vmatpush3.bf16.xpose.msra.mxu1 %v9197_v26  ;;  %v9267_v52 = vpack.c.bf16 %v3943_v22, %v3936_v38 }
 0x54c   : > { %v3958_v44 = vsub.f32 %v9247_v20, %v3957_v24  ;;  %v9264_v5 = vsub.f32 %v7448_v60, %v3818_v50  ;;  %7115 = vmatprep.subr.bf16.mxu1 %v8078_v0  ;;  %v9775_v15 = vpack.c.bf16 %v9247_v20, %v9255_v46  ;;  %v4442_v33 = vand.u32 4294901760, %v4421_v43 }
 0x54d   : > { %v3951_v34 = vsub.f32 %v9255_v46, %v3950_v45  ;;  %v9270_v57 = vpack.c.bf16 %v3818_v50, %v3815_v58  ;;  %v3963_v17 = vsub.f32 %v7449_v25, %v3815_v58  ;;  %v7143_v42 = vpack.c.bf16 %v3945_v30, %v3938_v28 }
 0x54e   : > { %v3959_v37 = vand.u32 4294901760, %v3958_v44  ;;  %v3971_v62 = vand.u32 4294901760, %v9264_v5  ;;  %v9273_v47 = vpack.c.bf16 %v3957_v24, %v3950_v45  ;;  %v9284_v30 = vand.u32 4294901760, %v8889_v59 }
 0x54f   : > { %v3952_v56 = vand.u32 4294901760, %v3951_v34  ;;  %v3964_v23 = vand.u32 4294901760, %v3963_v17  ;;  %v7173_v60 = vpack.c.bf16 %v9264_v5, %v3963_v17  ;;  %v4445_v29 = vand.u32 4294901760, %v4422_v10 }
 0x550   : > { %v3972_v54 = vsub.f32 %v9264_v5, %v3971_v62  ;;  %v3854_v24 = vsub.f32 %v8889_v59, %v9284_v30  ;;  %v9774_v59 = vpack.c.bf16 %v9228_v48, %v9237_v11  ;;  %v9366_v48 = vsub.f32 %v4421_v43, %v4442_v33  ;;  %v4428_v11 = vld [vmem:[#allocation13 + $0x48] sm:$0xff] }
 0x551   : > { %v3965_v51 = vsub.f32 %v3963_v17, %v3964_v23  ;;  %v7146_v22 = vpack.c.bf16 %v3959_v37, %v3952_v56  ;;  %v9277_v38 = vpack.c.bf16 %v3971_v62, %v3964_v23  ;;  %v9370_v20 = vsub.f32 %v4422_v10, %v4445_v29 }
 0x552   : > { %v3973_v12 = vand.u32 4294901760, %v3972_v54  ;;  %v3855_v28 = vand.u32 4294901760, %v3854_v24  ;;  %v4457_v58 = vand.u32 4294901760, %v4426_v13  ;;  %v4460_v44 = vand.u32 4294901760, %v4427_v36 }
 0x553   : > { %v3966_v50 = vand.u32 4294901760, %v3965_v51  ;;  %7117 = vmatpush3.bf16.xpose.msra.mxu1 %v9215_v63  ;;  %v4463_v5 = vand.u32 4294901760, %v4428_v11 }
 0x554   : > { %7118 = vmatprep.subr.bf16.mxu1 %v8078_v0  ;;  %v3856_v45 = vsub.f32 %v3854_v24, %v3855_v28  ;;  %v9380_v17 = vsub.f32 %v4426_v13, %v4457_v58 }
 0x555   : > { %v7149_v25 = vpack.c.bf16 %v3973_v12, %v3966_v50  ;;  %v9384_v37 = vsub.f32 %v4428_v11, %v4463_v5  ;;  %v9398_v23 = vpack.c.bf16 %v4463_v5, %v4460_v44 }
 0x556   : > { %v3857_v12 = vand.u32 4294901760, %v3856_v45  ;;  %v4578_v11 = vand.u32 4294901760, %v9380_v17 }
 0x55b   : > { %7120 = vmatpush3.bf16.xpose.msra.mxu1 %v9235_v2 }
 0x55c   : > { %7121 = vmatprep.subr.bf16.mxu1 %v8078_v0 }
 0x563   : > { %7123 = vmatpush3.bf16.xpose.msra.mxu1 %v9253_v39 }
 0x564   : > { %7124 = vmatprep.subr.bf16.mxu1 %v8078_v0 }
 0x56b   : > { %7126 = vmatpush3.bf16.xpose.msra.mxu1 %v9270_v57 }
 0x56c   : > { %7127 = vmatprep.subr.bf16.mxu1 %v8078_v0 }
 0x572   : > { %6482 = vmatmul.mubr.f32.vlgmr.msra.gmra.mrb[20].mxu1 %v3857_v12 }
 0x573   : > { %7129 = vmatpush3.bf16.xpose.msra.mxu1 %v9183_v4  ;;  %6516 = vmatprep.mubr.msk.f32.mxu1 %vm8079_vm0, %v8080_v1  ;;  %v4423_v4 = vld [vmem:[#allocation13 + $0x20] sm:$0xff] }
 0x574   : > { %7130 = vmatprep.subr.bf16.mxu1 %v8078_v0  ;;  %v4448_v35 = vand.u32 4294901760, %v4423_v4 }
 0x576   : > { %v9372_v46 = vsub.f32 %v4423_v4, %v4448_v35 }
 0x578   : > { %v4557_v10 = vand.u32 4294901760, %v9372_v46 }
 0x57b   : > { %7132 = vmatpush3.bf16.xpose.msra.mxu1 %v9203_v14 }
 0x57c   : > { %7133 = vmatprep.subr.bf16.mxu1 %v8078_v0 }
 0x583   : > { %7135 = vmatpush3.bf16.xpose.msra.mxu1 %v9221_v16 }
 0x584   : > { %7136 = vmatprep.subr.bf16.mxu1 %v8078_v0 }
 0x58b   : > { %7138 = vmatpush3.bf16.xpose.msra.mxu1 %v9241_v8  ;;  %v9368_v8 = vpack.c.bf16 %v4445_v29, %v4442_v33  ;;  %v4558_v29 = vsub.f32 %v9372_v46, %v4557_v10 }
 0x58c   : > { %7139 = vmatprep.subr.bf16.mxu1 %v8078_v0 }
 0x593   : > { %7141 = vmatpush3.bf16.xpose.msra.mxu1 %v7140_v7 }
 0x594   : > { %7142 = vmatprep.subr.bf16.mxu1 %v8078_v0 }
 0x59b   : > { %7144 = vmatpush3.bf16.xpose.msra.mxu1 %v7143_v42  ;;  %v9382_v42 = vsub.f32 %v4427_v36, %v4460_v44  ;;  %v4579_v44 = vsub.f32 %v9380_v17, %v4578_v11 }
 0x59c   : > { %7145 = vmatprep.subr.bf16.mxu1 %v8078_v0 }
 0x5a3   : > { %7147 = vmatpush3.bf16.xpose.msra.mxu1 %v7146_v22 }
 0x5a4   : > { %7148 = vmatprep.subr.bf16.mxu1 %v8078_v0 }
 0x5ab   : > { %7150 = vmatpush3.bf16.xpose.msra.mxu1 %v7149_v25 }
 0x5ac   : > { %7151 = vmatprep.subr.bf16.mxu1 %v8078_v0 }
 0x5b2   : > { %6517 = vmatmul.mubr.f32.vlgmr.msra.gmra.mrb[20].mxu1 %v9284_v30 }
 0x5b3   : > { %7153 = vmatpush3.bf16.xpose.msra.mxu1 %v7152_v32  ;;  %6551 = vmatprep.mubr.msk.f32.mxu1 %vm8079_vm0, %v8080_v1  ;;  %v4420_v32 = vld [vmem:[#allocation13 + $0x8] sm:$0xff] }
 0x5b4   : > { %7154 = vmatprep.subr.bf16.mxu1 %v8078_v0 }
 0x5bb   : > { %7156 = vmatpush3.bf16.xpose.msra.mxu1 %v7155_v49  ;;  %v4439_v49 = vand.u32 4294901760, %v4420_v32 }
 0x5bc   : > { %7157 = vmatprep.subr.bf16.mxu1 %v8078_v0 }
 0x5bd   : > { %v9360_v16 = vpack.c.bf16 %v4439_v49, %v4436_v55 }
 0x5bf   : > { %7249 = vmatpush3.bf16.msra.mxu0 %v9360_v16 }
 0x5c0   : > { %7250 = vmatprep.subr.bf16.mxu0 %v8078_v0 }
 0x5c3   : > { %7159 = vmatpush3.bf16.xpose.msra.mxu1 %v7158_v3  ;;  %v4424_v3 = vld [vmem:[#allocation13 + $0x28] sm:$0xff]  ;;  %7252 = vmatpush3.bf16.msra.mxu0 %v9368_v8 }
 0x5c4   : > { %7160 = vmatprep.subr.bf16.mxu1 %v8078_v0  ;;  %v4451_v14 = vand.u32 4294901760, %v4424_v3  ;;  %7253 = vmatprep.subr.bf16.mxu0 %v8078_v0 }
 0x5c6   : > { %v9375_v7 = vsub.f32 %v4424_v3, %v4451_v14  ;;  %v9388_v62 = vpack.c.bf16 %v4451_v14, %v4448_v35 }
 0x5c8   : > { %7255 = vmatpush3.bf16.msra.mxu0 %v9388_v62  ;;  %v4564_v33 = vand.u32 4294901760, %v9375_v7 }
 0x5c9   : > { %7256 = vmatprep.subr.bf16.mxu0 %v8078_v0 }
 0x5ca   : > { %v4565_v35 = vsub.f32 %v9375_v7, %v4564_v33 }
 0x5cb   : > { %7162 = vmatpush3.bf16.xpose.msra.mxu1 %v7161_v19  ;;  %v4425_v19 = vld [vmem:[#allocation13 + $0x30] sm:$0xff] }
 0x5cc   : > { %7163 = vmatprep.subr.bf16.mxu1 %v8078_v0  ;;  %v4454_v51 = vand.u32 4294901760, %v4425_v19  ;;  %v4566_v13 = vand.u32 4294901760, %v4565_v35 }
 0x5ce   : > { %v9378_v34 = vsub.f32 %v4425_v19, %v4454_v51  ;;  %v9393_v56 = vpack.c.bf16 %v4457_v58, %v4454_v51  ;;  %v4559_v19 = vand.u32 4294901760, %v4558_v29 }
 0x5d0   : > { %7258 = vmatpush3.bf16.msra.mxu0 %v9393_v56  ;;  %v4571_v36 = vand.u32 4294901760, %v9378_v34  ;;  %v7278_v51 = vpack.c.bf16 %v4566_v13, %v4559_v19 }
 0x5d1   : > { %7259 = vmatprep.subr.bf16.mxu0 %v8078_v0 }
 0x5d2   : > { %v4572_v58 = vsub.f32 %v9378_v34, %v4571_v36 }
 0x5d3   : > { %7165 = vmatpush3.bf16.xpose.msra.mxu1 %v7164_v41  ;;  %v9364_v41 = vsub.f32 %v4420_v32, %v4439_v49  ;;  %v4550_v32 = vand.u32 4294901760, %v9370_v20 }
 0x5d4   : > { %7166 = vmatprep.subr.bf16.mxu1 %v8078_v0  ;;  %7261 = vmatpush3.bf16.msra.mxu0 %v9398_v23  ;;  %v4573_v5 = vand.u32 4294901760, %v4572_v58 }
 0x5d5   : > { %7262 = vmatprep.subr.bf16.mxu0 %v8078_v0  ;;  %v4536_v54 = vand.u32 4294901760, %v9364_v41  ;;  %v4551_v49 = vsub.f32 %v9370_v20, %v4550_v32 }
 0x5d7   : > { %v4537_v50 = vsub.f32 %v9364_v41, %v4536_v54  ;;  %v4552_v3 = vand.u32 4294901760, %v4551_v49 }
 0x5db   : > { %7168 = vmatpush3.bf16.xpose.msra.mxu1 %v9774_v59 }
 0x5dc   : > { %7169 = vmatprep.subr.bf16.mxu1 %v8078_v0 }
 0x5e3   : > { %7171 = vmatpush3.bf16.xpose.msra.mxu1 %v9775_v15  ;;  %v4538_v15 = vand.u32 4294901760, %v4537_v50 }
 0x5e4   : > { %7172 = vmatprep.subr.bf16.mxu1 %v8078_v0 }
 0x5eb   : > { %7174 = vmatpush3.bf16.xpose.msra.mxu1 %v7173_v60 }
 0x5ec   : > { %7175 = vmatprep.subr.bf16.mxu1 %v8078_v0 }
 0x5f2   : > { %6552 = vmatmul.mubr.f32.vlgmr.msra.gmra.mrb[20].mxu1 %v3854_v24 }
 0x5f3   : > { %7177 = vmatpush3.bf16.xpose.msra.mxu1 %v9150_v53  ;;  %6586 = vmatprep.mubr.msk.f32.mxu1 %vm8079_vm0, %v8080_v1 }
 0x5f4   : > { %7178 = vmatprep.subr.bf16.mxu1 %v8078_v0 }
 0x5fb   : > { %7180 = vmatpush3.bf16.xpose.msra.mxu1 %v9164_v40 }
 0x5fc   : > { %7181 = vmatprep.subr.bf16.mxu1 %v8078_v0 }
 0x603   : > { %7183 = vmatpush3.bf16.xpose.msra.mxu1 %v9178_v27 }
 0x604   : > { %7184 = vmatprep.subr.bf16.mxu1 %v8078_v0 }
 0x60b   : > { %7186 = vmatpush3.bf16.xpose.msra.mxu1 %v9197_v26 }
 0x60c   : > { %7187 = vmatprep.subr.bf16.mxu1 %v8078_v0 }
 0x613   : > { %7189 = vmatpush3.bf16.xpose.msra.mxu1 %v9215_v63 }
 0x614   : > { %7190 = vmatprep.subr.bf16.mxu1 %v8078_v0 }
 0x61b   : > { %7192 = vmatpush3.bf16.xpose.msra.mxu1 %v9235_v2 }
 0x61c   : > { %7193 = vmatprep.subr.bf16.mxu1 %v8078_v0 }
 0x623   : > { %7195 = vmatpush3.bf16.xpose.msra.mxu1 %v9253_v39 }
 0x624   : > { %7196 = vmatprep.subr.bf16.mxu1 %v8078_v0 }
 0x62b   : > { %7198 = vmatpush3.bf16.xpose.msra.mxu1 %v9270_v57 }
 0x62c   : > { %7199 = vmatprep.subr.bf16.mxu1 %v8078_v0 }
 0x632   : > { %6587 = vmatmul.mubr.f32.vlgmr.msra.gmra.mrb[20].mxu1 %v3855_v28 }
 0x633   : > { %7201 = vmatpush3.bf16.xpose.msra.mxu1 %v9169_v6  ;;  %6621 = vmatprep.mubr.msk.f32.mxu1 %vm8079_vm0, %v8080_v1  ;;  %v9362_v6 = vsub.f32 %v4419_v61, %v4436_v55  ;;  %v4543_v61 = vand.u32 4294901760, %v9366_v48 }
 0x634   : > { %7202 = vmatprep.subr.bf16.mxu1 %v8078_v0 }
 0x635   : > { %v4529_v60 = vand.u32 4294901760, %v9362_v6  ;;  %v4544_v55 = vsub.f32 %v9366_v48, %v4543_v61 }
 0x637   : > { %v4545_v4 = vand.u32 4294901760, %v4544_v55 }
 0x639   : > { %v9483_v14 = vpack.c.bf16 %v4552_v3, %v4545_v4 }
 0x63b   : > { %7204 = vmatpush3.bf16.xpose.msra.mxu1 %v9194_v18 }
 0x63c   : > { %7205 = vmatprep.subr.bf16.mxu1 %v8078_v0 }
 0x643   : > { %7207 = vmatpush3.bf16.xpose.msra.mxu1 %v9212_v9  ;;  %v4431_v9 = vld [vmem:[#allocation13 + $0x60] sm:$0xff] }
 0x644   : > { %7208 = vmatprep.subr.bf16.mxu1 %v8078_v0 }
 0x64b   : > { %7210 = vmatpush3.bf16.xpose.msra.mxu1 %v9232_v31  ;;  %v4472_v31 = vand.u32 4294901760, %v4431_v9 }
 0x64c   : > { %7211 = vmatprep.subr.bf16.mxu1 %v8078_v0 }
 0x64d   : > { %v9455_v24 = vsub.f32 %v4431_v9, %v4472_v31 }
 0x653   : > { %7213 = vmatpush3.bf16.xpose.msra.mxu1 %v9250_v21 }
 0x654   : > { %7214 = vmatprep.subr.bf16.mxu1 %v8078_v0 }
 0x65b   : > { %7216 = vmatpush3.bf16.xpose.msra.mxu1 %v9267_v52  ;;  %v4434_v52 = vld [vmem:[#allocation13 + $0x78] sm:$0xff] }
 0x65c   : > { %7217 = vmatprep.subr.bf16.mxu1 %v8078_v0 }
 0x663   : > { %7219 = vmatpush3.bf16.xpose.msra.mxu1 %v9273_v47  ;;  %v4481_v47 = vand.u32 4294901760, %v4434_v52 }
 0x664   : > { %7220 = vmatprep.subr.bf16.mxu1 %v8078_v0 }
 0x665   : > { %v9462_v12 = vsub.f32 %v4434_v52, %v4481_v47 }
 0x667   : > { %v9743_v13 = vand.u32 4294901760, %v9462_v12 }
 0x66b   : > { %7222 = vmatpush3.bf16.xpose.msra.mxu1 %v9277_v38  ;;  %v4530_v38 = vsub.f32 %v9362_v6, %v4529_v60 }
 0x66c   : > { %7223 = vmatprep.subr.bf16.mxu1 %v8078_v0 }
 0x66d   : > { %v4531_v59 = vand.u32 4294901760, %v4530_v38 }
 0x66f   : > { %v9467_v43 = vpack.c.bf16 %v4538_v15, %v4531_v59  ;;  %v9746_v15 = vand.u32 4294901760, %v9455_v24 }
 0x671   : > { %v4614_v4 = vsub.f32 %v9455_v24, %v9746_v15 }
 0x672   : > { %6622 = vmatmul.mubr.f32.vlgmr.msra.gmra.mrb[20].mxu1 %v9284_v30 }
 0x673   : > { %7225 = vmatpush3.bf16.xpose.msra.mxu1 %v9150_v53  ;;  %6656 = vmatprep.mubr.msk.f32.mxu1 %vm8079_vm0, %v8080_v1  ;;  %v4429_v53 = vld [vmem:[#allocation13 + $0x50] sm:$0xff]  ;;  %v4615_v29 = vand.u32 4294901760, %v4614_v4 }
 0x674   : > { %7226 = vmatprep.subr.bf16.mxu1 %v8078_v0 }
 0x67b   : > { %7228 = vmatpush3.bf16.xpose.msra.mxu1 %v9164_v40  ;;  %v4430_v40 = vld [vmem:[#allocation13 + $0x58] sm:$0xff] }
 0x67c   : > { %7229 = vmatprep.subr.bf16.mxu1 %v8078_v0  ;;  %v4469_v18 = vand.u32 4294901760, %v4430_v40 }
 0x683   : > { %7231 = vmatpush3.bf16.xpose.msra.mxu1 %v9178_v27  ;;  %v4466_v27 = vand.u32 4294901760, %v4429_v53 }
 0x684   : > { %7232 = vmatprep.subr.bf16.mxu1 %v8078_v0 }
 0x685   : > { %v9451_v25 = vsub.f32 %v4429_v53, %v4466_v27  ;;  %v4580_v53 = vand.u32 4294901760, %v4579_v44 }
 0x68b   : > { %7234 = vmatpush3.bf16.xpose.msra.mxu1 %v9197_v26  ;;  %v9433_v26 = vpack.c.bf16 %v4469_v18, %v4466_v27  ;;  %v9749_v27 = vand.u32 4294901760, %v9384_v37 }
 0x68c   : > { %7235 = vmatprep.subr.bf16.mxu1 %v8078_v0 }
 0x68d   : > { %7264 = vmatpush3.bf16.msra.mxu0 %v9433_v26 }
 0x68e   : > { %7265 = vmatprep.subr.bf16.mxu0 %v8078_v0 }
 0x693   : > { %7237 = vmatpush3.bf16.xpose.msra.mxu1 %v9215_v63  ;;  %v4432_v63 = vld [vmem:[#allocation13 + $0x68] sm:$0xff] }
 0x694   : > { %7238 = vmatprep.subr.bf16.mxu1 %v8078_v0 }
 0x69b   : > { %7240 = vmatpush3.bf16.xpose.msra.mxu1 %v9235_v2  ;;  %v4475_v2 = vand.u32 4294901760, %v4432_v63 }
 0x69c   : > { %7241 = vmatprep.subr.bf16.mxu1 %v8078_v0 }
 0x69d   : > { %v9437_v21 = vpack.c.bf16 %v4475_v2, %v4472_v31  ;;  %v9457_v28 = vsub.f32 %v4432_v63, %v4475_v2  ;;  %v4593_v63 = vsub.f32 %v9384_v37, %v9749_v27 }
 0x69f   : > { %7267 = vmatpush3.bf16.msra.mxu0 %v9437_v21  ;;  %v4594_v2 = vand.u32 4294901760, %v4593_v63  ;;  %v9745_v55 = vand.u32 4294901760, %v9457_v28  ;;  %v7314_v4 = vpack.c.bf16 %v9457_v28, %v9455_v24 }
 0x6a0   : > { %7268 = vmatprep.subr.bf16.mxu0 %v8078_v0 }
 0x6a1   : > { %v4621_v3 = vsub.f32 %v9457_v28, %v9745_v55 }
 0x6a3   : > { %7243 = vmatpush3.bf16.xpose.msra.mxu1 %v9253_v39  ;;  %v4433_v39 = vld [vmem:[#allocation13 + $0x70] sm:$0xff]  ;;  %v4622_v35 = vand.u32 4294901760, %v4621_v3 }
 0x6a4   : > { %7244 = vmatprep.subr.bf16.mxu1 %v8078_v0 }
 0x6a5   : > { %v7290_v58 = vpack.c.bf16 %v4622_v35, %v4615_v29  ;;  %v2599_v29 = vpop.xlane.xlu1 %2598 }
 0x6a6   : > { %v4413_v35 = vadd.f32 1e-08, %v2599_v29  ;;  %v5760_v29 = vld [vmem:[#allocation16] ss:$0 sm:$0xff] }
 0x6a8   : > { %7723 = vrcp.f32 %v4413_v35 }
 0x6ab   : > { %7246 = vmatpush3.bf16.xpose.msra.mxu1 %v9270_v57  ;;  %v4478_v57 = vand.u32 4294901760, %v4433_v39 }
 0x6ad   : > { %v9443_v22 = vpack.c.bf16 %v4481_v47, %v4478_v57  ;;  %v9460_v45 = vsub.f32 %v4433_v39, %v4478_v57  ;;  %v9748_v39 = vand.u32 4294901760, %v9451_v25 }
 0x6af   : > { %7270 = vmatpush3.bf16.msra.mxu0 %v9443_v22  ;;  %v4600_v47 = vsub.f32 %v9451_v25, %v9748_v39  ;;  %v9744_v19 = vand.u32 4294901760, %v9460_v45  ;;  %v7317_v3 = vpack.c.bf16 %v9462_v12, %v9460_v45 }
 0x6b0   : > { %7271 = vmatprep.subr.bf16.mxu0 %v8078_v0 }
 0x6b1   : > { %v4601_v50 = vand.u32 4294901760, %v4600_v47  ;;  %v4628_v44 = vsub.f32 %v9460_v45, %v9744_v19  ;;  %v7302_v47 = vpack.c.bf16 %v9375_v7, %v9372_v46  ;;  %v9778_v46 = vand.u32 4294901760, %v9451_v25 }
 0x6b2   : > { %6657 = vmatmul.mubr.f32.vlgmr.msra.gmra.mrb[20].mxu1 %v9284_v30  ;;  %v9453_v30 = vsub.f32 %v4430_v40, %v4469_v18  ;;  %v9750_v40 = vand.u32 4294901760, %v9382_v42  ;;  %v7281_v18 = vpack.c.bf16 %v4580_v53, %v4573_v5  ;;  %v4635_v5 = vsub.f32 %v9462_v12, %v9743_v13 }
 0x6b3   : > { %v4629_v53 = vand.u32 4294901760, %v4628_v44  ;;  %v7724_v44 = vpop.eup %7723 }
 0x6b4   : > { %v4586_v9 = vsub.f32 %v9382_v42, %v9750_v40  ;;  %v9747_v52 = vand.u32 4294901760, %v9453_v30  ;;  %v9779_v7 = vand.u32 4294901760, %v9453_v30 }
 0x6b6   : > { %v4587_v31 = vand.u32 4294901760, %v4586_v9  ;;  %v4607_v38 = vsub.f32 %v9453_v30, %v9747_v52  ;;  %v4636_v9 = vand.u32 4294901760, %v4635_v5  ;;  %v4415_v5 = vmul.f32 %v7724_v44, %v4413_v35 }
 0x6b8   : > { %v7284_v57 = vpack.c.bf16 %v4594_v2, %v4587_v31  ;;  %v4608_v59 = vand.u32 4294901760, %v4607_v38  ;;  %v7293_v63 = vpack.c.bf16 %v4636_v9, %v4629_v53  ;;  %v7296_v31 = vpack.c.bf16 %v9364_v41, %v9362_v6 }
 0x6b9   : > { %v7299_v2 = vpack.c.bf16 %v9370_v20, %v9366_v48  ;;  %v7305_v38 = vpack.c.bf16 %v9380_v17, %v9378_v34  ;;  %v4416_v53 = vsub.f32 2.0, %v4415_v5  ;;  %v7350_v6 = vpack.c.bf16 %v4564_v33, %v4557_v10 }
 0x6ba   : > { %v7287_v49 = vpack.c.bf16 %v4608_v59, %v4601_v50  ;;  %v7308_v50 = vpack.c.bf16 %v9384_v37, %v9382_v42  ;;  %v7311_v59 = vpack.c.bf16 %v9453_v30, %v9451_v25  ;;  %v7353_v41 = vpack.c.bf16 %v4578_v11, %v4571_v36  ;;  %v5079_v30 = vld [vmem:[#allocation14 + $0x18] sm:$0xff] }
 0x6bb   : > { %v4417_v9 = vmul.f32 %v7724_v44, %v4416_v53  ;;  %v9776_v48 = vand.u32 4294901760, %v9382_v42  ;;  %v9777_v20 = vand.u32 4294901760, %v9384_v37  ;;  %v9780_v34 = vand.u32 4294901760, %v9455_v24 }
 0x6bc   : > { %v9781_v17 = vand.u32 4294901760, %v9457_v28  ;;  %v9782_v42 = vand.u32 4294901760, %v9460_v45  ;;  %v9783_v37 = vand.u32 4294901760, %v9462_v12  ;;  %v5100_v24 = vand.u32 4294901760, %v5079_v30 }
 0x6be   : > { %v5192_v33 = vsub.f32 %v5079_v30, %v5100_v24 }
 0x785   : > { %v4409_v13 = vpop.f32.mrb[20].mxu1 }
 0x786   : > { %v4418_v19 = vmul.f32 %v4417_v9, %v4409_v13  ;;  %v6658_v55 = vpop.f32.mrb[21].mxu1 }
 0x788   : > { %v9541_v15 = vand.u32 4294901760, %v4418_v19 }
 0x78a   : > { %v4517_v52 = vsub.f32 %v4418_v19, %v9541_v15 }
 0x78c   : > { %v4518_v39 = vand.u32 4294901760, %v4517_v52 }
 0x78e   : > { %v4519_v27 = vsub.f32 %v4517_v52, %v4518_v39 }
 0x790   : > { %v4520_v40 = vand.u32 4294901760, %v4519_v27  ;;  %v5193_v27 = vand.u32 4294901760, %v5192_v33 }
 0x792   : > { %6692 = vmatmul.mubr.f32.vlgmr.msra.gmra.mrb[22].mxu0 %v4520_v40 }
 0x793   : > { %7273 = vmatpush3.bf16.msra.mxu0 %v9467_v43  ;;  %6726 = vmatprep.mubr.msk.f32.mxu0 %vm8079_vm0, %v8080_v1  ;;  %v7344_v43 = vpack.c.bf16 %v4536_v54, %v4529_v60  ;;  %v7356_v60 = vpack.c.bf16 %v9777_v20, %v9776_v48  ;;  %v7359_v54 = vpack.c.bf16 %v9779_v7, %v9778_v46 }
 0x794   : > { %7274 = vmatprep.subr.bf16.mxu0 %v8078_v0 }
 0x797   : > { %7276 = vmatpush3.bf16.msra.mxu0 %v9483_v14  ;;  %v7347_v14 = vpack.c.bf16 %v4550_v32, %v4543_v61  ;;  %v7362_v61 = vpack.c.bf16 %v9781_v17, %v9780_v34  ;;  %v7365_v32 = vpack.c.bf16 %v9783_v37, %v9782_v42 }
 0x798   : > { %7277 = vmatprep.subr.bf16.mxu0 %v8078_v0 }
 0x79b   : > { %7279 = vmatpush3.bf16.msra.mxu0 %v7278_v51 }
 0x79c   : > { %7280 = vmatprep.subr.bf16.mxu0 %v8078_v0 }
 0x79f   : > { %7282 = vmatpush3.bf16.msra.mxu0 %v7281_v18 }
 0x7a0   : > { %7283 = vmatprep.subr.bf16.mxu0 %v8078_v0 }
 0x7a3   : > { %7285 = vmatpush3.bf16.msra.mxu0 %v7284_v57 }
 0x7a4   : > { %7286 = vmatprep.subr.bf16.mxu0 %v8078_v0 }
 0x7a7   : > { %7288 = vmatpush3.bf16.msra.mxu0 %v7287_v49 }
 0x7a8   : > { %7289 = vmatprep.subr.bf16.mxu0 %v8078_v0 }
 0x7ab   : > { %7291 = vmatpush3.bf16.msra.mxu0 %v7290_v58 }
 0x7ac   : > { %7292 = vmatprep.subr.bf16.mxu0 %v8078_v0 }
 0x7af   : > { %7294 = vmatpush3.bf16.msra.mxu0 %v7293_v63 }
 0x7b0   : > { %7295 = vmatprep.subr.bf16.mxu0 %v8078_v0 }
 0x7b2   : > { %6727 = vmatmul.mubr.f32.vlgmr.msra.gmra.mrb[22].mxu0 %v9541_v15 }
 0x7b3   : > { %7297 = vmatpush3.bf16.msra.mxu0 %v7296_v31  ;;  %6761 = vmatprep.mubr.msk.f32.mxu0 %vm8079_vm0, %v8080_v1 }
 0x7b4   : > { %7298 = vmatprep.subr.bf16.mxu0 %v8078_v0 }
 0x7b7   : > { %7300 = vmatpush3.bf16.msra.mxu0 %v7299_v2 }
 0x7b8   : > { %7301 = vmatprep.subr.bf16.mxu0 %v8078_v0 }
 0x7bb   : > { %7303 = vmatpush3.bf16.msra.mxu0 %v7302_v47 }
 0x7bc   : > { %7304 = vmatprep.subr.bf16.mxu0 %v8078_v0 }
 0x7bf   : > { %7306 = vmatpush3.bf16.msra.mxu0 %v7305_v38 }
 0x7c0   : > { %7307 = vmatprep.subr.bf16.mxu0 %v8078_v0 }
 0x7c3   : > { %7309 = vmatpush3.bf16.msra.mxu0 %v7308_v50 }
 0x7c4   : > { %7310 = vmatprep.subr.bf16.mxu0 %v8078_v0 }
 0x7c7   : > { %7312 = vmatpush3.bf16.msra.mxu0 %v7311_v59 }
 0x7c8   : > { %7313 = vmatprep.subr.bf16.mxu0 %v8078_v0 }
 0x7cb   : > { %7315 = vmatpush3.bf16.msra.mxu0 %v7314_v4 }
 0x7cc   : > { %7316 = vmatprep.subr.bf16.mxu0 %v8078_v0 }
 0x7cf   : > { %7318 = vmatpush3.bf16.msra.mxu0 %v7317_v3 }
 0x7d0   : > { %7319 = vmatprep.subr.bf16.mxu0 %v8078_v0 }
 0x7d2   : > { %6762 = vmatmul.mubr.f32.vlgmr.msra.gmra.mrb[22].mxu0 %v4517_v52  ;;  %v5194_v52 = vsub.f32 %v5192_v33, %v5193_v27 }
 0x7d3   : > { %7321 = vmatpush3.bf16.msra.mxu0 %v9360_v16  ;;  %6796 = vmatprep.mubr.msk.f32.mxu0 %vm8079_vm0, %v8080_v1 }
 0x7d4   : > { %7322 = vmatprep.subr.bf16.mxu0 %v8078_v0  ;;  %v5195_v55 = vand.u32 4294901760, %v5194_v52 }
 0x7d7   : > { %7324 = vmatpush3.bf16.msra.mxu0 %v9368_v8 }
 0x7d8   : > { %7325 = vmatprep.subr.bf16.mxu0 %v8078_v0 }
 0x7db   : > { %7327 = vmatpush3.bf16.msra.mxu0 %v9388_v62 }
 0x7dc   : > { %7328 = vmatprep.subr.bf16.mxu0 %v8078_v0 }
 0x7df   : > { %7330 = vmatpush3.bf16.msra.mxu0 %v9393_v56 }
 0x7e0   : > { %7331 = vmatprep.subr.bf16.mxu0 %v8078_v0 }
 0x7e3   : > { %7333 = vmatpush3.bf16.msra.mxu0 %v9398_v23 }
 0x7e4   : > { %7334 = vmatprep.subr.bf16.mxu0 %v8078_v0 }
 0x7e7   : > { %7336 = vmatpush3.bf16.msra.mxu0 %v9433_v26 }
 0x7e8   : > { %7337 = vmatprep.subr.bf16.mxu0 %v8078_v0 }
 0x7eb   : > { %7339 = vmatpush3.bf16.msra.mxu0 %v9437_v21 }
 0x7ec   : > { %7340 = vmatprep.subr.bf16.mxu0 %v8078_v0 }
 0x7ef   : > { %7342 = vmatpush3.bf16.msra.mxu0 %v9443_v22 }
 0x7f0   : > { %7343 = vmatprep.subr.bf16.mxu0 %v8078_v0 }
 0x7f2   : > { %6797 = vmatmul.mubr.f32.vlgmr.msra.gmra.mrb[22].mxu0 %v4518_v39 }
 0x7f3   : > { %7345 = vmatpush3.bf16.msra.mxu0 %v7344_v43  ;;  %6831 = vmatprep.mubr.msk.f32.mxu0 %vm8079_vm0, %v8080_v1 }
 0x7f4   : > { %7346 = vmatprep.subr.bf16.mxu0 %v8078_v0 }
 0x7f7   : > { %7348 = vmatpush3.bf16.msra.mxu0 %v7347_v14 }
 0x7f8   : > { %7349 = vmatprep.subr.bf16.mxu0 %v8078_v0 }
 0x7fb   : > { %7351 = vmatpush3.bf16.msra.mxu0 %v7350_v6 }
 0x7fc   : > { %7352 = vmatprep.subr.bf16.mxu0 %v8078_v0 }
 0x7ff   : > { %7354 = vmatpush3.bf16.msra.mxu0 %v7353_v41 }
 0x800   : > { %7355 = vmatprep.subr.bf16.mxu0 %v8078_v0 }
 0x803   : > { %7357 = vmatpush3.bf16.msra.mxu0 %v7356_v60 }
 0x804   : > { %7358 = vmatprep.subr.bf16.mxu0 %v8078_v0 }
 0x807   : > { %7360 = vmatpush3.bf16.msra.mxu0 %v7359_v54 }
 0x808   : > { %7361 = vmatprep.subr.bf16.mxu0 %v8078_v0 }
 0x80b   : > { %7363 = vmatpush3.bf16.msra.mxu0 %v7362_v61 }
 0x80c   : > { %7364 = vmatprep.subr.bf16.mxu0 %v8078_v0 }
 0x80f   : > { %7366 = vmatpush3.bf16.msra.mxu0 %v7365_v32 }
 0x810   : > { %7367 = vmatprep.subr.bf16.mxu0 %v8078_v0 }
 0x812   : > { %6832 = vmatmul.mubr.f32.vlgmr.msra.gmra.mrb[22].mxu0 %v9541_v15 }
 0x813   : > { %7369 = vmatpush3.bf16.msra.mxu0 %v9360_v16  ;;  %6866 = vmatprep.mubr.msk.f32.mxu0 %vm8079_vm0, %v8080_v1  ;;  %v5076_v16 = vld [vmem:[#allocation14] sm:$0xff] }
 0x814   : > { %7370 = vmatprep.subr.bf16.mxu0 %v8078_v0 }
 0x817   : > { %7372 = vmatpush3.bf16.msra.mxu0 %v9368_v8  ;;  %v5077_v8 = vld [vmem:[#allocation14 + $0x8] sm:$0xff] }
 0x818   : > { %7373 = vmatprep.subr.bf16.mxu0 %v8078_v0 }
 0x81b   : > { %7375 = vmatpush3.bf16.msra.mxu0 %v9388_v62  ;;  %v5091_v62 = vand.u32 4294901760, %v5076_v16 }
 0x81c   : > { %7376 = vmatprep.subr.bf16.mxu0 %v8078_v0 }
 0x81f   : > { %7378 = vmatpush3.bf16.msra.mxu0 %v9393_v56  ;;  %v5094_v56 = vand.u32 4294901760, %v5077_v8 }
 0x820   : > { %7379 = vmatprep.subr.bf16.mxu0 %v8078_v0 }
 0x821   : > { %v5178_v25 = vsub.f32 %v5077_v8, %v5094_v56 }
 0x823   : > { %7381 = vmatpush3.bf16.msra.mxu0 %v9398_v23  ;;  %v9649_v23 = vpack.c.bf16 %v5094_v56, %v5091_v62  ;;  %v5179_v45 = vand.u32 4294901760, %v5178_v25 }
 0x824   : > { %7382 = vmatprep.subr.bf16.mxu0 %v8078_v0 }
 0x825   : > { %v5180_v11 = vsub.f32 %v5178_v25, %v5179_v45 }
 0x827   : > { %7384 = vmatpush3.bf16.msra.mxu0 %v9433_v26  ;;  %v5171_v26 = vsub.f32 %v5076_v16, %v5091_v62  ;;  %v5181_v18 = vand.u32 4294901760, %v5180_v11 }
 0x828   : > { %7385 = vmatprep.subr.bf16.mxu0 %v8078_v0 }
 0x829   : > { %v5172_v28 = vand.u32 4294901760, %v5171_v26  ;;  %v7404_v19 = vpack.c.bf16 %v5178_v25, %v5171_v26 }
 0x82b   : > { %7387 = vmatpush3.bf16.msra.mxu0 %v9437_v21  ;;  %v5078_v21 = vld [vmem:[#allocation14 + $0x10] sm:$0xff]  ;;  %v5173_v36 = vsub.f32 %v5171_v26, %v5172_v28  ;;  %v7416_v58 = vpack.c.bf16 %v5179_v45, %v5172_v28 }
 0x82c   : > { %7388 = vmatprep.subr.bf16.mxu0 %v8078_v0 }
 0x82d   : > { %v5174_v51 = vand.u32 4294901760, %v5173_v36 }
 0x82f   : > { %7390 = vmatpush3.bf16.msra.mxu0 %v9443_v22  ;;  %v5097_v22 = vand.u32 4294901760, %v5078_v21  ;;  %v7398_v57 = vpack.c.bf16 %v5181_v18, %v5174_v51 }
 0x830   : > { %7391 = vmatprep.subr.bf16.mxu0 %v8078_v0 }
 0x831   : > { %v7395_v12 = vpack.c.bf16 %v5100_v24, %v5097_v22  ;;  %v5185_v10 = vsub.f32 %v5078_v21, %v5097_v22 }
 0x832   : > { %6867 = vmatmul.mubr.f32.vlgmr.msra.gmra.mrb[22].mxu0 %v9541_v15 }
 0x833   : > { %6877 = vmatprep.mubr.msk.f32.mxu0 %vm8079_vm0, %v8080_v1  ;;  %7393 = vmatpush3.bf16.msra.mxu0 %v9649_v23  ;;  %v5186_v40 = vand.u32 4294901760, %v5185_v10  ;;  %v7407_v13 = vpack.c.bf16 %v5192_v33, %v5185_v10 }
 0x834   : > { %7394 = vmatprep.subr.bf16.mxu0 %v8078_v0 }
 0x835   : > { %v5187_v39 = vsub.f32 %v5185_v10, %v5186_v40  ;;  %v7419_v63 = vpack.c.bf16 %v5193_v27, %v5186_v40 }
 0x837   : > { %7396 = vmatpush3.bf16.msra.mxu0 %v7395_v12  ;;  %v5188_v15 = vand.u32 4294901760, %v5187_v39 }
 0x838   : > { %7397 = vmatprep.subr.bf16.mxu0 %v8078_v0 }
 0x839   : > { %v7401_v49 = vpack.c.bf16 %v5195_v55, %v5188_v15 }
 0x905   : > { %v5072_v31 = vpop.f32.mrb[22].mxu0 }
 0x906   : > { %v5088_v2 = vsel %vm463_vm1, %v5072_v31, 0  ;;  %v6868_v47 = vpop.f32.mrb[23].mxu0 }
 0x907   : > { %v5159_v38 = vand.u32 4294901760, %v5088_v2 }
 0x909   : > { %v5160_v50 = vsub.f32 %v5088_v2, %v5159_v38 }
 0x90b   : > { %v5161_v59 = vand.u32 4294901760, %v5160_v50 }
 0x90d   : > { %v5162_v4 = vsub.f32 %v5160_v50, %v5161_v59 }
 0x90f   : > { %v5163_v3 = vand.u32 4294901760, %v5162_v4 }
 0x911   : > { %6878 = vmatmul.mubr.f32.vlgmr.msra.gmra.mrb[24].mxu0 %v5163_v3 }
 0x912   : > { %7399 = vmatpush3.bf16.msra.mxu0 %v7398_v57  ;;  %6888 = vmatprep.mubr.msk.f32.mxu0 %vm8079_vm0, %v8080_v1 }
 0x913   : > { %7400 = vmatprep.subr.bf16.mxu0 %v8078_v0 }
 0x916   : > { %7402 = vmatpush3.bf16.msra.mxu0 %v7401_v49 }
 0x917   : > { %7403 = vmatprep.subr.bf16.mxu0 %v8078_v0 }
 0x919   : > { %6889 = vmatmul.mubr.f32.vlgmr.msra.gmra.mrb[24].mxu0 %v5159_v38 }
 0x91a   : > { %7405 = vmatpush3.bf16.msra.mxu0 %v7404_v19  ;;  %6899 = vmatprep.mubr.msk.f32.mxu0 %vm8079_vm0, %v8080_v1 }
 0x91b   : > { %7406 = vmatprep.subr.bf16.mxu0 %v8078_v0 }
 0x91e   : > { %7408 = vmatpush3.bf16.msra.mxu0 %v7407_v13 }
 0x91f   : > { %7409 = vmatprep.subr.bf16.mxu0 %v8078_v0 }
 0x921   : > { %6900 = vmatmul.mubr.f32.vlgmr.msra.gmra.mrb[24].mxu0 %v5160_v50 }
 0x922   : > { %7411 = vmatpush3.bf16.msra.mxu0 %v9649_v23  ;;  %6910 = vmatprep.mubr.msk.f32.mxu0 %vm8079_vm0, %v8080_v1 }
 0x923   : > { %7412 = vmatprep.subr.bf16.mxu0 %v8078_v0 }
 0x926   : > { %7414 = vmatpush3.bf16.msra.mxu0 %v7395_v12 }
 0x927   : > { %7415 = vmatprep.subr.bf16.mxu0 %v8078_v0 }
 0x929   : > { %6911 = vmatmul.mubr.f32.vlgmr.msra.gmra.mrb[24].mxu0 %v5161_v59 }
 0x92a   : > { %7417 = vmatpush3.bf16.msra.mxu0 %v7416_v58  ;;  %6921 = vmatprep.mubr.msk.f32.mxu0 %vm8079_vm0, %v8080_v1 }
 0x92b   : > { %7418 = vmatprep.subr.bf16.mxu0 %v8078_v0 }
 0x92e   : > { %7420 = vmatpush3.bf16.msra.mxu0 %v7419_v63 }
 0x92f   : > { %7421 = vmatprep.subr.bf16.mxu0 %v8078_v0 }
 0x931   : > { %6922 = vmatmul.mubr.f32.vlgmr.msra.gmra.mrb[24].mxu0 %v5159_v38 }
 0x932   : > { %7423 = vmatpush3.bf16.msra.mxu0 %v9649_v23  ;;  %6932 = vmatprep.mubr.msk.f32.mxu0 %vm8079_vm0, %v8080_v1 }
 0x933   : > { %7424 = vmatprep.subr.bf16.mxu0 %v8078_v0 }
 0x936   : > { %7426 = vmatpush3.bf16.msra.mxu0 %v7395_v12 }
 0x939   : > { %6933 = vmatmul.mubr.f32.vlgmr.msra.gmra.mrb[24].mxu0 %v5159_v38 }
 0xa0c   : > { %v5571_v35 = vpop.f32.mrb[24].mxu0 }
 0xa0d   : > { %v7450_v44 = vadd.f32 %v5760_v29, %v5571_v35  ;;  %v6934_v5 = vpop.f32.mrb[25].mxu0 }
 0xa0f   : > { %5575 = vst [vmem:[%s457_s13] sm:$0xff] %v7450_v44 }
 0xa10   : > { %7992 = shalt.err (!%p7989_p10)
}
 0xa11   : > { %s7993_s20 = scalar_lea.hbm %s9682_s14, 128  ;;  %s7997_s16 = scalar_lea.hbm %s9784_s17, 256 }
 0xa12   : > { %p7994_p11 = scmp.ne.s32.totalorder %s9682_s14, %s7993_s20  ;;  %p7998_p7 = scmp.lt.u32.totalorder %s9682_s14, %s9784_s17 }
 0xa13   : > { %p7999_p6 = scmp.lt.u32.totalorder %s7997_s16, %s7993_s20  ;;  %p8001_p12 = scmp.lt.u32.totalorder %s7993_s20, %s9682_s14 }
 0xa14   : > { %p7995_p8 = pnand %p7994_p11, %p9785_p1 }
 0xa15   : > { %p8000_p9 = por %p7999_p6, %p7998_p7 }
 0xa16   : > { %p7996_p5 = pneg %p7995_p8 }
 0xa17   : > { %p8002_p13 = por %p8001_p12, %p8000_p9 }
 0xa19   : > { %p8003_p0 = pnand %p8002_p13, %p7996_p5 }
 0xa1b   : > { %8006 = shalt.err (!%p8003_p0)
}
 0xa1c   : > { %7617 = dma.vmem_to_hbm [thread:$0]  (%p9785_p1), %s9684_s25, 128, %s9682_s14, %s5577_s29  }
 0xa1d PF: > { %s5602_s19 = sand.u32 1, %s8049_s30   ;;  %p9786_p2 = scmp.ne.s32.totalorder %s9763_s22, 0 }
 0xa1e   : > { %p9787_p3 = scmp.ge.s32.totalorder %s8061_s12, 2  ;;  %s5603_s21 = scalar_lea.sflag [#allocation4], %s5602_s19 }
 0xa20   : > { %p7649_p4 = pnand %p9787_p3, %p9786_p2 }
 0xa22   : > { %8044 = dma.done.wait (!%p7649_p4), %s5603_s21, 128  }
 0xa23   : > { %8046 = vsyncadd (!%p7649_p4), %s5603_s21, 4294967168  ;;  %p26_p10 = scmp.ge.s32.totalorder %s8362_s27, 4   ;;  %s9788_s30 = smov %s8053_s10 }
 0xa24   : > { %s9789_s10 = smov %s8057_s11  ;;  %s9790_s11 = smov %s8373_s23 }
 0xa25   : > { %s9791_s12 = smov %s8362_s27  ;;  %28 = sbr.rel (!%p26_p10) target bundleno = 12 (0xc), region = 133 }
 0xa2c   :  { %5608 = vsyncpa [#allocation3], 1 }
 0xa2d   :  { %5610 = vsyncpa [#allocation3 + $0x1], 1 }
 0xa2e   :  { %5611 = vsyncpa [#allocation6], 1 }
 0xa2f   :  { %5612 = vsyncpa [#allocation9], 1 }
 0xa30   :  { %5613 = vsyncpa [#allocation12], 1 }
 0xa31   :  { %5614 = vsyncpa [#allocation15], 1 }
 0xa32   :  { %5615 = vsyncpa [#allocation4], 1 }
 0xa33   :  { %5617 = vsyncpa [#allocation4 + $0x1], 1 }

</bundles_post_ra>
